<compile_context>
chip_gen: v7x
topology: tpu7x:2x2x1
jax: 0.10.0
libtpu: 0.0.40
codegen_flags: <defaults>
</compile_context>

<pallas_src>
import functools

import jax
import jax.numpy as jnp
from jax import lax
from jax.experimental import pallas as pl
from jax.experimental.pallas import tpu as pltpu


# ------------------------------------------------------------------
# helpers
# ------------------------------------------------------------------
def _round_up(x, m):
    return ((x + m - 1) // m) * m


def _pick_row_tile(m_pad):
    """Largest MXU-friendly row tile that still yields >= 2 grid steps."""
    for tm in (256, 128, 64, 32, 16, 8):
        if m_pad % tm == 0 and m_pad // tm >= 2:
            return tm
    return m_pad  # single (full) tile -- always legal


# ------------------------------------------------------------------
# Kernel A: 1x1 conv as one full-width MXU matmul per row tile + complete
# per-tile batch statistics.  grid = (num_row_tiles,), all "parallel".
# ------------------------------------------------------------------
def _conv1x1_stats_kernel(x_ref, w_ref, y_ref, sum_ref, sq_ref):
    # x_ref: (tm, C) bf16, w_ref: (C, C) bf16 (resident across the grid).
    y = jnp.dot(x_ref[...], w_ref[...], preferred_element_type=jnp.float32)
    y_ref[...] = y.astype(y_ref.dtype)                     # (tm, C)
    # per-tile channel statistics (zero-padded rows contribute exactly 0).
    sum_ref[0] = jnp.sum(y, axis=0, keepdims=True)         # (1, C) f32
    sq_ref[0] = jnp.sum(y * y, axis=0, keepdims=True)      # (1, C) f32


# ------------------------------------------------------------------
# Kernel C: fused BN(affine) + ReLU + halo mask + grouped 3x3 conv.
# grid = (G, N); one grid step = whole padded image of one group.
# The padded activation is flat over (H+3)*Wp rows (Wp = pow2 row stride),
# so every tap is a static, mostly sublane-aligned 2D slice feeding a matmul.
# ------------------------------------------------------------------
def _make_bn_relu_gconv_kernel(H, W, Wp, P, HL):
    shift_bits = Wp.bit_length() - 1            # Wp is a power of two
    assert (1 << shift_bits) == Wp

    def kernel(y_ref, w_ref, scale_ref, shift_ref, o_ref, a_ref):
        # y_ref      : (1, 1, P, Cg)  pre-BN activation, spatially zero padded
        # w_ref      : (1, 9, Cg, Cg) grouped conv weights (resident per group)
        # scale/shift: (1, 1, Cg) f32 BN affine
        # o_ref      : (1, 1, HL, Cg) f32
        # a_ref      : (P, Cg) VMEM scratch, compute dtype
        y = y_ref[0, 0].astype(jnp.float32)                        # (P, Cg)
        a = jnp.maximum(y * scale_ref[0] + shift_ref[0], 0.0)      # BN + ReLU

        # Halo mask generated in-kernel (compile-time pattern, no HBM input);
        # zero AFTER the affine+ReLU so padded zeros stay zero.
        pos = lax.broadcasted_iota(jnp.int32, (P, a.shape[-1]), 0)
        row = pos >> shift_bits
        col = pos & (Wp - 1)
        inside = (row >= 1) & (row <= H) & (col >= 1) & (col <= W)
        a_ref[...] = jnp.where(inside, a, 0.0).astype(a_ref.dtype)

        # 9 taps == 9 static shifted slices of the flat padded activation,
        # accumulated functionally (single summed-dot) and stored once.
        acc = jnp.dot(a_ref[pl.ds(0, HL), :], w_ref[0, 0],
                      preferred_element_type=jnp.float32)
        for t in range(1, 9):
            dy, dx = divmod(t, 3)
            off = dy * Wp + dx                  # static; dy*Wp is 8-aligned
            acc = acc + jnp.dot(a_ref[pl.ds(off, HL), :], w_ref[0, t],
                                preferred_element_type=jnp.float32)
        o_ref[0, 0] = acc

    return kernel


# ------------------------------------------------------------------
# Full module forward.
# ------------------------------------------------------------------
def forward(x_nchw, w1, gamma, beta, w2g, *, groups=4, eps=1e-5,
            compute_dtype=jnp.bfloat16):
    """x_nchw: (N, C, H, W) f32.

    w1   : (Cin, Cout)              -- 1x1 conv weight (torch weight[:, :, 0, 0].T)
    gamma, beta : (C,)              -- BN affine params
    w2g  : (G, 3, 3, Cg_in, Cg_out) -- grouped 3x3 conv weight
           (torch OIHW weight[g*Cg+co, ci, dy, dx] == w2g[g, dy, dx, ci, co])
    """
    f32 = jnp.float32
    cdt = compute_dtype
    N, C, H, W = x_nchw.shape
    G = groups
    assert C % G == 0
    Cg = C // G
    M = N * H * W
    M_pad = _round_up(M, 256)          # MXU-friendly row count (zero padded)
    tm = _pick_row_tile(M_pad)
    nt = M_pad // tm

    # ---- input layout prep: NCHW -> (M_pad, C) bf16 rows --------------------
    x2d = jnp.transpose(x_nchw, (0, 2, 3, 1)).reshape(M, C).astype(cdt)
    if M_pad > M:
        x2d = jnp.pad(x2d, ((0, M_pad - M), (0, 0)))
    w1c = w1.astype(cdt)

    # ---- Kernel A: 1x1 conv + complete per-tile batch statistics -----------
    y2d, psum, psq = pl.pallas_call(
        _conv1x1_stats_kernel,
        out_shape=(jax.ShapeDtypeStruct((M_pad, C), cdt),
                   jax.ShapeDtypeStruct((nt, 1, C), f32),
                   jax.ShapeDtypeStruct((nt, 1, C), f32)),
        grid_spec=pltpu.PrefetchScalarGridSpec(
            num_scalar_prefetch=0,
            grid=(nt,),
            in_specs=[pl.BlockSpec((tm, C), lambda i: (i, 0)),
                      pl.BlockSpec((C, C), lambda i: (0, 0))],
            out_specs=(pl.BlockSpec((tm, C), lambda i: (i, 0)),
                       pl.BlockSpec((1, 1, C), lambda i: (i, 0, 0)),
                       pl.BlockSpec((1, 1, C), lambda i: (i, 0, 0)))),
        compiler_params=pltpu.CompilerParams(
            dimension_semantics=("parallel",)),
    )(x2d, w1c)

    # ---- BatchNorm (training mode) scale/shift from per-tile stats ---------
    # TODO(synk): running_mean/running_var (momentum) buffer updates are
    # module state only (no effect on the forward output), not materialized.
    # TODO(synk): single-pass E[y^2]-E[y]^2 in f32 can cancel when |mean|>>std;
    # PyTorch uses a numerically safer variance reduction.
    csum = jnp.sum(psum[:, 0, :], axis=0)
    csq = jnp.sum(psq[:, 0, :], axis=0)
    mean = csum / M                                    # true divisor M
    var = jnp.maximum(csq / M - mean * mean, 0.0)      # biased var, clamped
    scale = gamma * lax.rsqrt(var + eps)
    shift = beta - mean * scale
    scale_g = scale.astype(f32).reshape(G, 1, Cg)
    shift_g = shift.astype(f32).reshape(G, 1, Cg)

    # ---- one XLA copy: group split + spatial zero pad (pow2 row stride) ----
    Wp = max(1 << (W + 2 - 1).bit_length(), 8)   # pow2 row stride >= W+2
    P = (H + 3) * Wp                              # +1 top halo, +2 bottom slack
    HL = H * Wp
    y5 = y2d[:M].reshape(N, H, W, G, Cg)
    y_pad = jnp.pad(y5, ((0, 0), (1, 2), (1, Wp - W - 1), (0, 0), (0, 0)))
    y_pf = jnp.transpose(y_pad, (3, 0, 1, 2, 4)).reshape(G, N, P, Cg)

    w2r = w2g.reshape(G, 9, Cg, Cg).astype(cdt)

    gconv_kernel = _make_bn_relu_gconv_kernel(H, W, Wp, P, HL)

    # ---- Kernel C: fused BN + ReLU + grouped 3x3 conv -----------------------
    out_g = pl.pallas_call(
        gconv_kernel,
        out_shape=jax.ShapeDtypeStruct((G, N, HL, Cg), f32),
        grid_spec=pltpu.PrefetchScalarGridSpec(
            num_scalar_prefetch=0,
            grid=(G, N),
            in_specs=[pl.BlockSpec((1, 1, P, Cg), lambda g, n: (g, n, 0, 0)),
                      pl.BlockSpec((1, 9, Cg, Cg), lambda g, n: (g, 0, 0, 0)),
                      pl.BlockSpec((1, 1, Cg), lambda g, n: (g, 0, 0)),
                      pl.BlockSpec((1, 1, Cg), lambda g, n: (g, 0, 0))],
            out_specs=pl.BlockSpec((1, 1, HL, Cg), lambda g, n: (g, n, 0, 0)),
            scratch_shapes=[pltpu.VMEM((P, Cg), cdt)]),
        compiler_params=pltpu.CompilerParams(
            dimension_semantics=("parallel", "parallel")),
    )(y_pf, w2r, scale_g, shift_g)

    # drop padded columns per row, de-interleave groups, back to NCHW.
    out_valid = out_g.reshape(G, N, H, Wp, Cg)[:, :, :, :W, :]
    out_nchw = jnp.transpose(out_valid, (1, 0, 4, 2, 3)).reshape(N, C, H, W)
    return out_nchw


# ------------------------------------------------------------------
# Pure-JAX reference (mirrors the kernel's bf16 quantization points so the
# check validates indexing / fusion with a tight tolerance).
# ------------------------------------------------------------------
def ref_forward(x_nchw, w1, gamma, beta, w2g, groups, eps=1e-5,
                compute_dtype=jnp.bfloat16):
    f32 = jnp.float32
    N, C, H, W = x_nchw.shape
    G = groups
    Cg = C // G
    xq = x_nchw.astype(compute_dtype).astype(f32)
    w1q = w1.astype(compute_dtype).astype(f32)
    y = jnp.einsum('nchw,cd->ndhw', xq, w1q, preferred_element_type=f32)
    mean = jnp.mean(y, axis=(0, 2, 3))
    var = jnp.maximum(jnp.mean(y * y, axis=(0, 2, 3)) - mean * mean, 0.0)
    scale = gamma * lax.rsqrt(var + eps)
    shift = beta - mean * scale
    yq = y.astype(compute_dtype).astype(f32)      # kernel stores y in bf16
    a = jnp.maximum(yq * scale[None, :, None, None]
                    + shift[None, :, None, None], 0.0)
    aq = a.astype(compute_dtype)
    w_oihw = jnp.transpose(w2g, (0, 4, 3, 1, 2)).reshape(C, Cg, 3, 3)
    return lax.conv_general_dilated(
        aq, w_oihw.astype(compute_dtype),
        window_strides=(1, 1), padding=((1, 1), (1, 1)),
        dimension_numbers=('NCHW', 'OIHW', 'NCHW'), feature_group_count=G,
        preferred_element_type=f32)


if __name__ == "__main__":
    key = jax.random.PRNGKey(0)
    # Small shapes consistent with the module (original: 1x1056x28x28, groups=4).
    N, C, H, W = 2, 32, 16, 16
    G = 4
    Cg = C // G

    k1, k2, k3, k4, k5 = jax.random.split(key, 5)
    x = jax.random.normal(k1, (N, C, H, W), jnp.float32)
    w1 = jax.random.normal(k2, (C, C), jnp.float32) / jnp.sqrt(C)
    gamma = jax.random.uniform(k3, (C,), jnp.float32, minval=0.5, maxval=1.5)
    beta = 0.1 * jax.random.normal(k4, (C,), jnp.float32)
    w2 = jax.random.normal(k5, (G, 3, 3, Cg, Cg), jnp.float32) / jnp.sqrt(9 * Cg)

    fwd = jax.jit(functools.partial(forward, groups=G))
    out = jax.block_until_ready(fwd(x, w1, gamma, beta, w2))

    ref = ref_forward(x, w1, gamma, beta, w2, G)
    assert out.shape == (N, C, H, W), out.shape
    if not jnp.allclose(out, ref, rtol=2e-3, atol=2e-3):
        raise AssertionError(
            f"mismatch: max abs err = {float(jnp.max(jnp.abs(out - ref)))}")
    print("KERNEL_OK")
</pallas_src>

<mosaic_0001>
module attributes {stable_mosaic.version = 11 : i64} {
  func.func @_conv1x1_stats_kernel(%arg0: i32, %arg1: memref<256x32xbf16, #tpu.memory_space<vmem>>, %arg2: memref<32x32xbf16, #tpu.memory_space<vmem>>, %arg3: memref<256x32xbf16, #tpu.memory_space<vmem>>, %arg4: memref<1x1x32xf32, #tpu.memory_space<vmem>>, %arg5: memref<1x1x32xf32, #tpu.memory_space<vmem>>) attributes {dimension_semantics = [#tpu.dimension_semantics<parallel>], iteration_bounds = array<i64: 2>, scalar_prefetch = 0 : i64, scratch_operands = 0 : i64, tpu.core_type = #tpu.core_type<tc>, window_params = [{transform_indices = @transform_0, window_bounds = array<i64: 256, 32>}, {pipeline_mode = #tpu.pipeline_mode<synchronous>, transform_indices = @transform_1, window_bounds = array<i64: 32, 32>}, {transform_indices = @transform_2, window_bounds = array<i64: 256, 32>}, {transform_indices = @transform_3, window_bounds = array<i64: 1, 1, 32>}, {transform_indices = @transform_4, window_bounds = array<i64: 1, 1, 32>}]} {
    %c0 = arith.constant 0 : index
    %c0_0 = arith.constant 0 : index
    %0 = vector.load %arg1[%c0, %c0_0] : memref<256x32xbf16, #tpu.memory_space<vmem>>, vector<256x32xbf16>
    %c0_1 = arith.constant 0 : index
    %c0_2 = arith.constant 0 : index
    %1 = vector.load %arg2[%c0_1, %c0_2] : memref<32x32xbf16, #tpu.memory_space<vmem>>, vector<32x32xbf16>
    %cst = arith.constant dense<0.000000e+00> : vector<256x32xf32>
    %2 = tpu.matmul %0, %1, %cst {dimension_numbers = #tpu.dot_dimension_numbers<[1], [0], [0], [1], [0, 0, 1, 1], [], []>} : vector<256x32xbf16>, vector<32x32xbf16>, vector<256x32xf32> -> vector<256x32xf32>
    %3 = arith.truncf %2 : vector<256x32xf32> to vector<256x32xbf16>
    %c0_3 = arith.constant 0 : index
    %c0_4 = arith.constant 0 : index
    %4 = vector.load %arg3[%c0_3, %c0_4] : memref<256x32xbf16, #tpu.memory_space<vmem>>, vector<256x32xbf16>
    tpu.vector_store %arg3[%c0_3, %c0_4], %3 {strides = array<i32>} : memref<256x32xbf16, #tpu.memory_space<vmem>>, vector<256x32xbf16>,
    %cst_5 = arith.constant dense<0.000000e+00> : vector<32xf32>
    %5 = vector.multi_reduction <add>, %2, %cst_5 [0] : vector<256x32xf32> to vector<32xf32>
    %6 = vector.shape_cast %5 : vector<32xf32> to vector<1x32xf32>
    %c0_6 = arith.constant 0 : index
    %c0_7 = arith.constant 0 : index
    %c0_8 = arith.constant 0 : index
    %7 = vector.load %arg4[%c0_6, %c0_7, %c0_8] : memref<1x1x32xf32, #tpu.memory_space<vmem>>, vector<1x1x32xf32>
    %8 = vector.shape_cast %7 : vector<1x1x32xf32> to vector<1x32xf32>
    %9 = vector.shape_cast %6 : vector<1x32xf32> to vector<1x1x32xf32>
    tpu.vector_store %arg4[%c0_6, %c0_7, %c0_8], %9 {strides = array<i32>} : memref<1x1x32xf32, #tpu.memory_space<vmem>>, vector<1x1x32xf32>,
    %10 = arith.mulf %2, %2 : vector<256x32xf32>
    %cst_9 = arith.constant dense<0.000000e+00> : vector<32xf32>
    %11 = vector.multi_reduction <add>, %10, %cst_9 [0] : vector<256x32xf32> to vector<32xf32>
    %12 = vector.shape_cast %11 : vector<32xf32> to vector<1x32xf32>
    %c0_10 = arith.constant 0 : index
    %c0_11 = arith.constant 0 : index
    %c0_12 = arith.constant 0 : index
    %13 = vector.load %arg5[%c0_10, %c0_11, %c0_12] : memref<1x1x32xf32, #tpu.memory_space<vmem>>, vector<1x1x32xf32>
    %14 = vector.shape_cast %13 : vector<1x1x32xf32> to vector<1x32xf32>
    %15 = vector.shape_cast %12 : vector<1x32xf32> to vector<1x1x32xf32>
    tpu.vector_store %arg5[%c0_10, %c0_11, %c0_12], %15 {strides = array<i32>} : memref<1x1x32xf32, #tpu.memory_space<vmem>>, vector<1x1x32xf32>,
    return
  }
  func.func @transform_0(%arg0: i32) -> (i32, i32) {
    %c0_i32 = arith.constant 0 : i32
    %c0_i32_0 = arith.constant 0 : i32
    return %arg0, %c0_i32 : i32, i32
  }
  func.func @transform_1(%arg0: i32) -> (i32, i32) {
    %c0_i32 = arith.constant 0 : i32
    %c0_i32_0 = arith.constant 0 : i32
    %c0_i32_1 = arith.constant 0 : i32
    return %c0_i32, %c0_i32_0 : i32, i32
  }
  func.func @transform_2(%arg0: i32) -> (i32, i32) {
    %c0_i32 = arith.constant 0 : i32
    %c0_i32_0 = arith.constant 0 : i32
    return %arg0, %c0_i32 : i32, i32
  }
  func.func @transform_3(%arg0: i32) -> (i32, i32, i32) {
    %c0_i32 = arith.constant 0 : i32
    %c0_i32_0 = arith.constant 0 : i32
    %c0_i32_1 = arith.constant 0 : i32
    return %arg0, %c0_i32, %c0_i32_0 : i32, i32, i32
  }
  func.func @transform_4(%arg0: i32) -> (i32, i32, i32) {
    %c0_i32 = arith.constant 0 : i32
    %c0_i32_0 = arith.constant 0 : i32
    %c0_i32_1 = arith.constant 0 : i32
    return %arg0, %c0_i32, %c0_i32_0 : i32, i32, i32
  }
}

module attributes {stable_mosaic.version = 11 : i64} {
  func.func @kernel(%arg0: i32, %arg1: i32, %arg2: memref<1x1x608x8xbf16, #tpu.memory_space<vmem>>, %arg3: memref<1x9x8x8xbf16, #tpu.memory_space<vmem>>, %arg4: memref<1x1x8xf32, #tpu.memory_space<vmem>>, %arg5: memref<1x1x8xf32, #tpu.memory_space<vmem>>, %arg6: memref<1x1x512x8xf32, #tpu.memory_space<vmem>>, %arg7: memref<608x8xbf16, #tpu.memory_space<vmem>>) attributes {dimension_semantics = [#tpu.dimension_semantics<parallel>, #tpu.dimension_semantics<parallel>], iteration_bounds = array<i64: 4, 2>, scalar_prefetch = 0 : i64, scratch_operands = 1 : i64, tpu.core_type = #tpu.core_type<tc>, window_params = [{transform_indices = @transform_0, window_bounds = array<i64: 1, 1, 608, 8>}, {transform_indices = @transform_1, window_bounds = array<i64: 1, 9, 8, 8>}, {transform_indices = @transform_2, window_bounds = array<i64: 1, 1, 8>}, {transform_indices = @transform_3, window_bounds = array<i64: 1, 1, 8>}, {transform_indices = @transform_4, window_bounds = array<i64: 1, 1, 512, 8>}]} {
    %c0 = arith.constant 0 : index
    %c0_0 = arith.constant 0 : index
    %c0_1 = arith.constant 0 : index
    %c0_2 = arith.constant 0 : index
    %0 = vector.load %arg2[%c0, %c0_0, %c0_1, %c0_2] : memref<1x1x608x8xbf16, #tpu.memory_space<vmem>>, vector<1x1x608x8xbf16>
    %1 = vector.shape_cast %0 : vector<1x1x608x8xbf16> to vector<608x8xbf16>
    %2 = arith.extf %1 : vector<608x8xbf16> to vector<608x8xf32>
    %c0_3 = arith.constant 0 : index
    %c0_4 = arith.constant 0 : index
    %c0_5 = arith.constant 0 : index
    %3 = vector.load %arg4[%c0_3, %c0_4, %c0_5] : memref<1x1x8xf32, #tpu.memory_space<vmem>>, vector<1x1x8xf32>
    %4 = vector.shape_cast %3 : vector<1x1x8xf32> to vector<1x8xf32>
    %5 = vector.broadcast %4 : vector<1x8xf32> to vector<608x8xf32>
    %6 = arith.mulf %2, %5 : vector<608x8xf32>
    %c0_6 = arith.constant 0 : index
    %c0_7 = arith.constant 0 : index
    %c0_8 = arith.constant 0 : index
    %7 = vector.load %arg5[%c0_6, %c0_7, %c0_8] : memref<1x1x8xf32, #tpu.memory_space<vmem>>, vector<1x1x8xf32>
    %8 = vector.shape_cast %7 : vector<1x1x8xf32> to vector<1x8xf32>
    %9 = vector.broadcast %8 : vector<1x8xf32> to vector<608x8xf32>
    %10 = arith.addf %6, %9 : vector<608x8xf32>
    %cst = arith.constant 0.000000e+00 : f32
    %11 = vector.broadcast %cst : f32 to vector<608x8xf32>
    %12 = arith.maximumf %10, %11 : vector<608x8xf32>
    %13 = tpu.iota {dimensions = array<i32: 0>} : vector<608x8xi32>
    %c5_i32 = arith.constant 5 : i32
    %14 = vector.broadcast %c5_i32 : i32 to vector<608x8xi32>
    %15 = arith.shrsi %13, %14 : vector<608x8xi32>
    %c31_i32 = arith.constant 31 : i32
    %16 = vector.broadcast %c31_i32 : i32 to vector<608x8xi32>
    %17 = arith.andi %13, %16 : vector<608x8xi32>
    %c1_i32 = arith.constant 1 : i32
    %18 = vector.broadcast %c1_i32 : i32 to vector<608x8xi32>
    %19 = arith.cmpi sge, %15, %18 : vector<608x8xi32>
    %c16_i32 = arith.constant 16 : i32
    %20 = vector.broadcast %c16_i32 : i32 to vector<608x8xi32>
    %21 = arith.cmpi sle, %15, %20 : vector<608x8xi32>
    %22 = arith.andi %19, %21 : vector<608x8xi1>
    %c1_i32_9 = arith.constant 1 : i32
    %23 = vector.broadcast %c1_i32_9 : i32 to vector<608x8xi32>
    %24 = arith.cmpi sge, %17, %23 : vector<608x8xi32>
    %25 = arith.andi %22, %24 : vector<608x8xi1>
    %c16_i32_10 = arith.constant 16 : i32
    %26 = vector.broadcast %c16_i32_10 : i32 to vector<608x8xi32>
    %27 = arith.cmpi sle, %17, %26 : vector<608x8xi32>
    %28 = arith.andi %25, %27 : vector<608x8xi1>
    %cst_11 = arith.constant 0.000000e+00 : f32
    %29 = vector.broadcast %cst_11 : f32 to vector<608x8xf32>
    %30 = arith.select %28, %12, %29 : vector<608x8xi1>, vector<608x8xf32>
    %31 = arith.truncf %30 : vector<608x8xf32> to vector<608x8xbf16>
    %c0_12 = arith.constant 0 : index
    %c0_13 = arith.constant 0 : index
    %32 = vector.load %arg7[%c0_12, %c0_13] : memref<608x8xbf16, #tpu.memory_space<vmem>>, vector<608x8xbf16>
    tpu.vector_store %arg7[%c0_12, %c0_13], %31 {strides = array<i32>} : memref<608x8xbf16, #tpu.memory_space<vmem>>, vector<608x8xbf16>,
    %c0_14 = arith.constant 0 : index
    %c0_15 = arith.constant 0 : index
    %33 = vector.load %arg7[%c0_14, %c0_15] : memref<608x8xbf16, #tpu.memory_space<vmem>>, vector<512x8xbf16>
    %c0_16 = arith.constant 0 : index
    %c0_17 = arith.constant 0 : index
    %c0_18 = arith.constant 0 : index
    %c0_19 = arith.constant 0 : index
    %34 = vector.load %arg3[%c0_16, %c0_17, %c0_18, %c0_19] : memref<1x9x8x8xbf16, #tpu.memory_space<vmem>>, vector<1x1x8x8xbf16>
    %35 = vector.shape_cast %34 : vector<1x1x8x8xbf16> to vector<8x8xbf16>
    %cst_20 = arith.constant dense<0.000000e+00> : vector<512x8xf32>
    %36 = tpu.matmul %33, %35, %cst_20 {dimension_numbers = #tpu.dot_dimension_numbers<[1], [0], [0], [1], [0, 0, 1, 1], [], []>} : vector<512x8xbf16>, vector<8x8xbf16>, vector<512x8xf32> -> vector<512x8xf32>
    %c1 = arith.constant 1 : index
    %c0_21 = arith.constant 0 : index
    %37 = vector.load %arg7[%c1, %c0_21] : memref<608x8xbf16, #tpu.memory_space<vmem>>, vector<512x8xbf16>
    %c0_22 = arith.constant 0 : index
    %c1_23 = arith.constant 1 : index
    %c0_24 = arith.constant 0 : index
    %c0_25 = arith.constant 0 : index
    %38 = vector.load %arg3[%c0_22, %c1_23, %c0_24, %c0_25] : memref<1x9x8x8xbf16, #tpu.memory_space<vmem>>, vector<1x1x8x8xbf16>
    %39 = vector.shape_cast %38 : vector<1x1x8x8xbf16> to vector<8x8xbf16>
    %cst_26 = arith.constant dense<0.000000e+00> : vector<512x8xf32>
    %40 = tpu.matmul %37, %39, %cst_26 {dimension_numbers = #tpu.dot_dimension_numbers<[1], [0], [0], [1], [0, 0, 1, 1], [], []>} : vector<512x8xbf16>, vector<8x8xbf16>, vector<512x8xf32> -> vector<512x8xf32>
    %41 = arith.addf %36, %40 : vector<512x8xf32>
    %c2 = arith.constant 2 : index
    %c0_27 = arith.constant 0 : index
    %42 = vector.load %arg7[%c2, %c0_27] : memref<608x8xbf16, #tpu.memory_space<vmem>>, vector<512x8xbf16>
    %c0_28 = arith.constant 0 : index
    %c2_29 = arith.constant 2 : index
    %c0_30 = arith.constant 0 : index
    %c0_31 = arith.constant 0 : index
    %43 = vector.load %arg3[%c0_28, %c2_29, %c0_30, %c0_31] : memref<1x9x8x8xbf16, #tpu.memory_space<vmem>>, vector<1x1x8x8xbf16>
    %44 = vector.shape_cast %43 : vector<1x1x8x8xbf16> to vector<8x8xbf16>
    %cst_32 = arith.constant dense<0.000000e+00> : vector<512x8xf32>
    %45 = tpu.matmul %42, %44, %cst_32 {dimension_numbers = #tpu.dot_dimension_numbers<[1], [0], [0], [1], [0, 0, 1, 1], [], []>} : vector<512x8xbf16>, vector<8x8xbf16>, vector<512x8xf32> -> vector<512x8xf32>
    %46 = arith.addf %41, %45 : vector<512x8xf32>
    %c32 = arith.constant 32 : index
    %c0_33 = arith.constant 0 : index
    %47 = vector.load %arg7[%c32, %c0_33] : memref<608x8xbf16, #tpu.memory_space<vmem>>, vector<512x8xbf16>
    %c0_34 = arith.constant 0 : index
    %c3 = arith.constant 3 : index
    %c0_35 = arith.constant 0 : index
    %c0_36 = arith.constant 0 : index
    %48 = vector.load %arg3[%c0_34, %c3, %c0_35, %c0_36] : memref<1x9x8x8xbf16, #tpu.memory_space<vmem>>, vector<1x1x8x8xbf16>
    %49 = vector.shape_cast %48 : vector<1x1x8x8xbf16> to vector<8x8xbf16>
    %cst_37 = arith.constant dense<0.000000e+00> : vector<512x8xf32>
    %50 = tpu.matmul %47, %49, %cst_37 {dimension_numbers = #tpu.dot_dimension_numbers<[1], [0], [0], [1], [0, 0, 1, 1], [], []>} : vector<512x8xbf16>, vector<8x8xbf16>, vector<512x8xf32> -> vector<512x8xf32>
    %51 = arith.addf %46, %50 : vector<512x8xf32>
    %c33 = arith.constant 33 : index
    %c0_38 = arith.constant 0 : index
    %52 = vector.load %arg7[%c33, %c0_38] : memref<608x8xbf16, #tpu.memory_space<vmem>>, vector<512x8xbf16>
    %c0_39 = arith.constant 0 : index
    %c4 = arith.constant 4 : index
    %c0_40 = arith.constant 0 : index
    %c0_41 = arith.constant 0 : index
    %53 = vector.load %arg3[%c0_39, %c4, %c0_40, %c0_41] : memref<1x9x8x8xbf16, #tpu.memory_space<vmem>>, vector<1x1x8x8xbf16>
    %54 = vector.shape_cast %53 : vector<1x1x8x8xbf16> to vector<8x8xbf16>
    %cst_42 = arith.constant dense<0.000000e+00> : vector<512x8xf32>
    %55 = tpu.matmul %52, %54, %cst_42 {dimension_numbers = #tpu.dot_dimension_numbers<[1], [0], [0], [1], [0, 0, 1, 1], [], []>} : vector<512x8xbf16>, vector<8x8xbf16>, vector<512x8xf32> -> vector<512x8xf32>
    %56 = arith.addf %51, %55 : vector<512x8xf32>
    %c34 = arith.constant 34 : index
    %c0_43 = arith.constant 0 : index
    %57 = vector.load %arg7[%c34, %c0_43] : memref<608x8xbf16, #tpu.memory_space<vmem>>, vector<512x8xbf16>
    %c0_44 = arith.constant 0 : index
    %c5 = arith.constant 5 : index
    %c0_45 = arith.constant 0 : index
    %c0_46 = arith.constant 0 : index
    %58 = vector.load %arg3[%c0_44, %c5, %c0_45, %c0_46] : memref<1x9x8x8xbf16, #tpu.memory_space<vmem>>, vector<1x1x8x8xbf16>
    %59 = vector.shape_cast %58 : vector<1x1x8x8xbf16> to vector<8x8xbf16>
    %cst_47 = arith.constant dense<0.000000e+00> : vector<512x8xf32>
    %60 = tpu.matmul %57, %59, %cst_47 {dimension_numbers = #tpu.dot_dimension_numbers<[1], [0], [0], [1], [0, 0, 1, 1], [], []>} : vector<512x8xbf16>, vector<8x8xbf16>, vector<512x8xf32> -> vector<512x8xf32>
    %61 = arith.addf %56, %60 : vector<512x8xf32>
    %c64 = arith.constant 64 : index
    %c0_48 = arith.constant 0 : index
    %62 = vector.load %arg7[%c64, %c0_48] : memref<608x8xbf16, #tpu.memory_space<vmem>>, vector<512x8xbf16>
    %c0_49 = arith.constant 0 : index
    %c6 = arith.constant 6 : index
    %c0_50 = arith.constant 0 : index
    %c0_51 = arith.constant 0 : index
    %63 = vector.load %arg3[%c0_49, %c6, %c0_50, %c0_51] : memref<1x9x8x8xbf16, #tpu.memory_space<vmem>>, vector<1x1x8x8xbf16>
    %64 = vector.shape_cast %63 : vector<1x1x8x8xbf16> to vector<8x8xbf16>
    %cst_52 = arith.constant dense<0.000000e+00> : vector<512x8xf32>
    %65 = tpu.matmul %62, %64, %cst_52 {dimension_numbers = #tpu.dot_dimension_numbers<[1], [0], [0], [1], [0, 0, 1, 1], [], []>} : vector<512x8xbf16>, vector<8x8xbf16>, vector<512x8xf32> -> vector<512x8xf32>
    %66 = arith.addf %61, %65 : vector<512x8xf32>
    %c65 = arith.constant 65 : index
    %c0_53 = arith.constant 0 : index
    %67 = vector.load %arg7[%c65, %c0_53] : memref<608x8xbf16, #tpu.memory_space<vmem>>, vector<512x8xbf16>
    %c0_54 = arith.constant 0 : index
    %c7 = arith.constant 7 : index
    %c0_55 = arith.constant 0 : index
    %c0_56 = arith.constant 0 : index
    %68 = vector.load %arg3[%c0_54, %c7, %c0_55, %c0_56] : memref<1x9x8x8xbf16, #tpu.memory_space<vmem>>, vector<1x1x8x8xbf16>
    %69 = vector.shape_cast %68 : vector<1x1x8x8xbf16> to vector<8x8xbf16>
    %cst_57 = arith.constant dense<0.000000e+00> : vector<512x8xf32>
    %70 = tpu.matmul %67, %69, %cst_57 {dimension_numbers = #tpu.dot_dimension_numbers<[1], [0], [0], [1], [0, 0, 1, 1], [], []>} : vector<512x8xbf16>, vector<8x8xbf16>, vector<512x8xf32> -> vector<512x8xf32>
    %71 = arith.addf %66, %70 : vector<512x8xf32>
    %c66 = arith.constant 66 : index
    %c0_58 = arith.constant 0 : index
    %72 = vector.load %arg7[%c66, %c0_58] : memref<608x8xbf16, #tpu.memory_space<vmem>>, vector<512x8xbf16>
    %c0_59 = arith.constant 0 : index
    %c8 = arith.constant 8 : index
    %c0_60 = arith.constant 0 : index
    %c0_61 = arith.constant 0 : index
    %73 = vector.load %arg3[%c0_59, %c8, %c0_60, %c0_61] : memref<1x9x8x8xbf16, #tpu.memory_space<vmem>>, vector<1x1x8x8xbf16>
    %74 = vector.shape_cast %73 : vector<1x1x8x8xbf16> to vector<8x8xbf16>
    %cst_62 = arith.constant dense<0.000000e+00> : vector<512x8xf32>
    %75 = tpu.matmul %72, %74, %cst_62 {dimension_numbers = #tpu.dot_dimension_numbers<[1], [0], [0], [1], [0, 0, 1, 1], [], []>} : vector<512x8xbf16>, vector<8x8xbf16>, vector<512x8xf32> -> vector<512x8xf32>
    %76 = arith.addf %71, %75 : vector<512x8xf32>
    %c0_63 = arith.constant 0 : index
    %c0_64 = arith.constant 0 : index
    %c0_65 = arith.constant 0 : index
    %c0_66 = arith.constant 0 : index
    %77 = vector.load %arg6[%c0_63, %c0_64, %c0_65, %c0_66] : memref<1x1x512x8xf32, #tpu.memory_space<vmem>>, vector<1x1x512x8xf32>
    %78 = vector.shape_cast %77 : vector<1x1x512x8xf32> to vector<512x8xf32>
    %79 = vector.shape_cast %76 : vector<512x8xf32> to vector<1x1x512x8xf32>
    tpu.vector_store %arg6[%c0_63, %c0_64, %c0_65, %c0_66], %79 {strides = array<i32>} : memref<1x1x512x8xf32, #tpu.memory_space<vmem>>, vector<1x1x512x8xf32>,
    return
  }
  func.func @transform_0(%arg0: i32, %arg1: i32) -> (i32, i32, i32, i32) {
    %c0_i32 = arith.constant 0 : i32
    %c0_i32_0 = arith.constant 0 : i32
    %c0_i32_1 = arith.constant 0 : i32
    return %arg0, %arg1, %c0_i32, %c0_i32_0 : i32, i32, i32, i32
  }
  func.func @transform_1(%arg0: i32, %arg1: i32) -> (i32, i32, i32, i32) {
    %c0_i32 = arith.constant 0 : i32
    %c0_i32_0 = arith.constant 0 : i32
    %c0_i32_1 = arith.constant 0 : i32
    %c0_i32_2 = arith.constant 0 : i32
    return %arg0, %c0_i32, %c0_i32_0, %c0_i32_1 : i32, i32, i32, i32
  }
  func.func @transform_2(%arg0: i32, %arg1: i32) -> (i32, i32, i32) {
    %c0_i32 = arith.constant 0 : i32
    %c0_i32_0 = arith.constant 0 : i32
    %c0_i32_1 = arith.constant 0 : i32
    return %arg0, %c0_i32, %c0_i32_0 : i32, i32, i32
  }
  func.func @transform_3(%arg0: i32, %arg1: i32) -> (i32, i32, i32) {
    %c0_i32 = arith.constant 0 : i32
    %c0_i32_0 = arith.constant 0 : i32
    %c0_i32_1 = arith.constant 0 : i32
    return %arg0, %c0_i32, %c0_i32_0 : i32, i32, i32
  }
  func.func @transform_4(%arg0: i32, %arg1: i32) -> (i32, i32, i32, i32) {
    %c0_i32 = arith.constant 0 : i32
    %c0_i32_0 = arith.constant 0 : i32
    %c0_i32_1 = arith.constant 0 : i32
    return %arg0, %arg1, %c0_i32, %c0_i32_0 : i32, i32, i32, i32
  }
}

</mosaic_0001>

<bundles_post_ra>
// kernel: forward.2
= control target key start
LH: loop header
LB: loop body
LE: loop exit
PB: predicated region body
PF: predicated region fallthrough
CT: control target
= control target key end

     0   :  { %s1223_s15 = smov 0   ;;  %s1540_s0 = inlined_call_operand.vmem [shape: bf16[512,32], index: 0, kind: input, shape index: {}]   ;;  %s1541_s1 = inlined_call_operand.vmem [shape: bf16[32,32], index: 1, kind: input, shape index: {}]   ;;  %s1542_s2 = inlined_call_operand.vmem [shape: bf16[512,32], index: 2, kind: output, shape index: {0}]   ;;  %s1543_s3 = inlined_call_operand.vmem [shape: f32[2,1,32], index: 3, kind: output, shape index: {1}]   ;;  %s1544_s4 = inlined_call_operand.vmem [shape: f32[2,1,32], index: 4, kind: output, shape index: {2}]  }
   0x1 LB: > { %s1229_s16 = sadd.s32 4294967295, %s1196_s15   ;;  %p1001_p0 = scmp.ge.s32.totalorder %s1196_s15, 1  ;;  %s1196_s15 = sphi %s1223_s15, %s15_s15  }
   0x2   : > { %p168_p1 = scmp.lt.s32.totalorder %s1196_s15, 3 }
   0x4   : > { %p169_p2 = pnand %p1001_p0, %p168_p1 }
   0x5   : > { %v1172_v0 = vld [vmem:[%s1541_s1] sm:$0xff] (!%p169_p2)   ;;  %s1002_s19 = sshll.u32 (!%p169_p2), %s1229_s16, 5  ;;  %v1173_v1 = vld [vmem:[%s1541_s1 + $0x8] sm:$0xff] (!%p169_p2)   ;;  %vm347_vm0 = vcmask (!%p169_p2), 261120   ;;  %vm685_vm1 = vcmask (!%p169_p2), 257024   ;;  %p212_p4 = scmp.lt.s32.totalorder (!%p169_p2), %s1229_s16, 1 }
   0x6   : > { %172 = sbr.rel (%p169_p2) target bundleno = 311 (0x137), region = 28  ;;  %p201_p3 = scmp.lt.s32.totalorder (!%p169_p2), %s1002_s19, 63  ;;  %1124 = vmatprep.subr.bf16.mxu0 (!%p169_p2), %v1172_v0  ;;  %1160 = vmatprep.subr.bf16.mxu1 (!%p169_p2), %v1172_v0  ;;  %vm787_vm2 = vcmask (!%p169_p2), 253952  }
   0x7   : > { %1125 = vmatpush3.bf16.msra.mxu0 (!%p169_p2), %v1172_v0  ;;  %1162 = vmatpush3.bf16.msra.mxu1 (!%p169_p2), %v1172_v0 }
   0x8   : > { %1126 = vmatprep.subr.bf16.mxu0 (!%p169_p2), %v1173_v1  ;;  %1161 = vmatprep.subr.bf16.mxu1 (!%p169_p2), %v1173_v1 }
   0xb   : > { %1127 = vmatpush3.bf16.msra.mxu0 (!%p169_p2), %v1173_v1  ;;  %1163 = vmatpush3.bf16.msra.mxu1 (!%p169_p2), %v1173_v1 }
   0xd   : > { %s1546_s19 = smov (!%p201_p3, %s1002_s19), 63  ;;  %s1548_s16 = smov (!%p212_p4, %s1229_s16), 1 }
   0xe   : > { %s1003_s22 = sshll.u32 %s1546_s19, 2  ;;  %s214_s5 = scalar_lea.vmem %s1543_s3, %s1548_s16 }
   0xf   : > { %s1248_s25 = scalar_lea.vmem %s1540_s0, %s1003_s22  ;;  %s1287_s28 = scalar_lea.vmem %s1542_s2, %s1003_s22 }
  0x10   : > { %v1174_v2 = vld [vmem:[%s1248_s25] sm:$0xff]   ;;  %v1175_v3 = vld [vmem:[%s1248_s25 + $0x8] sm:$0xff]   ;;  %v1176_v4 = vld [vmem:[%s1248_s25 + $0x10] sm:$0xff]   ;;  %s217_s8 = scalar_lea.vmem %s1544_s4, %s1548_s16 }
  0x11   : > { %1128 = vmatprep.mubr.msk.bf16.mxu0 %vm347_vm0, %v1174_v2  ;;  %v1177_v5 = vld [vmem:[%s1248_s25 + $0x18] sm:$0xff]   ;;  %v1178_v6 = vld [vmem:[%s1248_s25 + $0x20] sm:$0xff]   ;;  %v1183_v8 = vld [vmem:[%s1248_s25 + $0x48] sm:$0xff]  }
  0x12   : > { %1129 = vmatmul.mubr.msk.bf16.vlgmr.msra.gmra.mrb[0].mxu0 %vm347_vm0, %v1175_v3  ;;  %v1182_v7 = vld [vmem:[%s1248_s25 + $0x40] sm:$0xff]   ;;  %v1184_v9 = vld [vmem:[%s1248_s25 + $0x50] sm:$0xff]   ;;  %v1179_v10 = vld [vmem:[%s1248_s25 + $0x28] sm:$0xff]  }
  0x13   : > { %1132 = vmatprep.mubr.msk.bf16.mxu0 %vm347_vm0, %v1176_v4  ;;  %1144 = vmatprep.mubr.msk.bf16.mxu1 %vm347_vm0, %v1182_v7  ;;  %v1185_v11 = vld [vmem:[%s1248_s25 + $0x58] sm:$0xff]   ;;  %v1180_v12 = vld [vmem:[%s1248_s25 + $0x30] sm:$0xff]   ;;  %v1186_v13 = vld [vmem:[%s1248_s25 + $0x60] sm:$0xff]  }
  0x14   : > { %1145 = vmatmul.mubr.msk.bf16.vlgmr.msra.gmra.mrb[0].mxu1 %vm347_vm0, %v1183_v8  ;;  %v1181_v14 = vld [vmem:[%s1248_s25 + $0x38] sm:$0xff]   ;;  %v1187_v15 = vld [vmem:[%s1248_s25 + $0x68] sm:$0xff]   ;;  %v1188_v16 = vld [vmem:[%s1248_s25 + $0x70] sm:$0xff]  }
  0x15   : > { %1148 = vmatprep.mubr.msk.bf16.mxu1 %vm347_vm0, %v1184_v9  ;;  %v1189_v17 = vld [vmem:[%s1248_s25 + $0x78] sm:$0xff]  }
  0x1a   : > { %1133 = vmatmul.mubr.msk.bf16.gmra.mrb[4].mxu0 %vm347_vm0, %v1177_v5 }
  0x1b   : > { %1136 = vmatprep.mubr.msk.bf16.mxu0 %vm347_vm0, %v1178_v6 }
  0x1c   : > { %1149 = vmatmul.mubr.msk.bf16.gmra.mrb[4].mxu1 %vm347_vm0, %v1185_v11 }
  0x1d   : > { %1152 = vmatprep.mubr.msk.bf16.mxu1 %vm347_vm0, %v1186_v13 }
  0x22   : > { %1137 = vmatmul.mubr.msk.bf16.gmra.mrb[8].mxu0 %vm347_vm0, %v1179_v10 }
  0x23   : > { %1140 = vmatprep.mubr.msk.bf16.mxu0 %vm347_vm0, %v1180_v12 }
  0x24   : > { %1153 = vmatmul.mubr.msk.bf16.gmra.mrb[8].mxu1 %vm347_vm0, %v1187_v15 }
  0x25   : > { %1156 = vmatprep.mubr.msk.bf16.mxu1 %vm347_vm0, %v1188_v16 }
  0x2a   : > { %1141 = vmatmul.mubr.msk.bf16.gmra.mrb[12].mxu0 %vm347_vm0, %v1181_v14 }
  0x2c   : > { %1157 = vmatmul.mubr.msk.bf16.gmra.mrb[12].mxu1 %vm347_vm0, %v1189_v17 }
  0xe5   : > { %v1130_v18 = vpop.f32.mrb[0].mxu0 }
  0xe6   : > { %v1076_v19 = vpack.c.bf16 %v1130_v18, %v1130_v18  ;;  %v430_v20 = vpop.f32.mrb[1].mxu0  ;;  %v791_v24 = vmul.f32 %v1130_v18, %v1130_v18  ;;  %v721_v33 = vsel %vm347_vm0, %v1130_v18, 0.0 }
  0xe7   : > { %v1074_v21 = vpack.c.bf16 %v430_v20, %v430_v20  ;;  %v789_v22 = vmul.f32 %v430_v20, %v430_v20  ;;  %v1131_v23 = vpop.f32.mrb[2].mxu0  ;;  %v718_v27 = vsel %vm347_vm0, %v430_v20, 0.0  ;;  %v1303_v40 = vpop.f32.mrb[0].mxu1 }
  0xe8   : > { %688 = vst.msk [vmem:[%s1287_s28 + $0x8] sm:$0xf] %vm685_vm1, %v1076_v19  ;;  %v1077_v25 = vpack.c.bf16 %v1131_v23, %v1131_v23  ;;  %v433_v26 = vpop.f32.mrb[3].mxu0  ;;  %v792_v31 = vmul.f32 %v1131_v23, %v1131_v23  ;;  %v824_v38 = vsel %vm347_vm0, %v791_v24, 0.0  ;;  %v723_v41 = vsel %vm347_vm0, %v1131_v23, 0.0  ;;  %v1307_v46 = vpop.f32.mrb[1].mxu1 }
  0xe9   : > { %686 = vst.msk [vmem:[%s1287_s28] sm:$0xf] %vm685_vm1, %v1074_v21  ;;  %v1075_v28 = vpack.c.bf16 %v433_v26, %v433_v26  ;;  %v719_v29 = vsel %vm347_vm0, %v433_v26, 0.0  ;;  %v790_v30 = vmul.f32 %v433_v26, %v433_v26  ;;  %v821_v34 = vsel %vm347_vm0, %v789_v22, 0.0  ;;  %v1310_v52 = vpop.f32.mrb[2].mxu1 }
  0xea   : > { %689 = vst.msk [vmem:[%s1287_s28 + $0xc] sm:$0xf] %vm685_vm1, %v1077_v25  ;;  %v720_v32 = vadd.f32 %v719_v29, %v718_v27  ;;  %v826_v42 = vsel %vm347_vm0, %v792_v31, 0.0  ;;  %v1314_v56 = vpop.f32.mrb[3].mxu1  ;;  %v1092_v0 = vpack.c.bf16 %v1303_v40, %v1303_v40  ;;  %v1090_v5 = vpack.c.bf16 %v1307_v46, %v1307_v46 }
  0xeb   : > { %687 = vst.msk [vmem:[%s1287_s28 + $0x4] sm:$0xf] %vm685_vm1, %v1075_v28  ;;  %v822_v35 = vsel %vm347_vm0, %v790_v30, 0.0  ;;  %v1093_v9 = vpack.c.bf16 %v1310_v52, %v1310_v52 }
  0xec   : > { %v722_v36 = vadd.f32 %v721_v33, %v720_v32  ;;  %v823_v37 = vadd.f32 %v822_v35, %v821_v34  ;;  %704 = vst.msk [vmem:[%s1287_s28 + $0x48] sm:$0xf] %vm685_vm1, %v1092_v0  ;;  %702 = vst.msk [vmem:[%s1287_s28 + $0x40] sm:$0xf] %vm685_vm1, %v1090_v5 }
  0xed   : > { %v1134_v39 = vpop.f32.mrb[4].mxu0  ;;  %705 = vst.msk [vmem:[%s1287_s28 + $0x4c] sm:$0xf] %vm685_vm1, %v1093_v9 }
  0xee   : > { %v825_v43 = vadd.f32 %v824_v38, %v823_v37  ;;  %v1080_v44 = vpack.c.bf16 %v1134_v39, %v1134_v39  ;;  %v446_v45 = vpop.f32.mrb[5].mxu0  ;;  %v724_v48 = vadd.f32 %v723_v41, %v722_v36  ;;  %v795_v57 = vmul.f32 %v1134_v39, %v1134_v39 }
  0xef   : > { %v1078_v47 = vpack.c.bf16 %v446_v45, %v446_v45  ;;  %v725_v49 = vsel %vm347_vm0, %v446_v45, 0.0  ;;  %v793_v50 = vmul.f32 %v446_v45, %v446_v45  ;;  %v1135_v51 = vpop.f32.mrb[6].mxu0  ;;  %v729_v2 = vsel %vm347_vm0, %v1134_v39, 0.0  ;;  %v1334_v10 = vpop.f32.mrb[4].mxu1 }
  0xf0   : > { %692 = vst.msk [vmem:[%s1287_s28 + $0x18] sm:$0xf] %vm685_vm1, %v1080_v44  ;;  %v827_v53 = vadd.f32 %v826_v42, %v825_v43  ;;  %v1081_v54 = vpack.c.bf16 %v1135_v51, %v1135_v51  ;;  %v449_v55 = vpop.f32.mrb[7].mxu0  ;;  %v726_v58 = vadd.f32 %v725_v49, %v724_v48  ;;  %v796_v3 = vmul.f32 %v1135_v51, %v1135_v51  ;;  %v1340_v15 = vpop.f32.mrb[5].mxu1 }
  0xf1   : > { %690 = vst.msk [vmem:[%s1287_s28 + $0x10] sm:$0xf] %vm685_vm1, %v1078_v47  ;;  %v828_v59 = vsel %vm347_vm0, %v793_v50, 0.0  ;;  %v1079_v60 = vpack.c.bf16 %v449_v55, %v449_v55  ;;  %v727_v62 = vsel %vm347_vm0, %v449_v55, 0.0  ;;  %v794_v63 = vmul.f32 %v449_v55, %v449_v55  ;;  %v1345_v21 = vpop.f32.mrb[6].mxu1 }
  0xf2   : > { %v829_v61 = vadd.f32 %v828_v59, %v827_v53  ;;  %693 = vst.msk [vmem:[%s1287_s28 + $0x1c] sm:$0xf] %vm685_vm1, %v1081_v54  ;;  %v728_v1 = vadd.f32 %v727_v62, %v726_v58  ;;  %v832_v11 = vsel %vm347_vm0, %v795_v57, 0.0  ;;  %v731_v12 = vsel %vm347_vm0, %v1135_v51, 0.0  ;;  %v1350_v26 = vpop.f32.mrb[7].mxu1 }
  0xf3   : > { %691 = vst.msk [vmem:[%s1287_s28 + $0x14] sm:$0xf] %vm685_vm1, %v1079_v60  ;;  %v830_v4 = vsel %vm347_vm0, %v794_v63, 0.0  ;;  %v834_v22 = vsel %vm347_vm0, %v796_v3, 0.0  ;;  %v1091_v39 = vpack.c.bf16 %v1314_v56, %v1314_v56  ;;  %v1096_v44 = vpack.c.bf16 %v1334_v10, %v1334_v10 }
  0xf4   : > { %v730_v6 = vadd.f32 %v729_v2, %v728_v1  ;;  %v831_v7 = vadd.f32 %v830_v4, %v829_v61 }
  0xf5   : > { %v1138_v8 = vpop.f32.mrb[8].mxu0  ;;  %703 = vst.msk [vmem:[%s1287_s28 + $0x44] sm:$0xf] %vm685_vm1, %v1091_v39  ;;  %708 = vst.msk [vmem:[%s1287_s28 + $0x58] sm:$0xf] %vm685_vm1, %v1096_v44  ;;  %v751_v39 = vsel %vm347_vm0, %v1314_v56, 0.0 }
  0xf6   : > { %v1084_v13 = vpack.c.bf16 %v1138_v8, %v1138_v8  ;;  %v462_v14 = vpop.f32.mrb[9].mxu0  ;;  %v833_v16 = vadd.f32 %v832_v11, %v831_v7  ;;  %v732_v18 = vadd.f32 %v731_v12, %v730_v6  ;;  %v799_v30 = vmul.f32 %v1138_v8, %v1138_v8 }
  0xf7   : > { %v1082_v17 = vpack.c.bf16 %v462_v14, %v462_v14  ;;  %v733_v19 = vsel %vm347_vm0, %v462_v14, 0.0  ;;  %v1139_v20 = vpop.f32.mrb[10].mxu0  ;;  %v797_v23 = vmul.f32 %v462_v14, %v462_v14  ;;  %v737_v36 = vsel %vm347_vm0, %v1138_v8, 0.0  ;;  %v1366_v45 = vpop.f32.mrb[8].mxu1 }
  0xf8   : > { %696 = vst.msk [vmem:[%s1287_s28 + $0x28] sm:$0xf] %vm685_vm1, %v1084_v13  ;;  %v1085_v24 = vpack.c.bf16 %v1139_v20, %v1139_v20  ;;  %v465_v25 = vpop.f32.mrb[11].mxu0  ;;  %v734_v27 = vadd.f32 %v733_v19, %v732_v18  ;;  %v835_v28 = vadd.f32 %v834_v22, %v833_v16  ;;  %v800_v37 = vmul.f32 %v1139_v20, %v1139_v20  ;;  %v1372_v51 = vpop.f32.mrb[9].mxu1 }
  0xf9   : > { %694 = vst.msk [vmem:[%s1287_s28 + $0x20] sm:$0xf] %vm685_vm1, %v1082_v17  ;;  %v1083_v29 = vpack.c.bf16 %v465_v25, %v465_v25  ;;  %v836_v31 = vsel %vm347_vm0, %v797_v23, 0.0  ;;  %v735_v32 = vsel %vm347_vm0, %v465_v25, 0.0  ;;  %v798_v33 = vmul.f32 %v465_v25, %v465_v25  ;;  %v1377_v59 = vpop.f32.mrb[10].mxu1 }
  0xfa   : > { %697 = vst.msk [vmem:[%s1287_s28 + $0x2c] sm:$0xf] %vm685_vm1, %v1085_v24  ;;  %v837_v34 = vadd.f32 %v836_v31, %v835_v28  ;;  %v736_v35 = vadd.f32 %v735_v32, %v734_v27  ;;  %v840_v47 = vsel %vm347_vm0, %v799_v30, 0.0  ;;  %v739_v48 = vsel %vm347_vm0, %v1139_v20, 0.0  ;;  %v1382_v0 = vpop.f32.mrb[11].mxu1 }
  0xfb   : > { %695 = vst.msk [vmem:[%s1287_s28 + $0x24] sm:$0xf] %vm685_vm1, %v1083_v29  ;;  %v838_v38 = vsel %vm347_vm0, %v798_v33, 0.0  ;;  %v842_v60 = vsel %vm347_vm0, %v800_v37, 0.0  ;;  %v805_v11 = vmul.f32 %v1307_v46, %v1307_v46  ;;  %v1094_v16 = vpack.c.bf16 %v1340_v15, %v1340_v15 }
  0xfc   : > { %v738_v41 = vadd.f32 %v737_v36, %v736_v35  ;;  %v839_v42 = vadd.f32 %v838_v38, %v837_v34  ;;  %v1097_v19 = vpack.c.bf16 %v1345_v21, %v1345_v21  ;;  %v749_v24 = vsel %vm347_vm0, %v1307_v46, 0.0 }
  0xfd   : > { %v1142_v43 = vpop.f32.mrb[12].mxu0  ;;  %706 = vst.msk [vmem:[%s1287_s28 + $0x50] sm:$0xf] %vm685_vm1, %v1094_v16  ;;  %v1095_v25 = vpack.c.bf16 %v1350_v26, %v1350_v26  ;;  %v852_v32 = vsel %vm347_vm0, %v805_v11, 0.0  ;;  %v806_v46 = vmul.f32 %v1314_v56, %v1314_v56  ;;  %v1100_v33 = vpack.c.bf16 %v1366_v45, %v1366_v45 }
  0xfe   : > { %v1088_v49 = vpack.c.bf16 %v1142_v43, %v1142_v43  ;;  %v478_v50 = vpop.f32.mrb[13].mxu0  ;;  %v841_v53 = vadd.f32 %v840_v47, %v839_v42  ;;  %v740_v55 = vadd.f32 %v739_v48, %v738_v41  ;;  %v803_v4 = vmul.f32 %v1142_v43, %v1142_v43  ;;  %709 = vst.msk [vmem:[%s1287_s28 + $0x5c] sm:$0xf] %vm685_vm1, %v1097_v19 }
  0xff   : > { %v1086_v54 = vpack.c.bf16 %v478_v50, %v478_v50  ;;  %v741_v57 = vsel %vm347_vm0, %v478_v50, 0.0  ;;  %v1143_v58 = vpop.f32.mrb[14].mxu0  ;;  %v801_v61 = vmul.f32 %v478_v50, %v478_v50  ;;  %v745_v12 = vsel %vm347_vm0, %v1142_v43, 0.0  ;;  %v1400_v20 = vpop.f32.mrb[12].mxu1  ;;  %707 = vst.msk [vmem:[%s1287_s28 + $0x54] sm:$0xf] %vm685_vm1, %v1095_v25 }
 0x100   : > { %700 = vst.msk [vmem:[%s1287_s28 + $0x38] sm:$0xf] %vm685_vm1, %v1088_v49  ;;  %v1089_v62 = vpack.c.bf16 %v1143_v58, %v1143_v58  ;;  %v481_v63 = vpop.f32.mrb[15].mxu0  ;;  %v742_v1 = vadd.f32 %v741_v57, %v740_v55  ;;  %v843_v2 = vadd.f32 %v842_v60, %v841_v53  ;;  %v804_v13 = vmul.f32 %v1143_v58, %v1143_v58  ;;  %v1410_v27 = vpop.f32.mrb[13].mxu1 }
 0x101   : > { %698 = vst.msk [vmem:[%s1287_s28 + $0x30] sm:$0xf] %vm685_vm1, %v1086_v54  ;;  %v1087_v3 = vpack.c.bf16 %v481_v63, %v481_v63  ;;  %v844_v5 = vsel %vm347_vm0, %v801_v61, 0.0  ;;  %v743_v6 = vsel %vm347_vm0, %v481_v63, 0.0  ;;  %v802_v7 = vmul.f32 %v481_v63, %v481_v63  ;;  %v1414_v30 = vpop.f32.mrb[14].mxu1 }
 0x102   : > { %701 = vst.msk [vmem:[%s1287_s28 + $0x3c] sm:$0xf] %vm685_vm1, %v1089_v62  ;;  %v845_v8 = vadd.f32 %v844_v5, %v843_v2  ;;  %v744_v9 = vadd.f32 %v743_v6, %v742_v1  ;;  %v848_v22 = vsel %vm347_vm0, %v803_v4, 0.0  ;;  %v747_v23 = vsel %vm347_vm0, %v1143_v58, 0.0  ;;  %v1424_v34 = vpop.f32.mrb[15].mxu1 }
 0x103   : > { %699 = vst.msk [vmem:[%s1287_s28 + $0x34] sm:$0xf] %vm685_vm1, %v1087_v3  ;;  %v846_v14 = vsel %vm347_vm0, %v802_v7, 0.0  ;;  %v850_v31 = vsel %vm347_vm0, %v804_v13, 0.0  ;;  %v1098_v37 = vpack.c.bf16 %v1372_v51, %v1372_v51  ;;  %v807_v38 = vmul.f32 %v1303_v40, %v1303_v40  ;;  %712 = vst.msk [vmem:[%s1287_s28 + $0x68] sm:$0xf] %vm685_vm1, %v1100_v33 }
 0x104   : > { %v746_v17 = vadd.f32 %v745_v12, %v744_v9  ;;  %v847_v18 = vadd.f32 %v846_v14, %v845_v8  ;;  %v1101_v41 = vpack.c.bf16 %v1377_v59, %v1377_v59  ;;  %v753_v42 = vsel %vm347_vm0, %v1303_v40, 0.0 }
 0x105   : > { %710 = vst.msk [vmem:[%s1287_s28 + $0x60] sm:$0xf] %vm685_vm1, %v1098_v37  ;;  %v808_v47 = vmul.f32 %v1310_v52, %v1310_v52  ;;  %v854_v48 = vsel %vm347_vm0, %v806_v46, 0.0  ;;  %v809_v56 = vmul.f32 %v1340_v15, %v1340_v15  ;;  %v1099_v49 = vpack.c.bf16 %v1382_v0, %v1382_v0 }
 0x106   : > { %v849_v28 = vadd.f32 %v848_v22, %v847_v18  ;;  %v748_v29 = vadd.f32 %v747_v23, %v746_v17  ;;  %713 = vst.msk [vmem:[%s1287_s28 + $0x6c] sm:$0xf] %vm685_vm1, %v1101_v41  ;;  %v1104_v53 = vpack.c.bf16 %v1400_v20, %v1400_v20  ;;  %v856_v54 = vsel %vm347_vm0, %v807_v38, 0.0 }
 0x107   : > { %v755_v55 = vsel %vm347_vm0, %v1310_v52, 0.0  ;;  %v757_v57 = vsel %vm347_vm0, %v1340_v15, 0.0  ;;  %711 = vst.msk [vmem:[%s1287_s28 + $0x64] sm:$0xf] %vm685_vm1, %v1099_v49  ;;  %v1102_v58 = vpack.c.bf16 %v1410_v27, %v1410_v27  ;;  %v858_v62 = vsel %vm347_vm0, %v808_v47, 0.0 }
 0x108   : > { %v750_v35 = vadd.f32 %v749_v24, %v748_v29  ;;  %v851_v36 = vadd.f32 %v850_v31, %v849_v28  ;;  %716 = vst.msk [vmem:[%s1287_s28 + $0x78] sm:$0xf] %vm685_vm1, %v1104_v53  ;;  %v860_v63 = vsel %vm347_vm0, %v809_v56, 0.0  ;;  %v810_v52 = vmul.f32 %v1350_v26, %v1350_v26 }
 0x109   : > { %714 = vst.msk [vmem:[%s1287_s28 + $0x70] sm:$0xf] %vm685_vm1, %v1102_v58  ;;  %v1105_v15 = vpack.c.bf16 %v1414_v30, %v1414_v30  ;;  %v1103_v3 = vpack.c.bf16 %v1424_v34, %v1424_v34  ;;  %v811_v4 = vmul.f32 %v1334_v10, %v1334_v10  ;;  %v759_v5 = vsel %vm347_vm0, %v1350_v26, 0.0 }
 0x10a   : > { %v853_v43 = vadd.f32 %v852_v32, %v851_v36  ;;  %v752_v44 = vadd.f32 %v751_v39, %v750_v35  ;;  %v761_v8 = vsel %vm347_vm0, %v1334_v10, 0.0  ;;  %v812_v9 = vmul.f32 %v1345_v21, %v1345_v21 }
 0x10b   : > { %717 = vst.msk [vmem:[%s1287_s28 + $0x7c] sm:$0xf] %vm685_vm1, %v1105_v15  ;;  %715 = vst.msk [vmem:[%s1287_s28 + $0x74] sm:$0xf] %vm685_vm1, %v1103_v3  ;;  %v862_v11 = vsel %vm347_vm0, %v810_v52, 0.0  ;;  %v813_v12 = vmul.f32 %v1372_v51, %v1372_v51  ;;  %v864_v26 = vsel %vm347_vm0, %v811_v4, 0.0  ;;  %v814_v23 = vmul.f32 %v1382_v0, %v1382_v0 }
 0x10c   : > { %v754_v40 = vadd.f32 %v753_v42, %v752_v44  ;;  %v855_v50 = vadd.f32 %v854_v48, %v853_v43  ;;  %v763_v16 = vsel %vm347_vm0, %v1345_v21, 0.0  ;;  %v765_v17 = vsel %vm347_vm0, %v1372_v51, 0.0 }
 0x10d   : > { %v866_v19 = vsel %vm347_vm0, %v812_v9, 0.0  ;;  %v868_v22 = vsel %vm347_vm0, %v813_v12, 0.0  ;;  %v815_v28 = vmul.f32 %v1366_v45, %v1366_v45  ;;  %v767_v21 = vsel %vm347_vm0, %v1382_v0, 0.0 }
 0x10e   : > { %v857_v60 = vadd.f32 %v856_v54, %v855_v50  ;;  %v756_v61 = vadd.f32 %v755_v55, %v754_v40  ;;  %v769_v51 = vsel %vm347_vm0, %v1366_v45, 0.0  ;;  %v816_v32 = vmul.f32 %v1377_v59, %v1377_v59 }
 0x10f   : > { %v870_v46 = vsel %vm347_vm0, %v814_v23, 0.0  ;;  %v817_v33 = vmul.f32 %v1410_v27, %v1410_v27  ;;  %v872_v37 = vsel %vm347_vm0, %v815_v28, 0.0  ;;  %v771_v0 = vsel %vm347_vm0, %v1377_v59, 0.0 }
 0x110   : > { %v758_v1 = vadd.f32 %v757_v57, %v756_v61  ;;  %v859_v2 = vadd.f32 %v858_v62, %v857_v60  ;;  %v773_v38 = vsel %vm347_vm0, %v1410_v27, 0.0  ;;  %v874_v41 = vsel %vm347_vm0, %v816_v32, 0.0 }
 0x111   : > { %v876_v42 = vsel %vm347_vm0, %v817_v33, 0.0  ;;  %v818_v43 = vmul.f32 %v1424_v34, %v1424_v34  ;;  %v819_v48 = vmul.f32 %v1400_v20, %v1400_v20  ;;  %v775_v59 = vsel %vm347_vm0, %v1424_v34, 0.0 }
 0x112   : > { %v861_v6 = vadd.f32 %v860_v63, %v859_v2  ;;  %v760_v7 = vadd.f32 %v759_v5, %v758_v1  ;;  %v777_v49 = vsel %vm347_vm0, %v1400_v20, 0.0  ;;  %v820_v40 = vmul.f32 %v1414_v30, %v1414_v30 }
 0x113   : > { %v878_v50 = vsel %vm347_vm0, %v818_v43, 0.0  ;;  %v880_v55 = vsel %vm347_vm0, %v819_v48, 0.0  ;;  %v779_v57 = vsel %vm347_vm0, %v1414_v30, 0.0 }
 0x114   : > { %v762_v13 = vadd.f32 %v761_v8, %v760_v7  ;;  %v863_v14 = vadd.f32 %v862_v11, %v861_v6  ;;  %v882_v60 = vsel %vm347_vm0, %v820_v40, 0.0 }
 0x116   : > { %v865_v18 = vadd.f32 %v864_v26, %v863_v14  ;;  %v764_v10 = vadd.f32 %v763_v16, %v762_v13 }
 0x118   : > { %v766_v24 = vadd.f32 %v765_v17, %v764_v10  ;;  %v867_v25 = vadd.f32 %v866_v19, %v865_v18 }
 0x11a   : > { %v869_v29 = vadd.f32 %v868_v22, %v867_v25  ;;  %v768_v31 = vadd.f32 %v767_v21, %v766_v24 }
 0x11c   : > { %v770_v35 = vadd.f32 %v769_v51, %v768_v31  ;;  %v871_v36 = vadd.f32 %v870_v46, %v869_v29 }
 0x11e   : > { %v873_v39 = vadd.f32 %v872_v37, %v871_v36  ;;  %v772_v45 = vadd.f32 %v771_v0, %v770_v35 }
 0x120   : > { %v774_v44 = vadd.f32 %v773_v38, %v772_v45  ;;  %v875_v47 = vadd.f32 %v874_v41, %v873_v39 }
 0x122   : > { %v877_v56 = vadd.f32 %v876_v42, %v875_v47  ;;  %v776_v27 = vadd.f32 %v775_v59, %v774_v44 }
 0x124   : > { %v778_v53 = vadd.f32 %v777_v49, %v776_v27  ;;  %v879_v54 = vadd.f32 %v878_v50, %v877_v56 }
 0x126   : > { %v780_v58 = vadd.f32 %v779_v57, %v778_v53  ;;  %v881_v34 = vadd.f32 %v880_v55, %v879_v54 }
 0x128   : > { %v781_v61 = vrot.slane %v780_v58, 4  ;;  %v883_v62 = vadd.f32 %v882_v60, %v881_v34 }
 0x12a   : > { %v782_v20 = vadd.f32 %v781_v61, %v780_v58  ;;  %v884_v63 = vrot.slane %v883_v62, 4 }
 0x12c   : > { %v783_v52 = vrot.slane %v782_v20, 2  ;;  %v885_v15 = vadd.f32 %v884_v63, %v883_v62 }
 0x12e   : > { %v784_v1 = vadd.f32 %v783_v52, %v782_v20  ;;  %v886_v2 = vrot.slane %v885_v15, 2 }
 0x130   : > { %v785_v3 = vrot.slane %v784_v1, 1  ;;  %v887_v4 = vadd.f32 %v886_v2, %v885_v15 }
 0x132   : > { %v786_v30 = vadd.f32 %v785_v3, %v784_v1  ;;  %v888_v5 = vrot.slane %v887_v4, 1 }
 0x134   : > { %788 = vst.msk [vmem:[%s214_s5] sm:$0x1] %vm787_vm2, %v786_v30  ;;  %v889_v6 = vadd.f32 %v888_v5, %v887_v4 }
 0x136   : > { %890 = vst.msk [vmem:[%s217_s8] sm:$0x1] %vm787_vm2, %v889_v6 }
 0x137 PF: > { %s15_s15 = sadd.s32 1, %s1196_s15  }
 0x138   : > { %p12_p5 = scmp.ge.s32.totalorder %s15_s15, 4  }
 0x13a   :  { %14 = sbr.rel (!%p12_p5) target bundleno = 1 (0x1), region = 82 }

// kernel: forward.3
= control target key start
LH: loop header
LB: loop body
LE: loop exit
PB: predicated region body
PF: predicated region fallthrough
CT: control target
= control target key end

     0   :  { %s8918_s15 = smov 0   ;;  %s8920_s16 = smov 0   ;;  %s10996_s0 = inlined_call_operand.vmem [shape: bf16[4,2,608,8], index: 0, kind: input, shape index: {}]   ;;  %s10997_s1 = inlined_call_operand.vmem [shape: bf16[4,9,8,8], index: 1, kind: input, shape index: {}]   ;;  %s10998_s2 = inlined_call_operand.vmem [shape: f32[4,1,8], index: 2, kind: input, shape index: {}]   ;;  %s10999_s3 = inlined_call_operand.vmem [shape: f32[4,1,8], index: 3, kind: input, shape index: {}]   ;;  %s11000_s4 = inlined_call_operand.vmem [shape: f32[4,2,512,8], index: 4, kind: output, shape index: {}]  }
   0x1   :  { %s8922_s17 = smov 0   ;;  %s8924_s18 = smov 0  }
   0x2   :  { %s8926_s19 = smov 0  }
   0x3 LB: > { %s23_s20 = sadd.s32 1, %s8882_s17  ;;  %s26_s21 = sadd.s32 1, %s8886_s18  ;;  %s8890_s19 = sphi %s8926_s19, %s14_s19   ;;  %s8886_s18 = sphi %s8924_s18, %s11193_s18   ;;  %s8882_s17 = sphi %s8922_s17, %s11192_s17   ;;  %s8878_s16 = sphi %s8920_s16, %s11191_s16   ;;  %s8874_s15 = sphi %s8918_s15, %s11190_s15  }
   0x4   : > { %p24_p0 = scmp.ge.s32.totalorder %s23_s20, 2  ;;  %p6952_p1 = scmp.ge.s32.totalorder %s8890_s19, 1 }
   0x5   : > { %p208_p2 = scmp.lt.s32.totalorder %s8890_s19, 9 }
   0x6   : > { %s11195_s20 = smov (%p24_p0, %s23_s20), 0  ;;  %s11197_s21 = smov (!%p24_p0, %s26_s21), %s8886_s18 }
   0x7   : > { %p209_p3 = pnand %p6952_p1, %p208_p2  ;;  %p28_p4 = scmp.ge.s32.totalorder %s11197_s21, 4 }
   0x9   : > { %s11199_s21 = smov (%p28_p4, %s11197_s21), 0  ;;  %212 = sbr.rel (%p209_p3) target bundleno = 889 (0x379), region = 36 }
  0x10   : > { %p253_p5 = scmp.lt.s32.totalorder %s8878_s16, 3  ;;  %p255_p6 = scmp.lt.s32.totalorder %s8874_s15, 1  ;;  %v677_v0 = vlaneseq  ;;  %vm1984_vm0 = vcmask 1043456   ;;  %vm1552_vm8 = vcmask 64512   ;;  %v11001_v60 = vmov 0.0  }
  0x12   : > { %s11201_s16 = smov (!%p253_p5, %s8878_s16), 3  ;;  %v8950_v1 = vshrl.u32 %v677_v0, 7  ;;  %s11203_s15 = smov (!%p255_p6, %s8874_s15), 1 }
  0x13   : > { %s8768_s22 = smul.u32 152, %s11201_s16  ;;  %s8957_s25 = scalar_lea.vmem %s10998_s2, %s11201_s16 }
  0x14   : > { %v679_v2 = vadd.s32 8, %v8950_v1  ;;  %v680_v3 = vadd.s32 16, %v8950_v1  ;;  %v754_v4 = vshra.s32 %v8950_v1, 5  ;;  %s8767_s26 = smul.u32 76, %s11203_s15  ;;  %s8966_s29 = scalar_lea.vmem %s10999_s3, %s11201_s16  ;;  %v830_v7 = vand.u32 31, %v8950_v1 }
  0x15   : > { %s8769_s30 = smul.u32 36, %s11201_s16  ;;  %s6955_s5 = sshll.u32 %s11203_s15, 6  ;;  %v8971_v8 = vadd.s32 32, %v8950_v1  ;;  %v8975_v10 = vadd.s32 40, %v8950_v1  ;;  %v8983_v11 = vld [vmem:[%s8957_s25] ss:$0 sm:$0xff] }
  0x16   : > { %v755_v5 = vshra.s32 %v679_v2, 5  ;;  %v756_v6 = vshra.s32 %v680_v3, 5  ;;  %s259_s6 = sadd.s32 %s8768_s22, %s8767_s26  ;;  %s6956_s7 = sshll.u32 %s11201_s16, 7  ;;  %v832_v9 = vand.u32 31, %v680_v3  ;;  %vm8985_vm1 = vcmp.ge.s32.totalorder %v754_v4, 1 }
  0x17   : > { %s6953_s8 = sshll.u32 %s259_s6, 2  ;;  %s8980_s11 = scalar_lea.vmem %s10997_s1, %s8769_s30  ;;  %vm8997_vm4 = vcmp.le.s32.totalorder %v754_v4, 16  ;;  %v9015_v19 = vld [vmem:[%s8966_s29] ss:$0 sm:$0xff]  ;;  %vm9042_vm10 = vcmp.ge.s32.totalorder %v830_v7, 1  ;;  %v684_v40 = vadd.s32 48, %v8950_v1 }
  0x18   : > { %vm8989_vm2 = vcmp.ge.s32.totalorder %v755_v5, 1  ;;  %vm8993_vm3 = vcmp.ge.s32.totalorder %v756_v6, 1  ;;  %s9004_s14 = scalar_lea.vmem %s10996_s0, %s6953_s8  ;;  %s9006_s15 = sadd.s32 %s6956_s7, %s6955_s5  ;;  %v6960_v16 = vld [vmem:[%s8980_s11 + $0x4] sm:$0xf]  ;;  %v7091_v17 = vld [vmem:[%s8980_s11 + $0x10] sm:$0xf]  ;;  %vm1058_vm7 = vmand %vm8985_vm1, %vm8997_vm4 }
  0x19   : > { %vm9010_vm5 = vcmp.le.s32.totalorder %v755_v5, 16  ;;  %8757 = vmatprep.subr.msk.bf16.mxu1 %vm1984_vm0, %v6960_v16  ;;  %8761 = vmatprep.subr.msk.bf16.mxu0 %vm1984_vm0, %v7091_v17  ;;  %v1986_v20 = vsel %vm1984_vm0, %v6960_v16, 0  ;;  %v9021_v21 = vsel %vm1984_vm0, %v7091_v17, 0  ;;  %v7259_v22 = vld [vmem:[%s9004_s14] sm:$0xff]   ;;  %v285_v23 = vld [vmem:[%s9004_s14 + $0x8] ss:$16 sps:$4 sm:$0xff]   ;;  %vm1210_vm13 = vmand %vm1058_vm7, %vm9042_vm10 }
  0x1a   : > { %11029 = vst [vmem:[#allocation3_spill] sm:$0xff] %v9021_v21  ;;  %vm9025_vm6 = vcmp.le.s32.totalorder %v756_v6, 16  ;;  %7650 = vmatpush3.bf16.msra.mxu1 %v1986_v20  ;;  %7914 = vmatpush3.bf16.msra.mxu0 %v9021_v21  ;;  %v7260_v25 = vunpack.c.l.bf16 %v7259_v22  ;;  %v7261_v26 = vunpack.c.h.bf16 %v7259_v22  ;;  %v9031_v27 = vld [vmem:[%s9004_s14 + $0x38] ss:$240 sps:$4 sm:$0xff]   ;;  %v361_v28 = vunpack.c.l.bf16 %v285_v23  ;;  %v1623_v29 = vld [vmem:[%s8980_s11] sm:$0xf]  ;;  %vm1059_vm9 = vmand %vm8989_vm2, %vm9010_vm5 }
  0x1b   : > { %vm9046_vm11 = vcmp.le.s32.totalorder %v832_v9, 16  ;;  %8758 = vmatprep.subr.msk.bf16.mxu1 %vm1984_vm0, %v1623_v29  ;;  %v7334_v32 = vld [vmem:[%s9004_s14 + $0x10] sm:$0xff]   ;;  %vm1060_vm12 = vmand %vm8993_vm3, %vm9025_vm6  ;;  %v365_v39 = vunpack.c.h.bf16 %v285_v23  ;;  %v758_v47 = vshra.s32 %v8971_v8, 5  ;;  %v759_v54 = vshra.s32 %v8975_v10, 5  ;;  %v7335_v3 = vld [vmem:[%s9004_s14 + $0x20] sm:$0xff]   ;;  %s6957_s16 = sshll.u32 %s9006_s15, 3 }
  0x1c   : > { %v7124_v33 = vld [vmem:[%s8980_s11 + $0x14] sm:$0xf]  ;;  %v442_v34 = vmul.f32 %v7260_v25, %v8983_v11  ;;  %v443_v35 = vmul.f32 %v7261_v26, %v8983_v11  ;;  %v444_v36 = vmul.f32 %v8983_v11, %v361_v28  ;;  %v7264_v37 = vunpack.c.l.bf16 %v7334_v32  ;;  %vm1364_vm14 = vmand %vm1060_vm12, %vm9046_vm11  ;;  %v9117_v10 = vld [vmem:[%s9004_s14 + $0x28] ss:$48 sps:$4 sm:$0xff]   ;;  %s10818_s24 = scalar_lea.vmem %s11000_s4, %s6957_s16 }
  0x1d   : > { %8763 = vmatprep.subr.msk.bf16.mxu0 %vm1984_vm0, %v7124_v33  ;;  %v7265_v38 = vunpack.c.h.bf16 %v7334_v32  ;;  %v448_v46 = vmul.f32 %v8983_v11, %v365_v39  ;;  %v760_v0 = vshra.s32 %v684_v40, 5  ;;  %v834_v2 = vand.u32 31, %v8971_v8 }
  0x1e   : > { %v525_v41 = vadd.f32 %v9015_v19, %v442_v34  ;;  %v526_v42 = vadd.f32 %v9015_v19, %v443_v35  ;;  %v527_v43 = vadd.f32 %v9015_v19, %v444_v36  ;;  %v446_v44 = vmul.f32 %v7264_v37, %v8983_v11 }
  0x1f   : > { %v447_v45 = vmul.f32 %v7265_v38, %v8983_v11  ;;  %v531_v53 = vadd.f32 %v9015_v19, %v448_v46  ;;  %v836_v4 = vand.u32 31, %v684_v40  ;;  %vm9092_vm15 = vcmp.ge.s32.totalorder %v758_v47, 1  ;;  %v7337_v38 = vld [vmem:[%s9004_s14 + $0x40] sm:$0xff]  }
  0x20   : > { %v601_v48 = vmax.f32 %v525_v41, 0.0  ;;  %v602_v49 = vmax.f32 %v526_v42, 0.0  ;;  %v603_v50 = vmax.f32 %v527_v43, 0.0  ;;  %v529_v51 = vadd.f32 %v9015_v19, %v446_v44 }
  0x21   : > { %v530_v52 = vadd.f32 %v9015_v19, %v447_v45  ;;  %v607_v63 = vmax.f32 %v531_v53, 0.0  ;;  %vm9096_vm1 = vcmp.ge.s32.totalorder %v759_v54, 1  ;;  %vm9100_vm2 = vcmp.le.s32.totalorder %v758_v47, 16  ;;  %v7336_v45 = vld [vmem:[%s9004_s14 + $0x30] sm:$0xff]  }
  0x22   : > { %v1438_v55 = vsel %vm1210_vm13, %v601_v48, 0.0  ;;  %v1439_v56 = vsel %vm1059_vm9, %v602_v49, 0.0  ;;  %v1440_v57 = vsel %vm1364_vm14, %v603_v50, 0.0  ;;  %v605_v58 = vmax.f32 %v529_v51, 0.0  ;;  %vm1062_vm6 = vmand %vm9092_vm15, %vm9100_vm2 }
  0x23   : > { %v1514_v59 = vpack.c.bf16 %v1439_v56, %v1438_v55  ;;  %v1515_v61 = vpack.c.bf16 %v11001_v60, %v1440_v57  ;;  %v606_v62 = vmax.f32 %v530_v52, 0.0  ;;  %vm9104_vm3 = vcmp.ge.s32.totalorder %v760_v0, 1 }
  0x24   : > { %vm987_vm4 = vcmp.le.s32.totalorder %v759_v54, 16  ;;  %vm9108_vm5 = vcmp.le.s32.totalorder %v760_v0, 16  ;;  %vm1138_vm7 = vcmp.ge.s32.totalorder %v834_v2, 1  ;;  %vm9121_vm10 = vcmp.le.s32.totalorder %v836_v4, 16 }
  0x25   : > { %1553 = vst.msk [vmem:[#allocation2] sm:$0xff] %vm1552_vm8, %v1514_v59  ;;  %1554 = vst.msk [vmem:[#allocation2 + $0x8] sm:$0xff] %vm1552_vm8, %v1515_v61  ;;  %v9126_v13 = vsel %vm1984_vm0, %v1623_v29, 0  ;;  %v7268_v14 = vunpack.c.l.bf16 %v7335_v3  ;;  %v7269_v15 = vunpack.c.h.bf16 %v7335_v3  ;;  %vm1627_vm11 = vsmask.f32 7424 }
  0x26   : > { %vm1063_vm9 = vmand %vm9096_vm1, %vm987_vm4  ;;  %v686_v17 = vadd.s32 64, %v8950_v1  ;;  %v687_v18 = vadd.s32 72, %v8950_v1  ;;  %v9135_v20 = vsel %vm1984_vm0, %v7124_v33, 0  ;;  %v369_v24 = vunpack.c.l.bf16 %v9117_v10 }
  0x27   : > { %vm1064_vm12 = vmand %vm9104_vm3, %vm9108_vm5  ;;  %v1443_v16 = vsel %vm1063_vm9, %v606_v62, 0.0  ;;  %v450_v22 = vmul.f32 %v7268_v14, %v8983_v11  ;;  %v451_v23 = vmul.f32 %v7269_v15, %v8983_v11  ;;  %v688_v25 = vadd.s32 80, %v8950_v1 }
  0x28   : > { %vm1214_vm13 = vmand %vm1062_vm6, %vm1138_vm7  ;;  %v762_v28 = vshra.s32 %v686_v17, 5  ;;  %v763_v29 = vshra.s32 %v687_v18, 5  ;;  %v838_v30 = vand.u32 31, %v686_v17  ;;  %v452_v50 = vmul.f32 %v8983_v11, %v369_v24 }
  0x29   : > { %vm1368_vm14 = vmand %vm1064_vm12, %vm9121_vm10  ;;  %v1442_v26 = vsel %vm1214_vm13, %v605_v58, 0.0  ;;  %v533_v33 = vadd.f32 %v9015_v19, %v450_v22  ;;  %v534_v34 = vadd.f32 %v9015_v19, %v451_v23  ;;  %v764_v51 = vshra.s32 %v688_v25, 5 }
  0x2a   : > { %v1444_v31 = vsel %vm1368_vm14, %v607_v63, 0.0  ;;  %v1516_v32 = vpack.c.bf16 %v1443_v16, %v1442_v26  ;;  %vm9146_vm15 = vcmp.ge.s32.totalorder %v762_v28, 1  ;;  %vm9150_vm1 = vcmp.ge.s32.totalorder %v763_v29, 1 }
  0x2b   : > { %v1517_v37 = vpack.c.bf16 %v11001_v60, %v1444_v31  ;;  %vm9154_vm2 = vcmp.le.s32.totalorder %v762_v28, 16  ;;  %v609_v46 = vmax.f32 %v533_v33, 0.0  ;;  %v610_v47 = vmax.f32 %v534_v34, 0.0 }
  0x2c   : > { %v1591_v35 = vld [vmem:[#allocation2] sm:$0xff]  ;;  %v1592_v36 = vld [vmem:[#allocation2 + $0x8] sm:$0xff]  ;;  %1555 = vst.msk [vmem:[#allocation2 + $0x10] sm:$0xff] %vm1552_vm8, %v1516_v32  ;;  %vm1066_vm3 = vmand %vm9146_vm15, %vm9154_vm2  ;;  %vm991_vm4 = vcmp.le.s32.totalorder %v763_v29, 16  ;;  %vm1142_vm5 = vcmp.ge.s32.totalorder %v838_v30, 1  ;;  %v840_v53 = vand.u32 31, %v688_v25  ;;  %v7272_v54 = vunpack.c.l.bf16 %v7336_v45 }
  0x2d   : > { %v1629_v41 = vshrl.u32 %v1591_v35, 16  ;;  %v1631_v42 = vshll.u32 %v1591_v35, 16  ;;  %v1636_v43 = vshll.u32 %v1592_v36, 16  ;;  %v1640_v44 = vshrl.u32 %v1592_v36, 16  ;;  %1556 = vst.msk [vmem:[#allocation2 + $0x18] sm:$0xff] %vm1552_vm8, %v1517_v37  ;;  %vm1067_vm6 = vmand %vm9150_vm1, %vm991_vm4 }
  0x2e   : > { %vm1218_vm7 = vmand %vm1066_vm3, %vm1142_vm5  ;;  %v1447_v52 = vsel %vm1067_vm6, %v610_v47, 0.0  ;;  %v7273_v55 = vunpack.c.h.bf16 %v7336_v45  ;;  %v535_v59 = vadd.f32 %v9015_v19, %v452_v50  ;;  %vm916_vm9 = vcmp.ge.s32.totalorder %v764_v51, 1 }
  0x2f   : > { %v1633_v48 = vrot.slane %v1631_v42, 1  ;;  %v1638_v49 = vrot.slane %v1636_v43, 1  ;;  %v1446_v58 = vsel %vm1218_vm7, %v609_v46, 0.0  ;;  %vm992_vm10 = vcmp.le.s32.totalorder %v764_v51, 16 }
  0x30   : > { %v1518_v61 = vpack.c.bf16 %v1447_v52, %v1446_v58  ;;  %vm1296_vm12 = vcmp.le.s32.totalorder %v840_v53, 16  ;;  %v611_v63 = vmax.f32 %v535_v59, 0.0  ;;  %vm1068_vm13 = vmand %vm916_vm9, %vm992_vm10  ;;  %v454_v0 = vmul.f32 %v7272_v54, %v8983_v11 }
  0x31   : > { %v1634_v56 = vor.u32 %v1633_v48, %v1629_v41  ;;  %v1642_v57 = vor.u32 %v1640_v44, %v1638_v49  ;;  %v455_v2 = vmul.f32 %v7273_v55, %v8983_v11  ;;  %vm1372_vm14 = vmand %vm1068_vm13, %vm1296_vm12  ;;  %v690_v4 = vadd.s32 96, %v8950_v1  ;;  %v9228_v55 = vld [vmem:[%s9004_s14 + $0x48] ss:$48 sps:$4 sm:$0xff]  }
  0x32   : > { %1557 = vst.msk [vmem:[#allocation2 + $0x20] sm:$0xff] %vm1552_vm8, %v1518_v61  ;;  %v691_v5 = vadd.s32 104, %v8950_v1  ;;  %v373_v6 = vunpack.c.l.bf16 %v9031_v27  ;;  %v692_v7 = vadd.s32 112, %v8950_v1  ;;  %v1448_v14 = vsel %vm1372_vm14, %v611_v63, 0.0  ;;  %v9234_v61 = vld [vmem:[%s8980_s11 + $0x18] sm:$0xf] }
  0x33   : > { %v1639_v62 = vsel %vm1627_vm11, %v1634_v56, %v1638_v49  ;;  %v3673_v3 = vld [vmem:[#allocation2 + $0x10] sm:$0xff]  ;;  %v537_v15 = vadd.f32 %v9015_v19, %v454_v0  ;;  %v1519_v18 = vpack.c.bf16 %v11001_v60, %v1448_v14  ;;  %v538_v22 = vadd.f32 %v9015_v19, %v455_v2 }
  0x34   : > { %7651 = vmatprep.mubr.msk.bf16.mxu1 %vm1552_vm8, %v1639_v62  ;;  %v9178_v8 = vld [vmem:[#allocation2 + $0x18] sm:$0xff]  ;;  %v3709_v9 = vshrl.u32 %v3673_v3, 16  ;;  %v3711_v12 = vshll.u32 %v3673_v3, 16  ;;  %v766_v27 = vshra.s32 %v690_v4, 5  ;;  %v767_v25 = vshra.s32 %v691_v5, 5 }
  0x35   : > { %v3716_v16 = vshll.u32 %v9178_v8, 16  ;;  %v3720_v17 = vshrl.u32 %v9178_v8, 16  ;;  %v613_v24 = vmax.f32 %v537_v15, 0.0  ;;  %1558 = vst.msk [vmem:[#allocation2 + $0x28] sm:$0xff] %vm1552_vm8, %v1519_v18  ;;  %v614_v28 = vmax.f32 %v538_v22, 0.0  ;;  %v7338_v15 = vld [vmem:[%s9004_s14 + $0x50] sm:$0xff]  }
  0x36   : > { %v3713_v23 = vrot.slane %v3711_v12, 1  ;;  %v842_v29 = vand.u32 31, %v690_v4  ;;  %v456_v30 = vmul.f32 %v8983_v11, %v373_v6  ;;  %vm9188_vm15 = vcmp.ge.s32.totalorder %v766_v27, 1 }
  0x37   : > { %v3718_v26 = vrot.slane %v3716_v16, 1  ;;  %vm9193_vm1 = vcmp.ge.s32.totalorder %v767_v25, 1  ;;  %vm9197_vm2 = vcmp.le.s32.totalorder %v766_v27, 16  ;;  %vm9201_vm3 = vcmp.le.s32.totalorder %v767_v25, 16 }
  0x38   : > { %v3714_v31 = vor.u32 %v3713_v23, %v3709_v9  ;;  %v1647_v32 = vsel %vm1627_vm11, %v1642_v57, %v3713_v23  ;;  %vm1070_vm4 = vmand %vm9188_vm15, %vm9197_vm2  ;;  %vm1146_vm5 = vcmp.ge.s32.totalorder %v842_v29, 1  ;;  %v539_v41 = vadd.f32 %v9015_v19, %v456_v30 }
  0x39   : > { %v3722_v34 = vor.u32 %v3720_v17, %v3718_v26  ;;  %7652 = vmatmul.mubr.msk.bf16.vlgmr.msra.gmra.mrb[0].mxu1 %vm1552_vm8, %v1647_v32  ;;  %v9208_v40 = vld [vmem:[#allocation2 + $0x20] sm:$0xff]  ;;  %vm1071_vm6 = vmand %vm9193_vm1, %vm9201_vm3  ;;  %v844_v44 = vand.u32 31, %v692_v7  ;;  %v7276_v47 = vunpack.c.l.bf16 %v7337_v38  ;;  %v7277_v48 = vunpack.c.h.bf16 %v7337_v38 }
  0x3a   : > { %v3719_v39 = vsel %vm1627_vm11, %v3714_v31, %v3718_v26  ;;  %7716 = vmatpush3.bf16.msra.mxu1 %v9126_v13  ;;  %v3724_v42 = vshll.u32 %v9208_v40, 16  ;;  %v3728_v43 = vshrl.u32 %v9208_v40, 16  ;;  %v768_v13 = vshra.s32 %v692_v7, 5  ;;  %vm1222_vm7 = vmand %vm1070_vm4, %vm1146_vm5 }
  0x3b   : > { %7915 = vmatprep.mubr.msk.bf16.mxu0 %vm1552_vm8, %v3719_v39  ;;  %7655 = vmatprep.mubr.msk.bf16.mxu1 %vm1552_vm8, %v3719_v39  ;;  %v1451_v45 = vsel %vm1071_vm6, %v614_v28, 0.0  ;;  %v615_v46 = vmax.f32 %v539_v41, 0.0  ;;  %v1450_v50 = vsel %vm1222_vm7, %v613_v24, 0.0  ;;  %vm1300_vm13 = vcmp.le.s32.totalorder %v844_v44, 16 }
  0x3c   : > { %v3726_v49 = vrot.slane %v3724_v42, 1  ;;  %vm920_vm9 = vcmp.ge.s32.totalorder %v768_v13, 1  ;;  %vm996_vm10 = vcmp.le.s32.totalorder %v768_v13, 16  ;;  %v9223_v51 = vld [vmem:[#allocation2 + $0x28] sm:$0xff]  ;;  %v1520_v52 = vpack.c.bf16 %v1451_v45, %v1450_v50 }
  0x3d   : > { %vm1072_vm12 = vmand %vm920_vm9, %vm996_vm10  ;;  %v458_v53 = vmul.f32 %v7276_v47, %v8983_v11  ;;  %v459_v54 = vmul.f32 %v7277_v48, %v8983_v11  ;;  %v3732_v58 = vshll.u32 %v9223_v51, 16  ;;  %v3736_v59 = vshrl.u32 %v9223_v51, 16 }
  0x3e   : > { %v3727_v56 = vsel %vm1627_vm11, %v3722_v34, %v3726_v49  ;;  %v3730_v57 = vor.u32 %v3728_v43, %v3726_v49  ;;  %vm1376_vm14 = vmand %vm1072_vm12, %vm1300_vm13  ;;  %1559 = vst.msk [vmem:[#allocation2 + $0x30] sm:$0xff] %vm1552_vm8, %v1520_v52  ;;  %v694_v2 = vadd.s32 128, %v8950_v1  ;;  %v695_v5 = vadd.s32 136, %v8950_v1 }
  0x3f   : > { %7916 = vmatmul.mubr.msk.bf16.vlgmr.msra.gmra.mrb[0].mxu0 %vm1552_vm8, %v3727_v56  ;;  %v1452_v62 = vsel %vm1376_vm14, %v615_v46, 0.0  ;;  %v541_v63 = vadd.f32 %v9015_v19, %v458_v53  ;;  %v542_v0 = vadd.f32 %v9015_v19, %v459_v54  ;;  %v3734_v3 = vrot.slane %v3732_v58, 1 }
  0x40   : > { %7980 = vmatpush3.bf16.msra.mxu0 %v9135_v20  ;;  %v1521_v4 = vpack.c.bf16 %v11001_v60, %v1452_v62  ;;  %v377_v6 = vunpack.c.l.bf16 %v9228_v55  ;;  %v770_v12 = vshra.s32 %v694_v2, 5  ;;  %v846_v14 = vand.u32 31, %v694_v2 }
  0x41   : > { %7656 = vmatmul.mubr.msk.bf16.gmra.mrb[4].mxu1 %vm1552_vm8, %v3727_v56  ;;  %v617_v7 = vmax.f32 %v541_v63, 0.0  ;;  %v618_v9 = vmax.f32 %v542_v0, 0.0  ;;  %8764 = vmatprep.subr.msk.bf16.mxu0 %vm1984_vm0, %v9234_v61  ;;  %v3735_v16 = vsel %vm1627_vm11, %v3730_v57, %v3734_v3  ;;  %v3738_v20 = vor.u32 %v3736_v59, %v3734_v3  ;;  %v7339_v63 = vld [vmem:[%s9004_s14 + $0x60] sm:$0xff]  }
  0x42   : > { %1560 = vst.msk [vmem:[#allocation2 + $0x38] sm:$0xff] %vm1552_vm8, %v1521_v4  ;;  %v771_v17 = vshra.s32 %v695_v5, 5  ;;  %v460_v18 = vmul.f32 %v8983_v11, %v377_v6  ;;  %7919 = vmatprep.mubr.msk.bf16.mxu0 %vm1552_vm8, %v3735_v16  ;;  %7659 = vmatprep.mubr.msk.bf16.mxu1 %vm1552_vm8, %v3735_v16  ;;  %vm9254_vm15 = vcmp.ge.s32.totalorder %v770_v12, 1  ;;  %vm9258_vm1 = vcmp.le.s32.totalorder %v770_v12, 16 }
  0x43   : > { %vm1150_vm2 = vcmp.ge.s32.totalorder %v846_v14, 1  ;;  %v696_v24 = vadd.s32 144, %v8950_v1  ;;  %vm1074_vm5 = vmand %vm9254_vm15, %vm9258_vm1  ;;  %v7280_v25 = vunpack.c.l.bf16 %v7338_v15  ;;  %v7281_v29 = vunpack.c.h.bf16 %v7338_v15 }
  0x44   : > { %vm923_vm3 = vcmp.ge.s32.totalorder %v771_v17, 1  ;;  %vm999_vm4 = vcmp.le.s32.totalorder %v771_v17, 16  ;;  %v543_v27 = vadd.f32 %v9015_v19, %v460_v18  ;;  %v698_v30 = vadd.s32 160, %v8950_v1  ;;  %vm1226_vm7 = vmand %vm1074_vm5, %vm1150_vm2 }
  0x45   : > { %vm1075_vm6 = vmand %vm923_vm3, %vm999_vm4  ;;  %v772_v26 = vshra.s32 %v696_v24, 5  ;;  %v848_v28 = vand.u32 31, %v696_v24  ;;  %v9269_v31 = vld [vmem:[#allocation2 + $0x30] sm:$0xff]  ;;  %v462_v34 = vmul.f32 %v7280_v25, %v8983_v11  ;;  %v699_v35 = vadd.s32 168, %v8950_v1 }
  0x46   : > { %v1455_v32 = vsel %vm1075_vm6, %v618_v9, 0.0  ;;  %v619_v33 = vmax.f32 %v543_v27, 0.0  ;;  %v3740_v36 = vshll.u32 %v9269_v31, 16  ;;  %v3744_v37 = vshrl.u32 %v9269_v31, 16  ;;  %v10197_v21 = vld [vmem:[#allocation2 + $0x30] sm:$0xff] }
  0x47   : > { %v1454_v38 = vsel %vm1226_vm7, %v617_v7, 0.0  ;;  %vm9275_vm9 = vcmp.ge.s32.totalorder %v772_v26, 1  ;;  %vm1000_vm10 = vcmp.le.s32.totalorder %v772_v26, 16  ;;  %vm1304_vm12 = vcmp.le.s32.totalorder %v848_v28, 16 }
  0x48   : > { %v1522_v41 = vpack.c.bf16 %v1455_v32, %v1454_v38  ;;  %v463_v42 = vmul.f32 %v7281_v29, %v8983_v11  ;;  %v3742_v43 = vrot.slane %v3740_v36, 1  ;;  %vm1076_vm13 = vmand %vm9275_vm9, %vm1000_vm10  ;;  %v545_v44 = vadd.f32 %v9015_v19, %v462_v34  ;;  %v9338_v36 = vld [vmem:[%s9004_s14 + $0x68] ss:$48 sps:$4 sm:$0xff]  }
  0x49   : > { %v9280_v13 = vld [vmem:[#allocation2 + $0x38] sm:$0xff]  ;;  %v774_v45 = vshra.s32 %v698_v30, 5  ;;  %v775_v46 = vshra.s32 %v699_v35, 5  ;;  %vm1380_vm14 = vmand %vm1076_vm13, %vm1304_vm12  ;;  %v850_v50 = vand.u32 31, %v698_v30  ;;  %v381_v6 = vunpack.c.h.bf16 %v9117_v10 }
  0x4a   : > { %v3748_v47 = vshll.u32 %v9280_v13, 16  ;;  %1561 = vst.msk [vmem:[#allocation2 + $0x40] sm:$0xff] %vm1552_vm8, %v1522_v41  ;;  %v3752_v48 = vshrl.u32 %v9280_v13, 16  ;;  %v546_v49 = vadd.f32 %v9015_v19, %v463_v42  ;;  %v3743_v52 = vsel %vm1627_vm11, %v3738_v20, %v3742_v43 }
  0x4b   : > { %v3746_v53 = vor.u32 %v3744_v37, %v3742_v43  ;;  %v1456_v54 = vsel %vm1380_vm14, %v619_v33, 0.0  ;;  %v621_v56 = vmax.f32 %v545_v44, 0.0  ;;  %7920 = vmatmul.mubr.msk.bf16.gmra.mrb[4].mxu0 %vm1552_vm8, %v3743_v52  ;;  %7660 = vmatmul.mubr.msk.bf16.gmra.mrb[8].mxu1 %vm1552_vm8, %v3743_v52  ;;  %vm9293_vm15 = vcmp.ge.s32.totalorder %v774_v45, 1 }
  0x4c   : > { %v3750_v57 = vrot.slane %v3748_v47, 1  ;;  %v1523_v58 = vpack.c.bf16 %v11001_v60, %v1456_v54  ;;  %v622_v59 = vmax.f32 %v546_v49, 0.0  ;;  %vm9298_vm1 = vcmp.ge.s32.totalorder %v775_v46, 1  ;;  %v7340_v47 = vld [vmem:[%s9004_s14 + $0x70] sm:$0xff]  }
  0x4d   : > { %vm9302_vm2 = vcmp.le.s32.totalorder %v774_v45, 16  ;;  %vm9306_vm3 = vcmp.le.s32.totalorder %v775_v46, 16  ;;  %vm1154_vm4 = vcmp.ge.s32.totalorder %v850_v50, 1  ;;  %v700_v7 = vadd.s32 176, %v8950_v1 }
  0x4e   : > { %v3751_v4 = vsel %vm1627_vm11, %v3746_v53, %v3750_v57  ;;  %v3754_v5 = vor.u32 %v3752_v48, %v3750_v57  ;;  %1562 = vst.msk [vmem:[#allocation2 + $0x48] sm:$0xff] %vm1552_vm8, %v1523_v58  ;;  %vm1078_vm5 = vmand %vm9293_vm15, %vm9302_vm2  ;;  %v7284_v9 = vunpack.c.l.bf16 %v7339_v63  ;;  %v7285_v12 = vunpack.c.h.bf16 %v7339_v63 }
  0x4f   : > { %7923 = vmatprep.mubr.msk.bf16.mxu0 %vm1552_vm8, %v3751_v4  ;;  %7663 = vmatprep.mubr.msk.bf16.mxu1 %vm1552_vm8, %v3751_v4  ;;  %vm1079_vm6 = vmand %vm9298_vm1, %vm9306_vm3  ;;  %v702_v14 = vadd.s32 192, %v8950_v1  ;;  %v703_v15 = vadd.s32 200, %v8950_v1  ;;  %v464_v10 = vmul.f32 %v8983_v11, %v381_v6  ;;  %v776_v20 = vshra.s32 %v700_v7, 5 }
  0x50   : > { %vm1230_vm7 = vmand %vm1078_vm5, %vm1154_vm4  ;;  %v1459_v16 = vsel %vm1079_vm6, %v622_v59, 0.0  ;;  %v852_v17 = vand.u32 31, %v700_v7  ;;  %v466_v23 = vmul.f32 %v7284_v9, %v8983_v11  ;;  %v467_v24 = vmul.f32 %v7285_v12, %v8983_v11 }
  0x51   : > { %v9327_v18 = vld [vmem:[#allocation2 + $0x40] sm:$0xff]  ;;  %v1458_v22 = vsel %vm1230_vm7, %v621_v56, 0.0  ;;  %v778_v27 = vshra.s32 %v702_v14, 5  ;;  %v547_v29 = vadd.f32 %v9015_v19, %v464_v10  ;;  %vm928_vm9 = vcmp.ge.s32.totalorder %v776_v20, 1 }
  0x52   : > { %v3756_v25 = vshll.u32 %v9327_v18, 16  ;;  %v3760_v26 = vshrl.u32 %v9327_v18, 16  ;;  %v1524_v28 = vpack.c.bf16 %v1459_v16, %v1458_v22  ;;  %vm1004_vm10 = vcmp.le.s32.totalorder %v776_v20, 16 }
  0x53   : > { %vm1308_vm12 = vcmp.le.s32.totalorder %v852_v17, 16  ;;  %v549_v30 = vadd.f32 %v9015_v19, %v466_v23  ;;  %v623_v33 = vmax.f32 %v547_v29, 0.0  ;;  %vm1080_vm13 = vmand %vm928_vm9, %vm1004_vm10  ;;  %v550_v34 = vadd.f32 %v9015_v19, %v467_v24 }
  0x54   : > { %v3758_v32 = vrot.slane %v3756_v25, 1  ;;  %1563 = vst.msk [vmem:[#allocation2 + $0x50] sm:$0xff] %vm1552_vm8, %v1524_v28  ;;  %v779_v35 = vshra.s32 %v703_v15, 5  ;;  %vm1384_vm14 = vmand %vm1080_vm13, %vm1308_vm12  ;;  %v854_v39 = vand.u32 31, %v702_v14  ;;  %vm9342_vm15 = vcmp.ge.s32.totalorder %v778_v27, 1 }
  0x55   : > { %v9340_v37 = vld [vmem:[#allocation2 + $0x48] sm:$0xff]  ;;  %v625_v38 = vmax.f32 %v549_v30, 0.0  ;;  %vm9346_vm1 = vcmp.le.s32.totalorder %v778_v27, 16  ;;  %v1460_v48 = vsel %vm1384_vm14, %v623_v33, 0.0  ;;  %v626_v49 = vmax.f32 %v550_v34, 0.0 }
  0x56   : > { %v3759_v43 = vsel %vm1627_vm11, %v3754_v5, %v3758_v32  ;;  %v3762_v44 = vor.u32 %v3760_v26, %v3758_v32  ;;  %v3764_v45 = vshll.u32 %v9340_v37, 16  ;;  %v3768_v46 = vshrl.u32 %v9340_v37, 16  ;;  %vm1082_vm2 = vmand %vm9342_vm15, %vm9346_vm1  ;;  %v7025_v30 = vld [vmem:[%s8980_s11 + $0x8] sm:$0xf] }
  0x57   : > { %7924 = vmatmul.mubr.msk.bf16.gmra.mrb[8].mxu0 %vm1552_vm8, %v3759_v43  ;;  %7664 = vmatmul.mubr.msk.bf16.gmra.mrb[12].mxu1 %vm1552_vm8, %v3759_v43  ;;  %vm931_vm3 = vcmp.ge.s32.totalorder %v779_v35, 1  ;;  %vm1007_vm4 = vcmp.le.s32.totalorder %v779_v35, 16  ;;  %v1525_v52 = vpack.c.bf16 %v11001_v60, %v1460_v48  ;;  %vm1158_vm6 = vcmp.ge.s32.totalorder %v854_v39, 1 }
  0x58   : > { %v3766_v50 = vrot.slane %v3764_v45, 1  ;;  %vm1083_vm5 = vmand %vm931_vm3, %vm1007_vm4  ;;  %v385_v53 = vunpack.c.l.bf16 %v9338_v36  ;;  %v704_v56 = vadd.s32 208, %v8950_v1  ;;  %v7288_v57 = vunpack.c.l.bf16 %v7340_v47  ;;  %8759 = vmatprep.subr.msk.bf16.mxu1 %vm1984_vm0, %v7025_v30 }
  0x59   : > { %vm1234_vm7 = vmand %vm1082_vm2, %vm1158_vm6  ;;  %v1463_v54 = vsel %vm1083_vm5, %v626_v49, 0.0  ;;  %v7289_v58 = vunpack.c.h.bf16 %v7340_v47  ;;  %1564 = vst.msk [vmem:[#allocation2 + $0x58] sm:$0xff] %vm1552_vm8, %v1525_v52  ;;  %v706_v17 = vadd.s32 224, %v8950_v1  ;;  %v707_v23 = vadd.s32 232, %v8950_v1  ;;  %v7341_v52 = vld [vmem:[%s9004_s14 + $0x80] sm:$0xff]  }
  0x5a   : > { %v3767_v59 = vsel %vm1627_vm11, %v3762_v44, %v3766_v50  ;;  %v3770_v62 = vor.u32 %v3768_v46, %v3766_v50  ;;  %v1462_v63 = vsel %vm1234_vm7, %v625_v38, 0.0  ;;  %v468_v0 = vmul.f32 %v8983_v11, %v385_v53 }
  0x5b   : > { %7927 = vmatprep.mubr.msk.bf16.mxu0 %vm1552_vm8, %v3767_v59  ;;  %v9367_v2 = vld [vmem:[#allocation2 + $0x50] sm:$0xff]  ;;  %7667 = vmatprep.mubr.msk.bf16.mxu1 %vm1552_vm8, %v3767_v59  ;;  %v1526_v3 = vpack.c.bf16 %v1463_v54, %v1462_v63  ;;  %v780_v4 = vshra.s32 %v704_v56, 5  ;;  %v856_v5 = vand.u32 31, %v704_v56  ;;  %v470_v6 = vmul.f32 %v7288_v57, %v8983_v11 }
  0x5c   : > { %v3772_v7 = vshll.u32 %v9367_v2, 16  ;;  %v3776_v9 = vshrl.u32 %v9367_v2, 16  ;;  %v551_v12 = vadd.f32 %v9015_v19, %v468_v0  ;;  %v471_v14 = vmul.f32 %v7289_v58, %v8983_v11 }
  0x5d   : > { %1565 = vst.msk [vmem:[#allocation2 + $0x60] sm:$0xff] %vm1552_vm8, %v1526_v3  ;;  %vm932_vm9 = vcmp.ge.s32.totalorder %v780_v4, 1  ;;  %vm1008_vm10 = vcmp.le.s32.totalorder %v780_v4, 16  ;;  %vm1312_vm12 = vcmp.le.s32.totalorder %v856_v5, 16  ;;  %v553_v15 = vadd.f32 %v9015_v19, %v470_v6 }
  0x5e   : > { %v3774_v16 = vrot.slane %v3772_v7, 1  ;;  %v627_v10 = vmax.f32 %v551_v12, 0.0  ;;  %vm1084_vm13 = vmand %vm932_vm9, %vm1008_vm10  ;;  %v554_v20 = vadd.f32 %v9015_v19, %v471_v14  ;;  %v389_v24 = vunpack.c.h.bf16 %v9228_v55 }
  0x5f   : > { %vm1388_vm14 = vmand %vm1084_vm13, %vm1312_vm12  ;;  %v629_v22 = vmax.f32 %v553_v15, 0.0  ;;  %v708_v27 = vadd.s32 240, %v8950_v1  ;;  %v782_v34 = vshra.s32 %v706_v17, 5  ;;  %v783_v35 = vshra.s32 %v707_v23, 5 }
  0x60   : > { %v3775_v25 = vsel %vm1627_vm11, %v3770_v62, %v3774_v16  ;;  %v3778_v26 = vor.u32 %v3776_v9, %v3774_v16  ;;  %v1464_v28 = vsel %vm1388_vm14, %v627_v10, 0.0  ;;  %v630_v29 = vmax.f32 %v554_v20, 0.0  ;;  %v9385_v32 = vld [vmem:[#allocation2 + $0x58] sm:$0xff] }
  0x61   : > { %7928 = vmatmul.mubr.msk.bf16.gmra.mrb[12].mxu0 %vm1552_vm8, %v3775_v25  ;;  %7668 = vmatmul.mubr.msk.bf16.gmra.mrb[16].mxu1 %vm1552_vm8, %v3775_v25  ;;  %v1527_v33 = vpack.c.bf16 %v11001_v60, %v1464_v28  ;;  %v858_v38 = vand.u32 31, %v706_v17  ;;  %v3780_v55 = vshll.u32 %v9385_v32, 16  ;;  %v3784_v39 = vshrl.u32 %v9385_v32, 16  ;;  %v9454_v28 = vld [vmem:[%s9004_s14 + $0x88] ss:$48 sps:$4 sm:$0xff]  }
  0x62   : > { %v472_v41 = vmul.f32 %v8983_v11, %v389_v24  ;;  %v784_v42 = vshra.s32 %v708_v27, 5  ;;  %vm9394_vm15 = vcmp.ge.s32.totalorder %v782_v34, 1  ;;  %vm9398_vm1 = vcmp.ge.s32.totalorder %v783_v35, 1 }
  0x63   : > { %1566 = vst.msk [vmem:[#allocation2 + $0x68] sm:$0xff] %vm1552_vm8, %v1527_v33  ;;  %vm9402_vm2 = vcmp.le.s32.totalorder %v782_v34, 16  ;;  %vm9406_vm3 = vcmp.le.s32.totalorder %v783_v35, 16  ;;  %v3782_v47 = vrot.slane %v3780_v55, 1  ;;  %vm1162_vm5 = vcmp.ge.s32.totalorder %v858_v38, 1 }
  0x64   : > { %v9410_v48 = vld [vmem:[#allocation2 + $0x60] sm:$0xff]  ;;  %vm1086_vm4 = vmand %vm9394_vm15, %vm9402_vm2  ;;  %v555_v49 = vadd.f32 %v9015_v19, %v472_v41  ;;  %v860_v50 = vand.u32 31, %v708_v27  ;;  %vm9424_vm7 = vcmp.ge.s32.totalorder %v784_v42, 1  ;;  %vm9428_vm9 = vcmp.le.s32.totalorder %v784_v42, 16 }
  0x65   : > { %v3788_v53 = vshll.u32 %v9410_v48, 16  ;;  %v3792_v54 = vshrl.u32 %v9410_v48, 16  ;;  %vm1087_vm6 = vmand %vm9398_vm1, %vm9406_vm3  ;;  %v3783_v58 = vsel %vm1627_vm11, %v3778_v26, %v3782_v47  ;;  %v3786_v59 = vor.u32 %v3784_v39, %v3782_v47 }
  0x66   : > { %vm1238_vm10 = vmand %vm1086_vm4, %vm1162_vm5  ;;  %v1467_v62 = vsel %vm1087_vm6, %v630_v29, 0.0  ;;  %v631_v63 = vmax.f32 %v555_v49, 0.0  ;;  %7931 = vmatprep.mubr.msk.bf16.mxu0 %vm1552_vm8, %v3783_v58  ;;  %7671 = vmatprep.mubr.msk.bf16.mxu1 %vm1552_vm8, %v3783_v58  ;;  %vm1316_vm13 = vcmp.le.s32.totalorder %v860_v50, 16  ;;  %v7292_v4 = vunpack.c.l.bf16 %v7341_v52  ;;  %v7342_v29 = vld [vmem:[%s9004_s14 + $0x90] sm:$0xff]  }
  0x67   : > { %v3790_v0 = vrot.slane %v3788_v53, 1  ;;  %v1466_v3 = vsel %vm1238_vm10, %v629_v22, 0.0  ;;  %vm1088_vm12 = vmand %vm9424_vm7, %vm9428_vm9  ;;  %v7293_v6 = vunpack.c.h.bf16 %v7341_v52  ;;  %v710_v7 = vadd.s32 256, %v8950_v1 }
  0x68   : > { %v1528_v5 = vpack.c.bf16 %v1467_v62, %v1466_v3  ;;  %vm1392_vm14 = vmand %vm1088_vm12, %vm1316_vm13  ;;  %v711_v9 = vadd.s32 264, %v8950_v1  ;;  %v474_v16 = vmul.f32 %v7292_v4, %v8983_v11  ;;  %v393_v41 = vunpack.c.l.bf16 %v9454_v28 }
  0x69   : > { %v3791_v12 = vsel %vm1627_vm11, %v3786_v59, %v3790_v0  ;;  %v3794_v14 = vor.u32 %v3792_v54, %v3790_v0  ;;  %v1468_v15 = vsel %vm1392_vm14, %v631_v63, 0.0  ;;  %v475_v17 = vmul.f32 %v7293_v6, %v8983_v11 }
  0x6a   : > { %7932 = vmatmul.mubr.msk.bf16.gmra.mrb[16].mxu0 %vm1552_vm8, %v3791_v12  ;;  %v9444_v10 = vld [vmem:[#allocation2 + $0x68] sm:$0xff]  ;;  %7672 = vmatmul.mubr.msk.bf16.gmra.mrb[20].mxu1 %vm1552_vm8, %v3791_v12  ;;  %1567 = vst.msk [vmem:[#allocation2 + $0x70] sm:$0xff] %vm1552_vm8, %v1528_v5  ;;  %v1529_v20 = vpack.c.bf16 %v11001_v60, %v1468_v15  ;;  %v786_v22 = vshra.s32 %v710_v7, 5  ;;  %v787_v23 = vshra.s32 %v711_v9, 5  ;;  %v557_v25 = vadd.f32 %v9015_v19, %v474_v16 }
  0x6b   : > { %v3796_v24 = vshll.u32 %v9444_v10, 16  ;;  %v3800_v27 = vshrl.u32 %v9444_v10, 16  ;;  %v862_v26 = vand.u32 31, %v710_v7  ;;  %v558_v30 = vadd.f32 %v9015_v19, %v475_v17 }
  0x6c   : > { %1568 = vst.msk [vmem:[#allocation2 + $0x78] sm:$0xff] %vm1552_vm8, %v1529_v20  ;;  %vm9459_vm15 = vcmp.ge.s32.totalorder %v786_v22, 1  ;;  %vm9463_vm1 = vcmp.ge.s32.totalorder %v787_v23, 1  ;;  %vm1014_vm2 = vcmp.le.s32.totalorder %v786_v22, 16  ;;  %v633_v38 = vmax.f32 %v557_v25, 0.0 }
  0x6d   : > { %v3798_v35 = vrot.slane %v3796_v24, 1  ;;  %vm9467_vm3 = vcmp.le.s32.totalorder %v787_v23, 16  ;;  %vm1090_vm4 = vmand %vm9459_vm15, %vm1014_vm2  ;;  %vm1166_vm5 = vcmp.ge.s32.totalorder %v862_v26, 1  ;;  %v634_v39 = vmax.f32 %v558_v30, 0.0  ;;  %v4420_v20 = vld [vmem:[#allocation2 + $0x10] sm:$0xfe] }
  0x6e   : > { %vm1091_vm6 = vmand %vm9463_vm1, %vm9467_vm3  ;;  %v712_v42 = vadd.s32 272, %v8950_v1  ;;  %v7296_v43 = vunpack.c.l.bf16 %v7342_v29  ;;  %v7297_v46 = vunpack.c.h.bf16 %v7342_v29  ;;  %v714_v47 = vadd.s32 288, %v8950_v1 }
  0x6f   : > { %v3799_v44 = vsel %vm1627_vm11, %v3794_v14, %v3798_v35  ;;  %v3802_v45 = vor.u32 %v3800_v27, %v3798_v35  ;;  %vm1242_vm7 = vmand %vm1090_vm4, %vm1166_vm5  ;;  %v1471_v50 = vsel %vm1091_vm6, %v634_v39, 0.0  ;;  %v476_v52 = vmul.f32 %v8983_v11, %v393_v41 }
  0x70   : > { %7935 = vmatprep.mubr.msk.bf16.mxu0 %vm1552_vm8, %v3799_v44  ;;  %7675 = vmatprep.mubr.msk.bf16.mxu1 %vm1552_vm8, %v3799_v44  ;;  %v1470_v49 = vsel %vm1242_vm7, %v633_v38, 0.0  ;;  %v788_v53 = vshra.s32 %v712_v42, 5  ;;  %vm2669_vm9 = vcmask 1046528   ;;  %v864_v57 = vand.u32 31, %v712_v42 }
  0x71   : > { %v9484_v54 = vld [vmem:[#allocation2 + $0x70] sm:$0xff]  ;;  %v1530_v56 = vpack.c.bf16 %v1471_v50, %v1470_v49  ;;  %v478_v58 = vmul.f32 %v7296_v43, %v8983_v11  ;;  %v479_v59 = vmul.f32 %v7297_v46, %v8983_v11  ;;  %v559_v0 = vadd.f32 %v9015_v19, %v476_v52  ;;  %v7343_v46 = vld [vmem:[%s9004_s14 + $0xa0] sm:$0xff]  }
  0x72   : > { %v3804_v62 = vshll.u32 %v9484_v54, 16  ;;  %v3808_v63 = vshrl.u32 %v9484_v54, 16  ;;  %vm940_vm10 = vcmp.ge.s32.totalorder %v788_v53, 1  ;;  %vm1016_vm12 = vcmp.le.s32.totalorder %v788_v53, 16 }
  0x73   : > { %v9491_v3 = vld [vmem:[#allocation2 + $0x78] sm:$0xff]  ;;  %1569 = vst.msk [vmem:[#allocation2 + $0x80] sm:$0xff] %vm1552_vm8, %v1530_v56  ;;  %vm1320_vm13 = vcmp.le.s32.totalorder %v864_v57, 16  ;;  %v561_v4 = vadd.f32 %v9015_v19, %v478_v58  ;;  %v562_v5 = vadd.f32 %v9015_v19, %v479_v59  ;;  %v635_v9 = vmax.f32 %v559_v0, 0.0  ;;  %vm1092_vm14 = vmand %vm940_vm10, %vm1016_vm12  ;;  %v9544_v57 = vld [vmem:[%s8966_s29] ss:$0 sm:$0xff] }
  0x74   : > { %v3806_v6 = vrot.slane %v3804_v62, 1  ;;  %v3812_v11 = vshll.u32 %v9491_v3, 16  ;;  %v3816_v7 = vshrl.u32 %v9491_v3, 16  ;;  %vm1396_vm15 = vmand %vm1092_vm14, %vm1320_vm13  ;;  %v715_v15 = vadd.s32 296, %v8950_v1 }
  0x75   : > { %v637_v12 = vmax.f32 %v561_v4, 0.0  ;;  %v638_v14 = vmax.f32 %v562_v5, 0.0  ;;  %v790_v16 = vshra.s32 %v714_v47, 5  ;;  %v1472_v24 = vsel %vm1396_vm15, %v635_v9, 0.0 }
  0x76   : > { %v3807_v17 = vsel %vm1627_vm11, %v3802_v45, %v3806_v6  ;;  %v3810_v22 = vor.u32 %v3808_v63, %v3806_v6  ;;  %v3814_v23 = vrot.slane %v3812_v11, 1  ;;  %v1531_v19 = vpack.c.bf16 %v11001_v60, %v1472_v24 }
  0x77   : > { %7936 = vmatmul.mubr.msk.bf16.gmra.mrb[20].mxu0 %vm1552_vm8, %v3807_v17  ;;  %7676 = vmatmul.mubr.msk.bf16.gmra.mrb[24].mxu1 %vm1552_vm8, %v3807_v17  ;;  %v791_v27 = vshra.s32 %v715_v15, 5  ;;  %v866_v25 = vand.u32 31, %v714_v47  ;;  %vm9503_vm1 = vcmp.ge.s32.totalorder %v790_v16, 1  ;;  %vm9508_vm2 = vcmp.le.s32.totalorder %v790_v16, 16 }
  0x78   : > { %v3815_v29 = vsel %vm1627_vm11, %v3810_v22, %v3814_v23  ;;  %v3818_v30 = vor.u32 %v3816_v7, %v3814_v23  ;;  %v4456_v34 = vrot.slane %v4420_v20, 1  ;;  %1570 = vst.msk [vmem:[#allocation2 + $0x88] sm:$0xff] %vm1552_vm8, %v1531_v19  ;;  %vm1094_vm5 = vmand %vm9503_vm1, %vm9508_vm2  ;;  %v4457_v35 = vrot.slane %v9178_v8, 1 }
  0x79   : > { %7939 = vmatprep.mubr.msk.bf16.mxu0 %vm1552_vm8, %v3815_v29  ;;  %7679 = vmatprep.mubr.msk.bf16.mxu1 %vm1552_vm8, %v3815_v29  ;;  %vm943_vm3 = vcmp.ge.s32.totalorder %v791_v27, 1  ;;  %vm1019_vm4 = vcmp.le.s32.totalorder %v791_v27, 16  ;;  %vm1170_vm6 = vcmp.ge.s32.totalorder %v866_v25, 1  ;;  %v4459_v55 = vrot.slane %v9208_v40, 1  ;;  %v9566_v27 = vld [vmem:[%s9004_s14 + $0xa8] ss:$48 sps:$4 sm:$0xff]  }
  0x7a   : > { %v9520_v38 = vld [vmem:[#allocation2 + $0x80] sm:$0xff]  ;;  %vm1095_vm7 = vmand %vm943_vm3, %vm1019_vm4  ;;  %v9525_v39 = vsel %vm1984_vm0, %v9234_v61, 0  ;;  %v397_v41 = vunpack.c.h.bf16 %v9338_v36  ;;  %v716_v42 = vadd.s32 304, %v8950_v1  ;;  %v9532_v45 = vsel %vm2669_vm9, %v4456_v34, %v4457_v35 }
  0x7b   : > { %v3820_v43 = vshll.u32 %v9520_v38, 16  ;;  %v3824_v44 = vshrl.u32 %v9520_v38, 16  ;;  %vm1246_vm10 = vmand %vm1094_vm5, %vm1170_vm6  ;;  %v1475_v8 = vsel %vm1095_vm7, %v638_v14, 0.0  ;;  %v9536_v47 = vsel %vm2669_vm9, %v4457_v35, %v4459_v55  ;;  %v9539_v61 = vld [vmem:[%s8957_s25] ss:$0 sm:$0xff] }
  0x7c   : > { %v1474_v40 = vsel %vm1246_vm10, %v637_v12, 0.0  ;;  %v480_v36 = vmul.f32 %v9539_v61, %v397_v41  ;;  %v792_v49 = vshra.s32 %v716_v42, 5  ;;  %v868_v53 = vand.u32 31, %v716_v42 }
  0x7d   : > { %v3822_v50 = vrot.slane %v3820_v43, 1  ;;  %v1532_v52 = vpack.c.bf16 %v1475_v8, %v1474_v40  ;;  %v4461_v56 = vrot.slane %v9223_v51, 1  ;;  %v7300_v59 = vunpack.c.l.bf16 %v7343_v46 }
  0x7e   : > { %v563_v58 = vadd.f32 %v9544_v57, %v480_v36  ;;  %vm944_vm12 = vcmp.ge.s32.totalorder %v792_v49, 1  ;;  %vm1020_vm13 = vcmp.le.s32.totalorder %v792_v49, 16  ;;  %vm1324_vm15 = vcmp.le.s32.totalorder %v868_v53, 16 }
  0x7f   : > { %v3823_v62 = vsel %vm1627_vm11, %v3818_v30, %v3822_v50  ;;  %v3826_v63 = vor.u32 %v3824_v44, %v3822_v50  ;;  %1571 = vst.msk [vmem:[#allocation2 + $0x90] sm:$0xff] %vm1552_vm8, %v1532_v52  ;;  %vm1096_vm14 = vmand %vm944_vm12, %vm1020_vm13  ;;  %v9550_v0 = vsel %vm2669_vm9, %v4459_v55, %v4461_v56  ;;  %v9553_v51 = vld [vmem:[#allocation2 + $0x88] sm:$0xff]  ;;  %v7301_v5 = vunpack.c.h.bf16 %v7343_v46  ;;  %v7344_v55 = vld [vmem:[%s9004_s14 + $0xb0] sm:$0xff]  }
  0x80   : > { %7940 = vmatmul.mubr.msk.bf16.gmra.mrb[24].mxu0 %vm1552_vm8, %v3823_v62  ;;  %7680 = vmatmul.mubr.msk.bf16.gmra.mrb[28].mxu1 %vm1552_vm8, %v3823_v62  ;;  %v639_v4 = vmax.f32 %v563_v58, 0.0  ;;  %vm1400_vm1 = vmand %vm1096_vm14, %vm1324_vm15  ;;  %v482_v6 = vmul.f32 %v9539_v61, %v7300_v59  ;;  %v718_v11 = vadd.s32 320, %v8950_v1  ;;  %v3828_v7 = vshll.u32 %v9553_v51, 16 }
  0x81   : > { %v3832_v9 = vshrl.u32 %v9553_v51, 16  ;;  %v719_v12 = vadd.s32 328, %v8950_v1  ;;  %v4463_v14 = vrot.slane %v9269_v31, 1  ;;  %v483_v16 = vmul.f32 %v9539_v61, %v7301_v5 }
  0x82   : > { %v1476_v15 = vsel %vm1400_vm1, %v639_v4, 0.0  ;;  %v565_v20 = vadd.f32 %v9544_v57, %v482_v6  ;;  %v794_v17 = vshra.s32 %v718_v11, 5  ;;  %v3830_v22 = vrot.slane %v3828_v7, 1 }
  0x83   : > { %v1533_v23 = vpack.c.bf16 %v11001_v60, %v1476_v15  ;;  %v795_v24 = vshra.s32 %v719_v12, 5  ;;  %v870_v19 = vand.u32 31, %v718_v11  ;;  %v566_v25 = vadd.f32 %v9544_v57, %v483_v16 }
  0x84   : > { %v641_v26 = vmax.f32 %v565_v20, 0.0  ;;  %vm9569_vm2 = vcmp.ge.s32.totalorder %v794_v17, 1  ;;  %vm9573_vm3 = vcmp.le.s32.totalorder %v794_v17, 16  ;;  %v3831_v30 = vsel %vm1627_vm11, %v3826_v63, %v3830_v22 }
  0x85   : > { %v3834_v33 = vor.u32 %v3832_v9, %v3830_v22  ;;  %1572 = vst.msk [vmem:[#allocation2 + $0x98] sm:$0xff] %vm1552_vm8, %v1533_v23  ;;  %vm9579_vm4 = vcmp.ge.s32.totalorder %v795_v24, 1  ;;  %vm9583_vm5 = vcmp.le.s32.totalorder %v795_v24, 16  ;;  %vm1098_vm6 = vmand %vm9569_vm2, %vm9573_vm3  ;;  %7943 = vmatprep.mubr.msk.bf16.mxu0 %vm1552_vm8, %v3831_v30  ;;  %7683 = vmatprep.mubr.msk.bf16.mxu1 %vm1552_vm8, %v3831_v30  ;;  %v642_v42 = vmax.f32 %v566_v25, 0.0 }
  0x86   : > { %v9593_v41 = vld [vmem:[#allocation2 + $0x90] sm:$0xff]  ;;  %vm1099_vm7 = vmand %vm9579_vm4, %vm9583_vm5  ;;  %vm1174_vm10 = vcmp.ge.s32.totalorder %v870_v19, 1  ;;  %v9601_v43 = vsel %vm2669_vm9, %v4461_v56, %v4463_v14  ;;  %v401_v44 = vunpack.c.l.bf16 %v9566_v27  ;;  %v720_v40 = vadd.s32 336, %v8950_v1 }
  0x87   : > { %v3836_v8 = vshll.u32 %v9593_v41, 16  ;;  %v1776_v46 = vshrl.u32 %v9593_v41, 16  ;;  %vm1250_vm12 = vmand %vm1098_vm6, %vm1174_vm10  ;;  %v4465_v36 = vrot.slane %v9280_v13, 1  ;;  %v1479_v50 = vsel %vm1099_vm7, %v642_v42, 0.0 }
  0x88   : > { %v1478_v49 = vsel %vm1250_vm12, %v641_v26, 0.0  ;;  %v484_v52 = vmul.f32 %v9539_v61, %v401_v44  ;;  %v7304_v53 = vunpack.c.l.bf16 %v7344_v55  ;;  %v796_v59 = vshra.s32 %v720_v40, 5  ;;  %v7345_v44 = vld [vmem:[%s9004_s14 + $0xc0] sm:$0xff]  }
  0x89   : > { %v9609_v58 = vrot.slane %v3836_v8, 1  ;;  %v1534_v56 = vpack.c.bf16 %v1479_v50, %v1478_v49  ;;  %v872_v62 = vand.u32 31, %v720_v40  ;;  %v9613_v4 = vsel %vm2669_vm9, %v4463_v14, %v4465_v36 }
  0x8a   : > { %v567_v63 = vadd.f32 %v9544_v57, %v484_v52  ;;  %v7305_v5 = vunpack.c.h.bf16 %v7344_v55  ;;  %v486_v6 = vmul.f32 %v9539_v61, %v7304_v53  ;;  %vm948_vm13 = vcmp.ge.s32.totalorder %v796_v59, 1 }
  0x8b   : > { %11110 = vst [vmem:[#allocation4_spill] sm:$0xff] %v9609_v58  ;;  %v3839_v13 = vsel %vm1627_vm11, %v3834_v33, %v9609_v58  ;;  %v1778_v11 = vor.u32 %v9609_v58, %v1776_v46  ;;  %1573 = vst.msk [vmem:[#allocation2 + $0xa0] sm:$0xff] %vm1552_vm8, %v1534_v56  ;;  %vm1024_vm14 = vcmp.le.s32.totalorder %v796_v59, 16  ;;  %vm1328_vm1 = vcmp.le.s32.totalorder %v872_v62, 16 }
  0x8c   : > { %7944 = vmatmul.mubr.msk.bf16.gmra.mrb[28].mxu0 %vm1552_vm8, %v3839_v13  ;;  %7684 = vmatmul.mubr.msk.bf16.gmra.mrb[32].mxu1 %vm1552_vm8, %v3839_v13  ;;  %v9622_v7 = vld [vmem:[#allocation2 + $0x98] sm:$0xff]  ;;  %v643_v9 = vmax.f32 %v567_v63, 0.0  ;;  %vm1100_vm15 = vmand %vm948_vm13, %vm1024_vm14  ;;  %v487_v12 = vmul.f32 %v9539_v61, %v7305_v5  ;;  %v569_v14 = vadd.f32 %v9544_v57, %v486_v6  ;;  %v722_v20 = vadd.s32 352, %v8950_v1 }
  0x8d   : > { %7981 = vmatprep.mubr.msk.bf16.mxu0 %vm1552_vm8, %v9532_v45  ;;  %v1780_v15 = vshll.u32 %v9622_v7, 16  ;;  %v1784_v16 = vshrl.u32 %v9622_v7, 16  ;;  %vm1404_vm2 = vmand %vm1100_vm15, %vm1328_vm1  ;;  %v723_v17 = vadd.s32 360, %v8950_v1  ;;  %v4467_v19 = vrot.slane %v9327_v18, 1 }
  0x8e   : > { %v1480_v22 = vsel %vm1404_vm2, %v643_v9, 0.0  ;;  %v570_v23 = vadd.f32 %v9544_v57, %v487_v12  ;;  %v645_v24 = vmax.f32 %v569_v14, 0.0  ;;  %v798_v45 = vshra.s32 %v722_v20, 5 }
  0x8f   : > { %v1782_v25 = vrot.slane %v1780_v15, 1  ;;  %v1535_v26 = vpack.c.bf16 %v11001_v60, %v1480_v22  ;;  %v799_v29 = vshra.s32 %v723_v17, 5  ;;  %v874_v30 = vand.u32 31, %v722_v20 }
  0x90   : > { %v646_v31 = vmax.f32 %v570_v23, 0.0  ;;  %v9636_v33 = vsel %vm2669_vm9, %v4465_v36, %v4467_v19  ;;  %v405_v34 = vunpack.c.h.bf16 %v9454_v28  ;;  %vm9641_vm3 = vcmp.ge.s32.totalorder %v798_v45, 1 }
  0x91   : > { %v1783_v35 = vsel %vm1627_vm11, %v1778_v11, %v1782_v25  ;;  %v1786_v55 = vor.u32 %v1784_v16, %v1782_v25  ;;  %1574 = vst.msk [vmem:[#allocation2 + $0xa8] sm:$0xff] %vm1552_vm8, %v1535_v26  ;;  %vm9645_vm4 = vcmp.ge.s32.totalorder %v799_v29, 1  ;;  %vm9653_vm5 = vcmp.le.s32.totalorder %v798_v45, 16 }
  0x92   : > { %7687 = vmatprep.mubr.msk.bf16.mxu1 %vm1552_vm8, %v1783_v35  ;;  %v9651_v8 = vld [vmem:[#allocation2 + $0xa0] sm:$0xff]  ;;  %vm9657_vm6 = vcmp.le.s32.totalorder %v799_v29, 16  ;;  %vm9661_vm7 = vcmp.ge.s32.totalorder %v874_v30, 1  ;;  %v488_v36 = vmul.f32 %v9539_v61, %v405_v34  ;;  %vm1102_vm10 = vmand %vm9641_vm3, %vm9653_vm5  ;;  %v724_v52 = vadd.s32 368, %v8950_v1  ;;  %v9715_v35 = vld [vmem:[%s9004_s14 + $0xc8] ss:$48 sps:$4 sm:$0xff]  }
  0x93   : > { %v1788_v49 = vshll.u32 %v9651_v8, 16  ;;  %v1792_v50 = vshrl.u32 %v9651_v8, 16  ;;  %v9674_v53 = vrot.slane %v9340_v37, 1  ;;  %vm1103_vm12 = vmand %vm9645_vm4, %vm9657_vm6  ;;  %v7308_v59 = vunpack.c.l.bf16 %v7345_v44 }
  0x94   : > { %7982 = vmatmul.mubr.msk.bf16.vlgmr.msra.gmra.mrb[0].mxu0 %vm1552_vm8, %v9536_v47  ;;  %v571_v56 = vadd.f32 %v9544_v57, %v488_v36  ;;  %v7309_v62 = vunpack.c.h.bf16 %v7345_v44  ;;  %v726_v63 = vadd.s32 384, %v8950_v1  ;;  %vm1254_vm13 = vmand %vm1102_vm10, %vm9661_vm7  ;;  %v1483_v47 = vsel %vm1103_vm12, %v646_v31, 0.0  ;;  %v7346_v44 = vld [vmem:[%s9004_s14 + $0xd0] sm:$0xff]  }
  0x95   : > { %8046 = vmatpush3.bf16.msra.mxu0 %v9525_v39  ;;  %7985 = vmatprep.mubr.msk.bf16.mxu0 %vm1552_vm8, %v9550_v0  ;;  %v9687_v37 = vrot.slane %v1788_v49, 1  ;;  %v800_v5 = vshra.s32 %v724_v52, 5  ;;  %v876_v6 = vand.u32 31, %v724_v52  ;;  %v1482_v13 = vsel %vm1254_vm13, %v645_v24, 0.0 }
  0x96   : > { %v647_v11 = vmax.f32 %v571_v56, 0.0  ;;  %v9693_v9 = vsel %vm2669_vm9, %v4467_v19, %v9674_v53  ;;  %v490_v12 = vmul.f32 %v9539_v61, %v7308_v59  ;;  %v1536_v14 = vpack.c.bf16 %v1483_v47, %v1482_v13 }
  0x97   : > { %11121 = vst [vmem:[#allocation5_spill] sm:$0xff] %v9687_v37  ;;  %v1791_v39 = vsel %vm1627_vm11, %v1786_v55, %v9687_v37  ;;  %v1794_v0 = vor.u32 %v1792_v50, %v9687_v37  ;;  %vm952_vm14 = vcmp.ge.s32.totalorder %v800_v5, 1  ;;  %vm1028_vm15 = vcmp.le.s32.totalorder %v800_v5, 16 }
  0x98   : > { %7688 = vmatmul.mubr.msk.bf16.gmra.mrb[36].mxu1 %vm1552_vm8, %v1791_v39  ;;  %v9700_v15 = vld [vmem:[#allocation2 + $0xa8] sm:$0xff]  ;;  %vm1332_vm1 = vcmp.le.s32.totalorder %v876_v6, 16  ;;  %v491_v16 = vmul.f32 %v9539_v61, %v7309_v62  ;;  %v573_v20 = vadd.f32 %v9544_v57, %v490_v12  ;;  %1575 = vst.msk [vmem:[#allocation2 + $0xb0] sm:$0xff] %vm1552_vm8, %v1536_v14  ;;  %vm1104_vm2 = vmand %vm952_vm14, %vm1028_vm15  ;;  %v727_v23 = vadd.s32 392, %v8950_v1  ;;  %v9757_v12 = vld [vmem:[%s8980_s11 + $0x1c] sm:$0xf] }
  0x99   : > { %v1796_v17 = vshll.u32 %v9700_v15, 16  ;;  %v1800_v22 = vshrl.u32 %v9700_v15, 16  ;;  %v802_v24 = vshra.s32 %v726_v63, 5  ;;  %vm1408_vm3 = vmand %vm1104_vm2, %vm1332_vm1  ;;  %v878_v26 = vand.u32 31, %v726_v63  ;;  %8765 = vmatprep.subr.msk.bf16.mxu0 %vm1984_vm0, %v9757_v12 }
  0x9a   : > { %v574_v19 = vadd.f32 %v9544_v57, %v491_v16  ;;  %v649_v25 = vmax.f32 %v573_v20, 0.0  ;;  %v4471_v45 = vrot.slane %v9367_v2, 1  ;;  %v1484_v31 = vsel %vm1408_vm3, %v647_v11, 0.0 }
  0x9b   : > { %v1798_v29 = vrot.slane %v1796_v17, 1  ;;  %v803_v30 = vshra.s32 %v727_v23, 5  ;;  %vm9710_vm4 = vcmp.ge.s32.totalorder %v802_v24, 1  ;;  %v1537_v55 = vpack.c.bf16 %v11001_v60, %v1484_v31 }
  0x9c   : > { %7986 = vmatmul.mubr.msk.bf16.gmra.mrb[4].mxu0 %vm1552_vm8, %v9601_v43  ;;  %v650_v42 = vmax.f32 %v574_v19, 0.0  ;;  %vm9720_vm5 = vcmp.le.s32.totalorder %v802_v24, 16  ;;  %vm9724_vm6 = vcmp.ge.s32.totalorder %v878_v26, 1  ;;  %v9740_v43 = vsel %vm2669_vm9, %v9674_v53, %v4471_v45 }
  0x9d   : > { %v1799_v28 = vsel %vm1627_vm11, %v1794_v0, %v1798_v29  ;;  %7989 = vmatprep.mubr.msk.bf16.mxu0 %vm1552_vm8, %v9613_v4  ;;  %v1802_v46 = vor.u32 %v1800_v22, %v1798_v29  ;;  %vm955_vm7 = vcmp.ge.s32.totalorder %v803_v30, 1  ;;  %vm1031_vm10 = vcmp.le.s32.totalorder %v803_v30, 16  ;;  %vm1106_vm12 = vmand %vm9710_vm4, %vm9720_vm5  ;;  %1576 = vst.msk [vmem:[#allocation2 + $0xb8] sm:$0xff] %vm1552_vm8, %v1537_v55 }
  0x9e   : > { %7691 = vmatprep.mubr.msk.bf16.mxu1 %vm1552_vm8, %v1799_v28  ;;  %vm1107_vm13 = vmand %vm955_vm7, %vm1031_vm10  ;;  %v409_v40 = vunpack.c.l.bf16 %v9715_v35  ;;  %v728_v4 = vadd.s32 400, %v8950_v1  ;;  %v4473_v36 = vrot.slane %v9385_v32, 1  ;;  %v7312_v50 = vunpack.c.l.bf16 %v7346_v44 }
  0x9f   : > { %vm1258_vm14 = vmand %vm1106_vm12, %vm9724_vm6  ;;  %v1487_v49 = vsel %vm1107_vm13, %v650_v42, 0.0  ;;  %v7313_v52 = vunpack.c.h.bf16 %v7346_v44  ;;  %v730_v56 = vadd.s32 416, %v8950_v1  ;;  %v9748_v59 = vld [vmem:[#allocation2 + $0xb0] sm:$0xff]  ;;  %v731_v20 = vadd.s32 424, %v8950_v1 }
  0xa0   : > { %v1486_v62 = vsel %vm1258_vm14, %v649_v25, 0.0  ;;  %v492_v63 = vmul.f32 %v9539_v61, %v409_v40  ;;  %v804_v47 = vshra.s32 %v728_v4, 5  ;;  %v880_v5 = vand.u32 31, %v728_v4 }
  0xa1   : > { %v1804_v6 = vshll.u32 %v9748_v59, 16  ;;  %v1808_v13 = vshrl.u32 %v9748_v59, 16  ;;  %v1538_v32 = vpack.c.bf16 %v1487_v49, %v1486_v62  ;;  %v9754_v11 = vsel %vm2669_vm9, %v4471_v45, %v4473_v36 }
  0xa2   : > { %v575_v39 = vadd.f32 %v9544_v57, %v492_v63  ;;  %vm956_vm15 = vcmp.ge.s32.totalorder %v804_v47, 1  ;;  %vm1032_vm1 = vcmp.le.s32.totalorder %v804_v47, 16  ;;  %vm1336_vm2 = vcmp.le.s32.totalorder %v880_v5, 16 }
  0xa3   : > { %v1806_v0 = vrot.slane %v1804_v6, 1  ;;  %1577 = vst.msk [vmem:[#allocation2 + $0xc0] sm:$0xff] %vm1552_vm8, %v1538_v32  ;;  %vm1108_vm3 = vmand %vm956_vm15, %vm1032_vm1  ;;  %v494_v14 = vmul.f32 %v9539_v61, %v7312_v50  ;;  %v495_v16 = vmul.f32 %v9539_v61, %v7313_v52  ;;  %v806_v22 = vshra.s32 %v730_v56, 5 }
  0xa4   : > { %7990 = vmatmul.mubr.msk.bf16.gmra.mrb[8].mxu0 %vm1552_vm8, %v9636_v33  ;;  %v651_v17 = vmax.f32 %v575_v39, 0.0  ;;  %vm1412_vm4 = vmand %vm1108_vm3, %vm1336_vm2  ;;  %v882_v23 = vand.u32 31, %v730_v56  ;;  %v4475_v24 = vrot.slane %v9410_v48, 1  ;;  %v9770_v25 = vld [vmem:[#allocation2 + $0xb8] sm:$0xff]  ;;  %v807_v30 = vshra.s32 %v731_v20, 5 }
  0xa5   : > { %v1807_v19 = vsel %vm1627_vm11, %v1802_v46, %v1806_v0  ;;  %v1810_v26 = vor.u32 %v1808_v13, %v1806_v0  ;;  %7993 = vmatprep.mubr.msk.bf16.mxu0 %vm1552_vm8, %v9693_v9  ;;  %v577_v45 = vadd.f32 %v9544_v57, %v494_v14  ;;  %v578_v29 = vadd.f32 %v9544_v57, %v495_v16  ;;  %v7347_v9 = vld [vmem:[%s9004_s14 + $0xe0] sm:$0xff]  }
  0xa6   : > { %7692 = vmatmul.mubr.msk.bf16.gmra.mrb[40].mxu1 %vm1552_vm8, %v1807_v19  ;;  %v1812_v33 = vshll.u32 %v9770_v25, 16  ;;  %v1816_v31 = vshrl.u32 %v9770_v25, 16  ;;  %v1488_v48 = vsel %vm1412_vm4, %v651_v17, 0.0  ;;  %vm9780_vm5 = vcmp.ge.s32.totalorder %v806_v22, 1 }
  0xa7   : > { %v1539_v34 = vpack.c.bf16 %v11001_v60, %v1488_v48  ;;  %v653_v55 = vmax.f32 %v577_v45, 0.0  ;;  %v654_v42 = vmax.f32 %v578_v29, 0.0  ;;  %vm9785_vm6 = vcmp.ge.s32.totalorder %v807_v30, 1 }
  0xa8   : > { %v1814_v2 = vrot.slane %v1812_v33, 1  ;;  %vm9789_vm7 = vcmp.le.s32.totalorder %v806_v22, 16  ;;  %vm9793_vm10 = vcmp.le.s32.totalorder %v807_v30, 16  ;;  %vm1186_vm13 = vcmp.ge.s32.totalorder %v882_v23, 1 }
  0xa9   : > { %1578 = vst.msk [vmem:[#allocation2 + $0xc8] sm:$0xff] %vm1552_vm8, %v1539_v34  ;;  %vm1110_vm12 = vmand %vm9780_vm5, %vm9789_vm7  ;;  %v9803_v40 = vsel %vm2669_vm9, %v4473_v36, %v4475_v24  ;;  %v413_v4 = vunpack.c.h.bf16 %v9566_v27  ;;  %v732_v49 = vadd.s32 432, %v8950_v1  ;;  %v4477_v62 = vrot.slane %v9444_v10, 1 }
  0xaa   : > { %v1815_v50 = vsel %vm1627_vm11, %v1810_v26, %v1814_v2  ;;  %v9808_v52 = vld [vmem:[#allocation2 + $0xc0] sm:$0xff]  ;;  %v1818_v56 = vor.u32 %v1816_v31, %v1814_v2  ;;  %vm1111_vm14 = vmand %vm9785_vm6, %vm9793_vm10  ;;  %v7316_v63 = vunpack.c.l.bf16 %v7347_v9  ;;  %v7317_v16 = vunpack.c.h.bf16 %v7347_v9  ;;  %v341_v2 = vld [vmem:[%s9004_s14 + $0xe8] sm:$0xf] }
  0xab   : > { %7695 = vmatprep.mubr.msk.bf16.mxu1 %vm1552_vm8, %v1815_v50  ;;  %v1820_v36 = vshll.u32 %v9808_v52, 16  ;;  %v1824_v27 = vshrl.u32 %v9808_v52, 16  ;;  %vm1262_vm15 = vmand %vm1110_vm12, %vm1186_vm13  ;;  %v1491_v47 = vsel %vm1111_vm14, %v654_v42, 0.0  ;;  %v496_v5 = vmul.f32 %v9539_v61, %v413_v4 }
  0xac   : > { %7994 = vmatmul.mubr.msk.bf16.gmra.mrb[12].mxu0 %vm1552_vm8, %v9740_v43  ;;  %v1490_v6 = vsel %vm1262_vm15, %v653_v55, 0.0  ;;  %v808_v13 = vshra.s32 %v732_v49, 5  ;;  %v884_v32 = vand.u32 31, %v732_v49  ;;  %v9822_v39 = vsel %vm2669_vm9, %v4475_v24, %v4477_v62 }
  0xad   : > { %v1822_v10 = vrot.slane %v1820_v36, 1  ;;  %7997 = vmatprep.mubr.msk.bf16.mxu0 %vm1552_vm8, %v9754_v11  ;;  %v1540_v0 = vpack.c.bf16 %v1491_v47, %v1490_v6  ;;  %v579_v14 = vadd.f32 %v9544_v57, %v496_v5  ;;  %v498_v20 = vmul.f32 %v9539_v61, %v7316_v63 }
  0xae   : > { %vm960_vm1 = vcmp.ge.s32.totalorder %v808_v13, 1  ;;  %vm1036_vm2 = vcmp.le.s32.totalorder %v808_v13, 16  ;;  %vm1340_vm3 = vcmp.le.s32.totalorder %v884_v32, 16  ;;  %v499_v24 = vmul.f32 %v9539_v61, %v7317_v16 }
  0xaf   : > { %v1823_v17 = vsel %vm1627_vm11, %v1818_v56, %v1822_v10  ;;  %v1826_v22 = vor.u32 %v1824_v27, %v1822_v10  ;;  %1579 = vst.msk [vmem:[#allocation2 + $0xd0] sm:$0xff] %vm1552_vm8, %v1540_v0  ;;  %v655_v23 = vmax.f32 %v579_v14, 0.0  ;;  %vm1112_vm4 = vmand %vm960_vm1, %vm1036_vm2  ;;  %v581_v26 = vadd.f32 %v9544_v57, %v498_v20 }
  0xb0   : > { %7696 = vmatmul.mubr.msk.bf16.gmra.mrb[44].mxu1 %vm1552_vm8, %v1823_v17  ;;  %v9832_v19 = vld [vmem:[#allocation2 + $0xc8] sm:$0xff]  ;;  %vm1416_vm5 = vmand %vm1112_vm4, %vm1340_vm3  ;;  %v734_v45 = vadd.s32 448, %v8950_v1  ;;  %v735_v29 = vadd.s32 456, %v8950_v1  ;;  %v4479_v33 = vrot.slane %v9484_v54, 1  ;;  %v582_v34 = vadd.f32 %v9544_v57, %v499_v24  ;;  %v7348_v54 = vld [vmem:[%s9004_s14 + $0xf0] sm:$0xff]  }
  0xb1   : > { %v1828_v31 = vshll.u32 %v9832_v19, 16  ;;  %v1832_v48 = vshrl.u32 %v9832_v19, 16  ;;  %v1492_v30 = vsel %vm1416_vm5, %v655_v23, 0.0  ;;  %v657_v42 = vmax.f32 %v581_v26, 0.0 }
  0xb2   : > { %v1541_v55 = vpack.c.bf16 %v11001_v60, %v1492_v30  ;;  %v810_v18 = vshra.s32 %v734_v45, 5  ;;  %v811_v9 = vshra.s32 %v735_v29, 5  ;;  %v658_v28 = vmax.f32 %v582_v34, 0.0 }
  0xb3   : > { %v1830_v44 = vrot.slane %v1828_v31, 1  ;;  %v886_v46 = vand.u32 31, %v734_v45  ;;  %v9844_v4 = vsel %vm2669_vm9, %v4477_v62, %v4479_v33  ;;  %v417_v27 = vunpack.c.l.bf16 %v341_v2 }
  0xb4   : > { %7998 = vmatmul.mubr.msk.bf16.gmra.mrb[16].mxu0 %vm1552_vm8, %v9803_v40  ;;  %1580 = vst.msk [vmem:[#allocation2 + $0xd8] sm:$0xff] %vm1552_vm8, %v1541_v55  ;;  %vm9850_vm6 = vcmp.ge.s32.totalorder %v810_v18, 1  ;;  %vm9854_vm7 = vcmp.ge.s32.totalorder %v811_v9, 1  ;;  %vm9858_vm10 = vcmp.le.s32.totalorder %v810_v18, 16  ;;  %vm9862_vm12 = vcmp.le.s32.totalorder %v811_v9, 16 }
  0xb5   : > { %v1831_v63 = vsel %vm1627_vm11, %v1826_v22, %v1830_v44  ;;  %v1834_v36 = vor.u32 %v1832_v48, %v1830_v44  ;;  %8001 = vmatprep.mubr.msk.bf16.mxu0 %vm1552_vm8, %v9822_v39  ;;  %vm1114_vm13 = vmand %vm9850_vm6, %vm9858_vm10  ;;  %vm1190_vm14 = vcmp.ge.s32.totalorder %v886_v46, 1  ;;  %v736_v5 = vadd.s32 464, %v8950_v1 }
  0xb6   : > { %7699 = vmatprep.mubr.msk.bf16.mxu1 %vm1552_vm8, %v1831_v63  ;;  %v9874_v47 = vld [vmem:[#allocation2 + $0xd0] sm:$0xff]  ;;  %vm1115_vm15 = vmand %vm9854_vm7, %vm9862_vm12  ;;  %v4481_v6 = vrot.slane %v9491_v3, 1  ;;  %v7320_v13 = vunpack.c.l.bf16 %v7348_v54  ;;  %v7321_v32 = vunpack.c.h.bf16 %v7348_v54  ;;  %v500_v16 = vmul.f32 %v9539_v61, %v417_v27 }
  0xb7   : > { %v1836_v10 = vshll.u32 %v9874_v47, 16  ;;  %v1840_v0 = vshrl.u32 %v9874_v47, 16  ;;  %vm1266_vm1 = vmand %vm1114_vm13, %vm1190_vm14  ;;  %v1495_v14 = vsel %vm1115_vm15, %v658_v28, 0.0  ;;  %v812_v17 = vshra.s32 %v736_v5, 5 }
  0xb8   : > { %v1494_v20 = vsel %vm1266_vm1, %v657_v42, 0.0  ;;  %v888_v22 = vand.u32 31, %v736_v5  ;;  %v9886_v23 = vsel %vm2669_vm9, %v4479_v33, %v4481_v6  ;;  %v583_v3 = vadd.f32 %v9544_v57, %v500_v16 }
  0xb9   : > { %v1838_v24 = vrot.slane %v1836_v10, 1  ;;  %v1542_v26 = vpack.c.bf16 %v1495_v14, %v1494_v20  ;;  %v502_v45 = vmul.f32 %v9539_v61, %v7320_v13  ;;  %vm9890_vm2 = vcmp.ge.s32.totalorder %v812_v17, 1 }
  0xba   : > { %vm9894_vm3 = vcmp.le.s32.totalorder %v812_v17, 16  ;;  %vm1344_vm4 = vcmp.le.s32.totalorder %v888_v22, 16  ;;  %v503_v48 = vmul.f32 %v9539_v61, %v7321_v32  ;;  %v659_v55 = vmax.f32 %v583_v3, 0.0  ;;  %v7349_v32 = vld [vmem:[%s9004_s14 + $0x100] sm:$0xff]  }
  0xbb   : > { %v1839_v33 = vsel %vm1627_vm11, %v1834_v36, %v1838_v24  ;;  %v9900_v30 = vld [vmem:[#allocation2 + $0xd8] sm:$0xff]  ;;  %v1842_v34 = vor.u32 %v1840_v0, %v1838_v24  ;;  %1581 = vst.msk [vmem:[#allocation2 + $0xe0] sm:$0xff] %vm1552_vm8, %v1542_v26  ;;  %vm1116_vm5 = vmand %vm9890_vm2, %vm9894_vm3  ;;  %v585_v42 = vadd.f32 %v9544_v57, %v502_v45  ;;  %v738_v44 = vadd.s32 480, %v8950_v1 }
  0xbc   : > { %7700 = vmatmul.mubr.msk.bf16.gmra.mrb[48].mxu1 %vm1552_vm8, %v1839_v33  ;;  %v1844_v18 = vshll.u32 %v9900_v30, 16  ;;  %v1848_v9 = vshrl.u32 %v9900_v30, 16  ;;  %8002 = vmatmul.mubr.msk.bf16.gmra.mrb[20].mxu0 %vm1552_vm8, %v9844_v4  ;;  %vm1420_vm6 = vmand %vm1116_vm5, %vm1344_vm4  ;;  %v586_v2 = vadd.f32 %v9544_v57, %v503_v48  ;;  %v739_v54 = vadd.s32 488, %v8950_v1 }
  0xbd   : > { %v1496_v28 = vsel %vm1420_vm6, %v659_v55, 0.0  ;;  %8005 = vmatprep.mubr.msk.bf16.mxu0 %vm1552_vm8, %v9886_v23  ;;  %v661_v46 = vmax.f32 %v585_v42, 0.0  ;;  %v4483_v49 = vrot.slane %v9520_v38, 1  ;;  %v814_v63 = vshra.s32 %v738_v44, 5 }
  0xbe   : > { %v1846_v50 = vrot.slane %v1844_v18, 1  ;;  %v1543_v56 = vpack.c.bf16 %v11001_v60, %v1496_v28  ;;  %v662_v62 = vmax.f32 %v586_v2, 0.0  ;;  %v815_v36 = vshra.s32 %v739_v54, 5 }
  0xbf   : > { %v890_v27 = vand.u32 31, %v738_v44  ;;  %v9921_v5 = vsel %vm2669_vm9, %v4481_v6, %v4483_v49  ;;  %v421_v13 = vunpack.c.h.bf16 %v9715_v35  ;;  %vm9927_vm7 = vcmp.ge.s32.totalorder %v814_v63, 1 }
  0xc0   : > { %v1847_v10 = vsel %vm1627_vm11, %v1842_v34, %v1846_v50  ;;  %v1850_v0 = vor.u32 %v1848_v9, %v1846_v50  ;;  %1582 = vst.msk [vmem:[#allocation2 + $0xe8] sm:$0xff] %vm1552_vm8, %v1543_v56  ;;  %vm9931_vm10 = vcmp.le.s32.totalorder %v814_v63, 16  ;;  %vm967_vm12 = vcmp.ge.s32.totalorder %v815_v36, 1 }
  0xc1   : > { %7703 = vmatprep.mubr.msk.bf16.mxu1 %vm1552_vm8, %v1847_v10  ;;  %vm1043_vm13 = vcmp.le.s32.totalorder %v815_v36, 16  ;;  %vm1118_vm14 = vmand %vm9927_vm7, %vm9931_vm10  ;;  %vm1194_vm15 = vcmp.ge.s32.totalorder %v890_v27, 1  ;;  %v504_v35 = vmul.f32 %v9539_v61, %v421_v13  ;;  %v740_v16 = vadd.s32 496, %v8950_v1 }
  0xc2   : > { %v9941_v6 = vld [vmem:[#allocation2 + $0xe0] sm:$0xff]  ;;  %vm1119_vm1 = vmand %vm967_vm12, %vm1043_vm13  ;;  %v4485_v20 = vrot.slane %v9553_v51, 1  ;;  %v7324_v17 = vunpack.c.l.bf16 %v7349_v32  ;;  %v7325_v22 = vunpack.c.h.bf16 %v7349_v32  ;;  %v742_v54 = vadd.s32 512, %v8950_v1 }
  0xc3   : > { %v1852_v24 = vshll.u32 %v9941_v6, 16  ;;  %v1856_v26 = vshrl.u32 %v9941_v6, 16  ;;  %vm1270_vm2 = vmand %vm1118_vm14, %vm1194_vm15  ;;  %v1499_v3 = vsel %vm1119_vm1, %v662_v62, 0.0  ;;  %v587_v45 = vadd.f32 %v9544_v57, %v504_v35 }
  0xc4   : > { %v1498_v29 = vsel %vm1270_vm2, %v661_v46, 0.0  ;;  %8006 = vmatmul.mubr.msk.bf16.gmra.mrb[24].mxu0 %vm1552_vm8, %v9921_v5  ;;  %v816_v31 = vshra.s32 %v740_v16, 5  ;;  %v892_v48 = vand.u32 31, %v740_v16  ;;  %v9951_v33 = vsel %vm2669_vm9, %v4483_v49, %v4485_v20 }
  0xc5   : > { %v1854_v51 = vrot.slane %v1852_v24, 1  ;;  %v1544_v34 = vpack.c.bf16 %v1499_v3, %v1498_v29  ;;  %v663_v55 = vmax.f32 %v587_v45, 0.0  ;;  %8009 = vmatprep.mubr.msk.bf16.mxu0 %vm1552_vm8, %v9951_v33  ;;  %v506_v42 = vmul.f32 %v9539_v61, %v7324_v17 }
  0xc6   : > { %vm9956_vm3 = vcmp.ge.s32.totalorder %v816_v31, 1  ;;  %vm1044_vm4 = vcmp.le.s32.totalorder %v816_v31, 16  ;;  %vm1348_vm5 = vcmp.le.s32.totalorder %v892_v48, 16  ;;  %v507_v9 = vmul.f32 %v9539_v61, %v7325_v22 }
  0xc7   : > { %v1855_v2 = vsel %vm1627_vm11, %v1850_v0, %v1854_v51  ;;  %v9962_v44 = vld [vmem:[#allocation2 + $0xe8] sm:$0xff]  ;;  %v1858_v28 = vor.u32 %v1856_v26, %v1854_v51  ;;  %1583 = vst.msk [vmem:[#allocation2 + $0xf0] sm:$0xff] %vm1552_vm8, %v1544_v34  ;;  %vm1120_vm6 = vmand %vm9956_vm3, %vm1044_vm4  ;;  %v589_v46 = vadd.f32 %v9544_v57, %v506_v42  ;;  %v743_v62 = vadd.s32 520, %v8950_v1 }
  0xc8   : > { %7704 = vmatmul.mubr.msk.bf16.gmra.mrb[52].mxu1 %vm1552_vm8, %v1855_v2  ;;  %v1860_v49 = vshll.u32 %v9962_v44, 16  ;;  %v1864_v50 = vshrl.u32 %v9962_v44, 16  ;;  %vm1424_vm7 = vmand %vm1120_vm6, %vm1348_vm5  ;;  %v590_v56 = vadd.f32 %v9544_v57, %v507_v9  ;;  %v818_v27 = vshra.s32 %v742_v54, 5 }
  0xc9   : > { %v1500_v63 = vsel %vm1424_vm7, %v663_v55, 0.0  ;;  %v665_v36 = vmax.f32 %v589_v46, 0.0  ;;  %v894_v13 = vand.u32 31, %v742_v54  ;;  %v819_v38 = vshra.s32 %v743_v62, 5  ;;  %v7350_v46 = vld [vmem:[%s9004_s14 + $0x110] sm:$0xff]  }
  0xca   : > { %v1862_v32 = vrot.slane %v1860_v49, 1  ;;  %v1545_v10 = vpack.c.bf16 %v11001_v60, %v1500_v63  ;;  %v666_v0 = vmax.f32 %v590_v56, 0.0  ;;  %vm9975_vm10 = vcmp.ge.s32.totalorder %v818_v27, 1 }
  0xcb   : > { %vm9979_vm12 = vcmp.le.s32.totalorder %v818_v27, 16  ;;  %vm1198_vm13 = vcmp.ge.s32.totalorder %v894_v13, 1  ;;  %v4487_v16 = vrot.slane %v9593_v41, 1  ;;  %vm971_vm14 = vcmp.ge.s32.totalorder %v819_v38, 1 }
  0xcc   : > { %v1863_v17 = vsel %vm1627_vm11, %v1858_v28, %v1862_v32  ;;  %1584 = vst.msk [vmem:[#allocation2 + $0xf8] sm:$0xff] %vm1552_vm8, %v1545_v10  ;;  %vm1047_vm15 = vcmp.le.s32.totalorder %v819_v38, 16  ;;  %vm1122_vm1 = vmand %vm9975_vm10, %vm9979_vm12  ;;  %v4489_v24 = vrot.slane %v9622_v7, 1  ;;  %v1866_v26 = vor.u32 %v1864_v50, %v1862_v32  ;;  %v10018_v28 = vld [vmem:[%s9004_s14 + $0x108] ss:$16 sps:$4 sm:$0xff]  }
  0xcd   : > { %7707 = vmatprep.mubr.msk.bf16.mxu1 %vm1552_vm8, %v1863_v17  ;;  %vm1123_vm2 = vmand %vm971_vm14, %vm1047_vm15  ;;  %v9992_v22 = vsel %vm2669_vm9, %v4485_v20, %v4487_v16  ;;  %v4491_v20 = vrot.slane %v9651_v8, 1  ;;  %v4493_v51 = vrot.slane %v9700_v15, 1  ;;  %v4495_v9 = vrot.slane %v9748_v59, 1 }
  0xce   : > { %v9995_v41 = vld [vmem:[#allocation2 + $0xf0] sm:$0xff]  ;;  %vm1274_vm3 = vmand %vm1122_vm1, %vm1198_vm13  ;;  %v1503_v3 = vsel %vm1123_vm2, %v666_v0, 0.0  ;;  %8010 = vmatmul.mubr.msk.bf16.gmra.mrb[28].mxu0 %vm1552_vm8, %v9992_v22  ;;  %v10001_v31 = vsel %vm2669_vm9, %v4487_v16, %v4489_v24  ;;  %v4497_v2 = vrot.slane %v9770_v25, 1  ;;  %v425_v63 = vunpack.c.l.bf16 %v10018_v28 }
  0xcf   : > { %v1868_v45 = vshll.u32 %v9995_v41, 16  ;;  %v1502_v29 = vsel %vm1274_vm3, %v665_v36, 0.0  ;;  %v1872_v7 = vshrl.u32 %v9995_v41, 16  ;;  %8013 = vmatprep.mubr.msk.bf16.mxu0 %vm1552_vm8, %v10001_v31  ;;  %v10013_v18 = vsel %vm2669_vm9, %v4489_v24, %v4491_v20 }
  0xd0   : > { %v1546_v48 = vpack.c.bf16 %v1503_v3, %v1502_v29  ;;  %v10024_v50 = vsel %vm2669_vm9, %v4491_v20, %v4493_v51  ;;  %v744_v36 = vadd.s32 528, %v8950_v1  ;;  %v7328_v27 = vunpack.c.l.bf16 %v7350_v46 }
  0xd1   : > { %v1870_v34 = vrot.slane %v1868_v45, 1  ;;  %v10034_v13 = vsel %vm2669_vm9, %v4493_v51, %v4495_v9  ;;  %v10039_v32 = vsel %vm2669_vm9, %v4495_v9, %v4497_v2  ;;  %v7329_v10 = vunpack.c.h.bf16 %v7350_v46 }
  0xd2   : > { %1585 = vst.msk [vmem:[#allocation2 + $0x100] sm:$0xff] %vm1552_vm8, %v1546_v48  ;;  %v508_v38 = vmul.f32 %v9539_v61, %v425_v63  ;;  %v820_v14 = vshra.s32 %v744_v36, 5  ;;  %v746_v35 = vadd.s32 544, %v8950_v1  ;;  %v896_v17 = vand.u32 31, %v744_v36  ;;  %v8813_v36 = vld [vmem:[#allocation2] sm:$0xff] }
  0xd3   : > { %v1871_v55 = vsel %vm1627_vm11, %v1866_v26, %v1870_v34  ;;  %v10010_v42 = vld [vmem:[#allocation2 + $0xf8] sm:$0xff]  ;;  %v1874_v54 = vor.u32 %v1872_v7, %v1870_v34  ;;  %v510_v24 = vmul.f32 %v9539_v61, %v7328_v27  ;;  %v511_v26 = vmul.f32 %v9539_v61, %v7329_v10 }
  0xd4   : > { %7708 = vmatmul.mubr.msk.bf16.gmra.mrb[56].mxu1 %vm1552_vm8, %v1871_v55  ;;  %v1876_v49 = vshll.u32 %v10010_v42, 16  ;;  %v1880_v56 = vshrl.u32 %v10010_v42, 16  ;;  %v747_v3 = vadd.s32 552, %v8950_v1  ;;  %v591_v20 = vadd.f32 %v9544_v57, %v508_v38 }
  0xd5   : > { %vm972_vm4 = vcmp.ge.s32.totalorder %v820_v14, 1  ;;  %vm1048_vm5 = vcmp.le.s32.totalorder %v820_v14, 16  ;;  %vm1352_vm6 = vcmp.le.s32.totalorder %v896_v17, 16  ;;  %v593_v7 = vadd.f32 %v9544_v57, %v510_v24  ;;  %v8814_v17 = vld [vmem:[%s8980_s11 + $0x8] sm:$0xf] }
  0xd6   : > { %v1878_v62 = vrot.slane %v1876_v49, 1  ;;  %8014 = vmatmul.mubr.msk.bf16.gmra.mrb[32].mxu0 %vm1552_vm8, %v10013_v18  ;;  %v594_v48 = vadd.f32 %v9544_v57, %v511_v26  ;;  %v4499_v34 = vrot.slane %v9808_v52, 1  ;;  %v667_v55 = vmax.f32 %v591_v20, 0.0  ;;  %vm1124_vm7 = vmand %vm972_vm4, %vm1048_vm5  ;;  %v10085_v26 = vld [vmem:[%s8980_s11 + $0xc] sm:$0xf] }
  0xd7   : > { %8017 = vmatprep.mubr.msk.bf16.mxu0 %vm1552_vm8, %v10024_v50  ;;  %v822_v61 = vshra.s32 %v746_v35, 5  ;;  %vm1428_vm10 = vmand %vm1124_vm7, %vm1352_vm6  ;;  %v669_v9 = vmax.f32 %v593_v7, 0.0  ;;  %v898_v49 = vand.u32 31, %v746_v35  ;;  %v4501_v27 = vrot.slane %v9832_v19, 1 }
  0xd8   : > { %v1879_v0 = vsel %vm1627_vm11, %v1874_v54, %v1878_v62  ;;  %v1882_v45 = vor.u32 %v1880_v56, %v1878_v62  ;;  %v670_v46 = vmax.f32 %v594_v48, 0.0  ;;  %v823_v54 = vshra.s32 %v747_v3, 5  ;;  %v10087_v3 = vld [vmem:[#allocation2 + $0x8] sm:$0xff]  ;;  %v10109_v48 = vld [vmem:[#allocation2 + $0x18] sm:$0xff] }
  0xd9   : > { %7711 = vmatprep.mubr.msk.bf16.mxu1 %vm1552_vm8, %v1879_v0  ;;  %v10045_v16 = vld [vmem:[#allocation2 + $0x100] sm:$0x1]  ;;  %v1504_v62 = vsel %vm1428_vm10, %v667_v55, 0.0  ;;  %vm10058_vm12 = vcmp.ge.s32.totalorder %v822_v61, 1  ;;  %vm1050_vm13 = vcmp.le.s32.totalorder %v822_v61, 16  ;;  %vm1202_vm2 = vcmp.ge.s32.totalorder %v898_v49, 1 }
  0xda   : > { %11158 = vst [vmem:[#allocation6_spill] sm:$0xff] %v10045_v16  ;;  %v1884_v29 = vshll.u32 %v10045_v16, 16  ;;  %v1547_v57 = vpack.c.bf16 %v11001_v60, %v1504_v62  ;;  %vm975_vm14 = vcmp.ge.s32.totalorder %v823_v54, 1  ;;  %vm1051_vm15 = vcmp.le.s32.totalorder %v823_v54, 16  ;;  %vm1126_vm1 = vmand %vm10058_vm12, %vm1050_vm13  ;;  %v10136_v49 = vld [vmem:[#allocation2 + $0x30] sm:$0xff]  ;;  %v10176_v60 = vld [vmem:[#allocation2 + $0x20] sm:$0xff] }
  0xdb   : > { %vm1127_vm3 = vmand %vm975_vm14, %vm1051_vm15  ;;  %v10074_v38 = vsel %vm2669_vm9, %v4497_v2, %v4499_v34  ;;  %v10077_v35 = vsel %vm2669_vm9, %v4499_v34, %v4501_v27  ;;  %v2832_v24 = vsel %vm1984_vm0, %v8814_v17, 0  ;;  %v4503_v2 = vrot.slane %v9874_v47, 1  ;;  %v10116_v34 = vld [vmem:[#allocation2 + $0x20] sm:$0xff] }
  0xdc   : > { %v1886_v51 = vrot.slane %v1884_v29, 1  ;;  %1586 = vst.msk [vmem:[#allocation2 + $0x108] sm:$0xff] %vm1552_vm8, %v1547_v57  ;;  %vm1278_vm4 = vmand %vm1126_vm1, %vm1202_vm2  ;;  %v1507_v10 = vsel %vm1127_vm3, %v670_v46, 0.0  ;;  %v4505_v29 = vrot.slane %v9900_v30, 1  ;;  %v4509_v55 = vrot.slane %v9962_v44, 1  ;;  %v10129_v46 = vld [vmem:[#allocation2 + $0x28] sm:$0xff] }
  0xdd   : > { %v1506_v0 = vsel %vm1278_vm4, %v669_v9, 0.0  ;;  %v10102_v20 = vsel %vm2669_vm9, %v4501_v27, %v4503_v2  ;;  %v4511_v54 = vrot.slane %v9995_v41, 1  ;;  %v10150_v57 = vld [vmem:[#allocation2 + $0x100] sm:$0xff]  ;;  %v10156_v27 = vld [vmem:[#allocation2 + $0x38] sm:$0xff]  ;;  %v429_v37 = vunpack.c.h.bf16 %v10018_v28 }
  0xde   : > { %v1887_v56 = vsel %vm1627_vm11, %v1882_v45, %v1886_v51  ;;  %8018 = vmatmul.mubr.msk.bf16.gmra.mrb[36].mxu0 %vm1552_vm8, %v10034_v13  ;;  %v1548_v14 = vpack.c.bf16 %v1507_v10, %v1506_v0  ;;  %v10094_v45 = vld [vmem:[#allocation2 + $0x10] sm:$0xff]  ;;  %11161 = vst [vmem:[#allocation7_spill] sm:$0xff] %v10102_v20  ;;  %v10105_v7 = vsel %vm2669_vm9, %v4503_v2, %v4505_v29  ;;  %v4507_v51 = vrot.slane %v9941_v6, 1  ;;  %v10163_v0 = vld [vmem:[#allocation2 + $0x40] sm:$0xff] }
  0xdf   : > { %7712 = vmatmul.mubr.msk.bf16.gmra.mrb[60].mxu1 %vm1552_vm8, %v1887_v56  ;;  %8021 = vmatprep.mubr.msk.bf16.mxu0 %vm1552_vm8, %v10039_v32  ;;  %11162 = vst [vmem:[#allocation8_spill] sm:$0xff] %v10105_v7  ;;  %v10141_v56 = vrot.slane %v10010_v42, 1  ;;  %v10144_v62 = vsel %vm2669_vm9, %v4509_v55, %v4511_v54  ;;  %v4515_v10 = vrot.slane %v10150_v57, 1  ;;  %v10287_v16 = vld [vmem:[#allocation2 + $0xa0] sm:$0xff] }
  0xe0   : > { %7717 = vmatprep.mubr.msk.bf16.mxu1 %vm1552_vm8, %v8813_v36  ;;  %1587 = vst.msk [vmem:[#allocation2 + $0x110] sm:$0xff] %vm1552_vm8, %v1548_v14  ;;  %v10122_v61 = vsel %vm2669_vm9, %v4505_v29, %v4507_v51  ;;  %v10125_v9 = vsel %vm2669_vm9, %v4507_v51, %v4509_v55  ;;  %11166 = vst [vmem:[#allocation12_spill] sm:$0xff] %v10144_v62  ;;  %v8823_v29 = vld [vmem:[#allocation2 + $0x48] sm:$0xff]  ;;  %v8824_v55 = vld [vmem:[#allocation2 + $0x50] sm:$0xff] }
  0xe1   : > { %11163 = vst [vmem:[#allocation9_spill] sm:$0xff] %v10122_v61  ;;  %11164 = vst [vmem:[#allocation10_spill] sm:$0xff] %v10125_v9  ;;  %v10148_v63 = vsel %vm2669_vm9, %v4511_v54, %v10141_v56  ;;  %v4516_v17 = vsel %vm2669_vm9, %v10141_v56, %v4515_v10 }
  0xe2   : > { %11165 = vst [vmem:[#allocation11_spill] sm:$0xff] %v10141_v56  ;;  %11167 = vst [vmem:[#allocation13_spill] sm:$0xff] %v10148_v63 }
  0xe3   : > { %v10152_v36 = vld [vmem:[#allocation2 + $0x108] sm:$0xff] }
  0xe4   : > { %v4517_v14 = vrot.slane %v10152_v36, 1 }
  0xe6   : > { %8022 = vmatmul.mubr.msk.bf16.gmra.mrb[40].mxu0 %vm1552_vm8, %v10074_v38 }
  0xe7   : > { %7718 = vmatmul.mubr.msk.bf16.vlgmr.msra.gmra.mrb[0].mxu1 %vm1552_vm8, %v10087_v3  ;;  %8025 = vmatprep.mubr.msk.bf16.mxu0 %vm1552_vm8, %v10077_v35  ;;  %v3705_v2 = vld [vmem:[#allocation2 + $0x110] sm:$0x1] }
  0xe8   : > { %7782 = vmatpush3.bf16.msra.mxu1 %v2832_v24  ;;  %7721 = vmatprep.mubr.msk.bf16.mxu1 %vm1552_vm8, %v10094_v45  ;;  %v4518_v24 = vsel %vm2669_vm9, %v4515_v10, %v4517_v14  ;;  %v4519_v51 = vrot.slane %v3705_v2, 1  ;;  %v748_v10 = vadd.s32 560, %v8950_v1 }
  0xe9   : > { %8760 = vmatprep.subr.msk.bf16.mxu1 %vm1984_vm0, %v10085_v26 }
  0xea   : > { %v4520_v54 = vsel %vm2669_vm9, %v4517_v14, %v4519_v51  ;;  %v824_v2 = vshra.s32 %v748_v10, 5  ;;  %v8827_v14 = vld [vmem:[#allocation2 + $0x60] sm:$0xff] }
  0xeb   : > { %v10190_v51 = vld [vmem:[%s8966_s29] ss:$0 sm:$0xff] }
  0xec   : > { %vm976_vm5 = vcmp.ge.s32.totalorder %v824_v2, 1  ;;  %vm1052_vm6 = vcmp.le.s32.totalorder %v824_v2, 16  ;;  %v10209_v2 = vld [vmem:[#allocation2 + $0x40] sm:$0xff] }
  0xed   : > { %vm1128_vm7 = vmand %vm976_vm5, %vm1052_vm6 }
  0xee   : > { %8026 = vmatmul.mubr.msk.bf16.gmra.mrb[44].mxu0 %vm1552_vm8, %v10102_v20 }
  0xef   : > { %7722 = vmatmul.mubr.msk.bf16.gmra.mrb[4].mxu1 %vm1552_vm8, %v10109_v48  ;;  %8029 = vmatprep.mubr.msk.bf16.mxu0 %vm1552_vm8, %v10105_v7  ;;  %v2671_v7 = vrot.slane %v10087_v3, 1 }
  0xf0   : > { %7725 = vmatprep.mubr.msk.bf16.mxu1 %vm1552_vm8, %v10116_v34 }
  0xf6   : > { %8030 = vmatmul.mubr.msk.bf16.gmra.mrb[48].mxu0 %vm1552_vm8, %v10122_v61 }
  0xf7   : > { %7726 = vmatmul.mubr.msk.bf16.gmra.mrb[8].mxu1 %vm1552_vm8, %v10129_v46  ;;  %8033 = vmatprep.mubr.msk.bf16.mxu0 %vm1552_vm8, %v10125_v9  ;;  %v2633_v9 = vld [vmem:[#allocation2] sm:$0xfe] }
  0xf8   : > { %7729 = vmatprep.mubr.msk.bf16.mxu1 %vm1552_vm8, %v10136_v49  ;;  %v2670_v61 = vrot.slane %v2633_v9, 1  ;;  %v2675_v9 = vrot.slane %v10109_v48, 1 }
  0xfa   : > { %v2672_v20 = vsel %vm2669_vm9, %v2670_v61, %v2671_v7  ;;  %v3318_v61 = vsel %vm1984_vm0, %v10085_v26, 0 }
  0xfe   : > { %8034 = vmatmul.mubr.msk.bf16.gmra.mrb[52].mxu0 %vm1552_vm8, %v10144_v62  ;;  %v10299_v62 = vld [vmem:[#allocation2 + $0xb0] sm:$0xff] }
  0xff   : > { %7730 = vmatmul.mubr.msk.bf16.gmra.mrb[12].mxu1 %vm1552_vm8, %v10156_v27  ;;  %8037 = vmatprep.mubr.msk.bf16.mxu0 %vm1552_vm8, %v10148_v63  ;;  %v10297_v63 = vld [vmem:[#allocation2 + $0xa8] sm:$0xff]  ;;  %11171 = vst [vmem:[#allocation16_spill] sm:$0xff] %v10299_v62 }
 0x100   : > { %7733 = vmatprep.mubr.msk.bf16.mxu1 %vm1552_vm8, %v10163_v0 }
 0x106   : > { %8038 = vmatmul.mubr.msk.bf16.gmra.mrb[56].mxu0 %vm1552_vm8, %v4516_v17  ;;  %v10182_v17 = vld [vmem:[%s8957_s25] ss:$0 sm:$0xff] }
 0x107   : > { %7734 = vmatmul.mubr.msk.bf16.gmra.mrb[16].mxu1 %vm1552_vm8, %v8823_v29  ;;  %8041 = vmatprep.mubr.msk.bf16.mxu0 %vm1552_vm8, %v4518_v24  ;;  %v512_v29 = vmul.f32 %v10182_v17, %v429_v37  ;;  %v8826_v24 = vld [vmem:[#allocation2 + $0x58] sm:$0xff]  ;;  %v10193_v37 = vld [vmem:[#allocation2 + $0x28] sm:$0xff] }
 0x108   : > { %7737 = vmatprep.mubr.msk.bf16.mxu1 %vm1552_vm8, %v8824_v55  ;;  %v900_v55 = vand.u32 31, %v748_v10  ;;  %v8829_v10 = vld [vmem:[#allocation2 + $0x68] sm:$0xff] }
 0x109   : > { %v595_v28 = vadd.f32 %v10190_v51, %v512_v29  ;;  %v8830_v29 = vld [vmem:[#allocation2 + $0x70] sm:$0xff] }
 0x10a   : > { %vm1356_vm10 = vcmp.le.s32.totalorder %v900_v55, 16  ;;  %v10222_v55 = vld [vmem:[#allocation2 + $0x48] sm:$0xff] }
 0x10b   : > { %vm1432_vm12 = vmand %vm1128_vm7, %vm1356_vm10 }
 0x10e   : > { %8042 = vmatmul.mubr.msk.bf16.gmra.mrb[60].mxu0 %vm1552_vm8, %v4520_v54  ;;  %v671_v54 = vmax.f32 %v595_v28, 0.0  ;;  %v10218_v28 = vld [vmem:[%s8980_s11 + $0x20] sm:$0xf] }
 0x10f   : > { %7738 = vmatmul.mubr.msk.bf16.gmra.mrb[20].mxu1 %vm1552_vm8, %v8826_v24  ;;  %8047 = vmatprep.mubr.msk.bf16.mxu0 %vm1552_vm8, %v10176_v60  ;;  %v5851_v24 = vsel %vm1984_vm0, %v9757_v12, 0  ;;  %v10207_v12 = vld [vmem:[#allocation2 + $0x38] sm:$0xff] }
 0x110   : > { %7741 = vmatprep.mubr.msk.bf16.mxu1 %vm1552_vm8, %v8827_v14  ;;  %v1508_v58 = vsel %vm1432_vm12, %v671_v54, 0.0  ;;  %v11168_v14 = vmov 0.0   ;;  %v10224_v54 = vld [vmem:[#allocation2 + $0x50] sm:$0xff] }
 0x111   : > { %v1549_v56 = vpack.c.bf16 %v11168_v14, %v1508_v58  ;;  %v8831_v58 = vld [vmem:[#allocation2 + $0x78] sm:$0xff]  ;;  %v10231_v14 = vld [vmem:[#allocation2 + $0x90] sm:$0xff] }
 0x112   : > { %11169 = vst [vmem:[#allocation14_spill] sm:$0xff] %v10231_v14 }
 0x113   : > { %1588 = vst.msk [vmem:[#allocation2 + $0x118] sm:$0xff] %vm1552_vm8, %v1549_v56  ;;  %v8832_v56 = vld [vmem:[#allocation2 + $0x80] sm:$0xff] }
 0x116   : > { %8048 = vmatmul.mubr.msk.bf16.vlgmr.msra.gmra.mrb[0].mxu0 %vm1552_vm8, %v10193_v37 }
 0x117   : > { %7742 = vmatmul.mubr.msk.bf16.gmra.mrb[24].mxu1 %vm1552_vm8, %v8829_v10  ;;  %8112 = vmatpush3.bf16.msra.mxu0 %v5851_v24  ;;  %v8833_v24 = vld [vmem:[#allocation2 + $0x88] sm:$0xff]  ;;  %v10235_v10 = vld [vmem:[#allocation2 + $0x58] sm:$0xff] }
 0x118   : > { %7745 = vmatprep.mubr.msk.bf16.mxu1 %vm1552_vm8, %v8830_v29  ;;  %8051 = vmatprep.mubr.msk.bf16.mxu0 %vm1552_vm8, %v10197_v21  ;;  %v10237_v29 = vld [vmem:[#allocation2 + $0x60] sm:$0xff] }
 0x119   : > { %8766 = vmatprep.subr.msk.bf16.mxu0 %vm1984_vm0, %v10218_v28 }
 0x11e   : > { %8052 = vmatmul.mubr.msk.bf16.gmra.mrb[4].mxu0 %vm1552_vm8, %v10207_v12 }
 0x11f   : > { %7746 = vmatmul.mubr.msk.bf16.gmra.mrb[28].mxu1 %vm1552_vm8, %v8831_v58  ;;  %8055 = vmatprep.mubr.msk.bf16.mxu0 %vm1552_vm8, %v10209_v2  ;;  %v10241_v58 = vld [vmem:[#allocation2 + $0x98] sm:$0xff] }
 0x120   : > { %7749 = vmatprep.mubr.msk.bf16.mxu1 %vm1552_vm8, %v8832_v56  ;;  %11170 = vst [vmem:[#allocation15_spill] sm:$0xff] %v10241_v58  ;;  %v10249_v56 = vld [vmem:[#allocation2 + $0x68] sm:$0xff] }
 0x126   : > { %8056 = vmatmul.mubr.msk.bf16.gmra.mrb[8].mxu0 %vm1552_vm8, %v10222_v55 }
 0x127   : > { %7750 = vmatmul.mubr.msk.bf16.gmra.mrb[32].mxu1 %vm1552_vm8, %v8833_v24  ;;  %8059 = vmatprep.mubr.msk.bf16.mxu0 %vm1552_vm8, %v10224_v54  ;;  %v10251_v24 = vld [vmem:[#allocation2 + $0x70] sm:$0xff] }
 0x128   : > { %7753 = vmatprep.mubr.msk.bf16.mxu1 %vm1552_vm8, %v10231_v14  ;;  %v10263_v14 = vld [vmem:[#allocation2 + $0x80] sm:$0xff] }
 0x12e   : > { %8060 = vmatmul.mubr.msk.bf16.gmra.mrb[12].mxu0 %vm1552_vm8, %v10235_v10 }
 0x12f   : > { %7754 = vmatmul.mubr.msk.bf16.gmra.mrb[36].mxu1 %vm1552_vm8, %v10241_v58  ;;  %8063 = vmatprep.mubr.msk.bf16.mxu0 %vm1552_vm8, %v10237_v29  ;;  %v10261_v58 = vld [vmem:[#allocation2 + $0x78] sm:$0xff] }
 0x130   : > { %7757 = vmatprep.mubr.msk.bf16.mxu1 %vm1552_vm8, %v9651_v8  ;;  %v10273_v8 = vld [vmem:[#allocation2 + $0x88] sm:$0xff] }
 0x136   : > { %8064 = vmatmul.mubr.msk.bf16.gmra.mrb[16].mxu0 %vm1552_vm8, %v10249_v56 }
 0x137   : > { %7758 = vmatmul.mubr.msk.bf16.gmra.mrb[40].mxu1 %vm1552_vm8, %v9700_v15  ;;  %8067 = vmatprep.mubr.msk.bf16.mxu0 %vm1552_vm8, %v10251_v24  ;;  %v10275_v15 = vld [vmem:[#allocation2 + $0x90] sm:$0xff] }
 0x138   : > { %7761 = vmatprep.mubr.msk.bf16.mxu1 %vm1552_vm8, %v9748_v59  ;;  %v10285_v59 = vld [vmem:[#allocation2 + $0x98] sm:$0xff] }
 0x13e   : > { %8068 = vmatmul.mubr.msk.bf16.gmra.mrb[20].mxu0 %vm1552_vm8, %v10261_v58 }
 0x13f   : > { %7762 = vmatmul.mubr.msk.bf16.gmra.mrb[44].mxu1 %vm1552_vm8, %v9770_v25  ;;  %8071 = vmatprep.mubr.msk.bf16.mxu0 %vm1552_vm8, %v10263_v14 }
 0x140   : > { %7765 = vmatprep.mubr.msk.bf16.mxu1 %vm1552_vm8, %v9808_v52 }
 0x146   : > { %8072 = vmatmul.mubr.msk.bf16.gmra.mrb[24].mxu0 %vm1552_vm8, %v10273_v8 }
 0x147   : > { %7766 = vmatmul.mubr.msk.bf16.gmra.mrb[48].mxu1 %vm1552_vm8, %v9832_v19  ;;  %8075 = vmatprep.mubr.msk.bf16.mxu0 %vm1552_vm8, %v10275_v15 }
 0x148   : > { %7769 = vmatprep.mubr.msk.bf16.mxu1 %vm1552_vm8, %v9874_v47 }
 0x14e   : > { %8076 = vmatmul.mubr.msk.bf16.gmra.mrb[28].mxu0 %vm1552_vm8, %v10285_v59 }
 0x14f   : > { %7770 = vmatmul.mubr.msk.bf16.gmra.mrb[52].mxu1 %vm1552_vm8, %v9900_v30  ;;  %8079 = vmatprep.mubr.msk.bf16.mxu0 %vm1552_vm8, %v10287_v16 }
 0x150   : > { %7773 = vmatprep.mubr.msk.bf16.mxu1 %vm1552_vm8, %v9941_v6 }
 0x156   : > { %8080 = vmatmul.mubr.msk.bf16.gmra.mrb[32].mxu0 %vm1552_vm8, %v10297_v63 }
 0x157   : > { %7774 = vmatmul.mubr.msk.bf16.gmra.mrb[56].mxu1 %vm1552_vm8, %v9962_v44  ;;  %8083 = vmatprep.mubr.msk.bf16.mxu0 %vm1552_vm8, %v10299_v62  ;;  %v2673_v62 = vrot.slane %v10094_v45, 1  ;;  %v2679_v45 = vrot.slane %v10129_v46, 1 }
 0x158   : > { %7777 = vmatprep.mubr.msk.bf16.mxu1 %vm1552_vm8, %v9995_v41 }
 0x159   : > { %v2674_v3 = vsel %vm2669_vm9, %v2671_v7, %v2673_v62 }
 0x15e   : > { %8084 = vmatmul.mubr.msk.bf16.gmra.mrb[36].mxu0 %vm1552_vm8, %v9770_v25  ;;  %v2676_v25 = vsel %vm2669_vm9, %v2673_v62, %v2675_v9 }
 0x15f   : > { %7778 = vmatmul.mubr.msk.bf16.gmra.mrb[60].mxu1 %vm1552_vm8, %v10010_v42  ;;  %8087 = vmatprep.mubr.msk.bf16.mxu0 %vm1552_vm8, %v9808_v52  ;;  %v2677_v52 = vrot.slane %v10116_v34, 1 }
 0x160   : > { %7783 = vmatprep.mubr.msk.bf16.mxu1 %vm1552_vm8, %v2672_v20  ;;  %v8836_v20 = vld [vmem:[%s8980_s11 + $0x10] sm:$0xf] }
 0x161   : > { %v2678_v26 = vsel %vm2669_vm9, %v2675_v9, %v2677_v52  ;;  %v2680_v7 = vsel %vm2669_vm9, %v2677_v52, %v2679_v45 }
 0x166   : > { %8088 = vmatmul.mubr.msk.bf16.gmra.mrb[40].mxu0 %vm1552_vm8, %v9832_v19  ;;  %v2681_v19 = vrot.slane %v10136_v49, 1  ;;  %v5495_v49 = vshrl.u32 %v10176_v60, 16 }
 0x167   : > { %7784 = vmatmul.mubr.msk.bf16.vlgmr.msra.gmra.mrb[0].mxu1 %vm1552_vm8, %v2674_v3  ;;  %8091 = vmatprep.mubr.msk.bf16.mxu0 %vm1552_vm8, %v9874_v47  ;;  %v2683_v47 = vrot.slane %v10156_v27, 1  ;;  %v5502_v27 = vshll.u32 %v10193_v37, 16 }
 0x168   : > { %7848 = vmatpush3.bf16.msra.mxu1 %v3318_v61  ;;  %7787 = vmatprep.mubr.msk.bf16.mxu1 %vm1552_vm8, %v2676_v25  ;;  %v2682_v48 = vsel %vm2669_vm9, %v2679_v45, %v2681_v19  ;;  %v750_v61 = vadd.s32 576, %v8950_v1  ;;  %v751_v45 = vadd.s32 584, %v8950_v1 }
 0x169   : > { %8762 = vmatprep.subr.msk.bf16.mxu1 %vm1984_vm0, %v8836_v20  ;;  %v2684_v34 = vsel %vm2669_vm9, %v2681_v19, %v2683_v47  ;;  %v5504_v3 = vrot.slane %v5502_v27, 1  ;;  %v5510_v20 = vshll.u32 %v10197_v21, 16 }
 0x16a   : > { %v826_v19 = vshra.s32 %v750_v61, 5 }
 0x16c   : > { %vm10389_vm13 = vcmp.ge.s32.totalorder %v826_v19, 1  ;;  %vm1054_vm15 = vcmp.le.s32.totalorder %v826_v19, 16  ;;  %v5538_v19 = vshrl.u32 %v10222_v55, 16 }
 0x16d   : > { %vm1130_vm3 = vmand %vm10389_vm13, %vm1054_vm15 }
 0x16e   : > { %8092 = vmatmul.mubr.msk.bf16.gmra.mrb[44].mxu0 %vm1552_vm8, %v9900_v30  ;;  %v2685_v30 = vrot.slane %v10163_v0, 1 }
 0x16f   : > { %7788 = vmatmul.mubr.msk.bf16.gmra.mrb[4].mxu1 %vm1552_vm8, %v2678_v26  ;;  %8095 = vmatprep.mubr.msk.bf16.mxu0 %vm1552_vm8, %v9941_v6  ;;  %v10382_v26 = vld [vmem:[#allocation2 + $0x118] sm:$0xff] }
 0x170   : > { %7791 = vmatprep.mubr.msk.bf16.mxu1 %vm1552_vm8, %v2680_v7  ;;  %v2686_v6 = vsel %vm2669_vm9, %v2683_v47, %v2685_v30  ;;  %v2688_v46 = vsel %vm2669_vm9, %v2685_v30, %v9674_v53  ;;  %v7351_v53 = vld [vmem:[%s9004_s14 + $0x120] sm:$0xff]   ;;  %v827_v47 = vshra.s32 %v751_v45, 5  ;;  %v902_v30 = vand.u32 31, %v750_v61 }
 0x171   : > { %v7333_v0 = vunpack.c.h.bf16 %v7351_v53  ;;  %v5530_v61 = vshrl.u32 %v10209_v2, 16 }
 0x172   : > { %vm10393_vm14 = vcmp.ge.s32.totalorder %v827_v47, 1  ;;  %vm1055_vm1 = vcmp.le.s32.totalorder %v827_v47, 16  ;;  %vm1206_vm2 = vcmp.ge.s32.totalorder %v902_v30, 1 }
 0x173   : > { %v515_v52 = vmul.f32 %v10182_v17, %v7333_v0  ;;  %vm1131_vm4 = vmand %vm10393_vm14, %vm1055_vm1  ;;  %v5522_v0 = vshrl.u32 %v10207_v12, 16 }
 0x174   : > { %vm1282_vm5 = vmand %vm1130_vm3, %vm1206_vm2 }
 0x176   : > { %8096 = vmatmul.mubr.msk.bf16.gmra.mrb[48].mxu0 %vm1552_vm8, %v9962_v44  ;;  %v5497_v44 = vshll.u32 %v10176_v60, 16 }
 0x177   : > { %7792 = vmatmul.mubr.msk.bf16.gmra.mrb[8].mxu1 %vm1552_vm8, %v2682_v48  ;;  %8099 = vmatprep.mubr.msk.bf16.mxu0 %vm1552_vm8, %v9995_v41  ;;  %v10363_v41 = vld [vmem:[#allocation2 + $0x110] sm:$0xff] }
 0x178   : > { %7795 = vmatprep.mubr.msk.bf16.mxu1 %vm1552_vm8, %v2684_v34  ;;  %v5499_v62 = vrot.slane %v5497_v44, 1  ;;  %v5514_v34 = vshrl.u32 %v10197_v21, 16  ;;  %v5512_v44 = vrot.slane %v5510_v20, 1 }
 0x17a   : > { %v5500_v9 = vor.u32 %v5499_v62, %v5495_v49  ;;  %v5516_v62 = vor.u32 %v5514_v34, %v5512_v44 }
 0x17c   : > { %v5505_v48 = vsel %vm1627_vm11, %v5500_v9, %v5504_v3 }
 0x17e   : > { %8100 = vmatmul.mubr.msk.bf16.gmra.mrb[52].mxu0 %vm1552_vm8, %v10010_v42  ;;  %v7332_v42 = vunpack.c.l.bf16 %v7351_v53 }
 0x17f   : > { %7796 = vmatmul.mubr.msk.bf16.gmra.mrb[12].mxu1 %vm1552_vm8, %v2686_v6  ;;  %8103 = vmatprep.mubr.msk.bf16.mxu0 %vm1552_vm8, %v10150_v57 }
 0x180   : > { %7799 = vmatprep.mubr.msk.bf16.mxu1 %vm1552_vm8, %v2688_v46  ;;  %v514_v25 = vmul.f32 %v10182_v17, %v7332_v42  ;;  %v5518_v17 = vshll.u32 %v10207_v12, 16  ;;  %v5554_v46 = vshrl.u32 %v10235_v10, 16 }
 0x182   : > { %v597_v7 = vadd.f32 %v10190_v51, %v514_v25  ;;  %v5520_v27 = vrot.slane %v5518_v17, 1 }
 0x184   : > { %v673_v49 = vmax.f32 %v597_v7, 0.0  ;;  %v5542_v7 = vshll.u32 %v10224_v54, 16 }
 0x186   : > { %8104 = vmatmul.mubr.msk.bf16.gmra.mrb[56].mxu0 %vm1552_vm8, %v10152_v36  ;;  %v1510_v9 = vsel %vm1282_vm5, %v673_v49, 0.0  ;;  %v5544_v34 = vrot.slane %v5542_v7, 1 }
 0x187   : > { %7800 = vmatmul.mubr.msk.bf16.gmra.mrb[16].mxu1 %vm1552_vm8, %v9740_v43  ;;  %8107 = vmatprep.mubr.msk.bf16.mxu0 %vm1552_vm8, %v10363_v41  ;;  %v5506_v43 = vshrl.u32 %v10193_v37, 16 }
 0x188   : > { %7803 = vmatprep.mubr.msk.bf16.mxu1 %vm1552_vm8, %v9754_v11  ;;  %v598_v11 = vadd.f32 %v10190_v51, %v515_v52  ;;  %v5521_v52 = vsel %vm1627_vm11, %v5516_v62, %v5520_v27 }
 0x189   : > { %v5508_v51 = vor.u32 %v5506_v43, %v5504_v3  ;;  %v6404_v3 = vsel %vm1984_vm0, %v10218_v28, 0  ;;  %v5524_v43 = vor.u32 %v5522_v0, %v5520_v27 }
 0x18a   : > { %v674_v1 = vmax.f32 %v598_v11, 0.0 }
 0x18b   : > { %v5513_v42 = vsel %vm1627_vm11, %v5508_v51, %v5512_v44  ;;  %v5562_v44 = vshrl.u32 %v10237_v29, 16 }
 0x18c   : > { %v1511_v53 = vsel %vm1131_vm4, %v674_v1, 0.0  ;;  %v5558_v1 = vshll.u32 %v10237_v29, 16 }
 0x18d   : > { %v1550_v25 = vpack.c.bf16 %v1511_v53, %v1510_v9  ;;  %v5574_v53 = vshll.u32 %v10251_v24, 16  ;;  %v5578_v9 = vshrl.u32 %v10251_v24, 16 }
 0x18e   : > { %8108 = vmatmul.mubr.msk.bf16.gmra.mrb[60].mxu0 %vm1552_vm8, %v10382_v26  ;;  %v5560_v49 = vrot.slane %v5558_v1, 1  ;;  %v5622_v1 = vshll.u32 %v10287_v16, 16 }
 0x18f   : > { %7804 = vmatmul.mubr.msk.bf16.gmra.mrb[20].mxu1 %vm1552_vm8, %v9803_v40  ;;  %8113 = vmatprep.mubr.msk.bf16.mxu0 %vm1552_vm8, %v5505_v48  ;;  %v5526_v40 = vshll.u32 %v10209_v2, 16  ;;  %1589 = vst.msk [vmem:[#allocation2 + $0x120] sm:$0xff] %vm1552_vm8, %v1550_v25  ;;  %v5546_v48 = vshrl.u32 %v10224_v54, 16  ;;  %v5590_v25 = vshll.u32 %v10263_v14, 16 }
 0x190   : > { %7807 = vmatprep.mubr.msk.bf16.mxu1 %vm1552_vm8, %v9822_v39  ;;  %v5534_v39 = vshll.u32 %v10222_v55, 16  ;;  %v5564_v62 = vor.u32 %v5562_v44, %v5560_v49  ;;  %v5626_v44 = vshrl.u32 %v10287_v16, 16 }
 0x191   : > { %v5528_v45 = vrot.slane %v5526_v40, 1  ;;  %v5548_v30 = vor.u32 %v5546_v48, %v5544_v34  ;;  %v5602_v48 = vshrl.u32 %v10273_v8, 16 }
 0x192   : > { %v5536_v20 = vrot.slane %v5534_v39, 1 }
 0x193   : > { %v5532_v28 = vor.u32 %v5530_v61, %v5528_v45  ;;  %v5529_v11 = vsel %vm1627_vm11, %v5524_v43, %v5528_v45  ;;  %v5586_v45 = vshrl.u32 %v10261_v58, 16 }
 0x195   : > { %v5537_v47 = vsel %vm1627_vm11, %v5532_v28, %v5536_v20  ;;  %v5594_v28 = vshrl.u32 %v10263_v14, 16 }
 0x196   : > { %8114 = vmatmul.mubr.msk.bf16.vlgmr.msra.gmra.mrb[0].mxu0 %vm1552_vm8, %v5513_v42  ;;  %v5570_v42 = vshrl.u32 %v10249_v56, 16 }
 0x197   : > { %7808 = vmatmul.mubr.msk.bf16.gmra.mrb[24].mxu1 %vm1552_vm8, %v9844_v4  ;;  %8178 = vmatpush3.bf16.msra.mxu0 %v6404_v3  ;;  %v5550_v4 = vshll.u32 %v10235_v10, 16  ;;  %v5576_v3 = vrot.slane %v5574_v53, 1  ;;  %v10495_v53 = vld [vmem:[#allocation2 + $0xb8] sm:$0xff] }
 0x198   : > { %7811 = vmatprep.mubr.msk.bf16.mxu1 %vm1552_vm8, %v9886_v23  ;;  %8117 = vmatprep.mubr.msk.bf16.mxu0 %vm1552_vm8, %v5521_v52  ;;  %v5540_v23 = vor.u32 %v5538_v19, %v5536_v20  ;;  %v5592_v20 = vrot.slane %v5590_v25, 1  ;;  %v5606_v19 = vshll.u32 %v10275_v15, 16 }
 0x199   : > { %v5552_v17 = vrot.slane %v5550_v4, 1  ;;  %v5580_v61 = vor.u32 %v5578_v9, %v5576_v3  ;;  %v5634_v9 = vshrl.u32 %v10297_v63, 16 }
 0x19a   : > { %v5545_v6 = vsel %vm1627_vm11, %v5540_v23, %v5544_v34  ;;  %v5596_v7 = vor.u32 %v5594_v28, %v5592_v20  ;;  %v5610_v34 = vshrl.u32 %v10275_v15, 16  ;;  %v5608_v23 = vrot.slane %v5606_v19, 1 }
 0x19b   : > { %v5553_v51 = vsel %vm1627_vm11, %v5548_v30, %v5552_v17 }
 0x19c   : > { %v5612_v30 = vor.u32 %v5610_v34, %v5608_v23 }
 0x19e   : > { %8118 = vmatmul.mubr.msk.bf16.gmra.mrb[4].mxu0 %vm1552_vm8, %v5529_v11 }
 0x19f   : > { %7812 = vmatmul.mubr.msk.bf16.gmra.mrb[28].mxu1 %vm1552_vm8, %v9921_v5  ;;  %8121 = vmatprep.mubr.msk.bf16.mxu0 %vm1552_vm8, %v5537_v47  ;;  %v5566_v5 = vshll.u32 %v10249_v56, 16 }
 0x1a0   : > { %7815 = vmatprep.mubr.msk.bf16.mxu1 %vm1552_vm8, %v9951_v33  ;;  %v5556_v33 = vor.u32 %v5554_v46, %v5552_v17  ;;  %v5618_v46 = vshrl.u32 %v10285_v59, 16 }
 0x1a1   : > { %v5568_v27 = vrot.slane %v5566_v5, 1  ;;  %v5624_v5 = vrot.slane %v5622_v1, 1 }
 0x1a2   : > { %v5561_v40 = vsel %vm1627_vm11, %v5556_v33, %v5560_v49  ;;  %v11176_v49 = vld [vmem:[#allocation7_spill] sm:$0xff]  ;;  %v11177_v33 = vld [vmem:[#allocation8_spill] sm:$0xff] }
 0x1a3   : > { %v5569_v0 = vsel %vm1627_vm11, %v5564_v62, %v5568_v27  ;;  %v5628_v62 = vor.u32 %v5626_v44, %v5624_v5 }
 0x1a6   : > { %8122 = vmatmul.mubr.msk.bf16.gmra.mrb[8].mxu0 %vm1552_vm8, %v5545_v6 }
 0x1a7   : > { %7816 = vmatmul.mubr.msk.bf16.gmra.mrb[32].mxu1 %vm1552_vm8, %v9992_v22  ;;  %8125 = vmatprep.mubr.msk.bf16.mxu0 %vm1552_vm8, %v5553_v51  ;;  %v5582_v22 = vshll.u32 %v10261_v58, 16 }
 0x1a8   : > { %7819 = vmatprep.mubr.msk.bf16.mxu1 %vm1552_vm8, %v10001_v31  ;;  %v5572_v31 = vor.u32 %v5570_v42, %v5568_v27 }
 0x1a9   : > { %v5584_v39 = vrot.slane %v5582_v22, 1 }
 0x1aa   : > { %v5577_v52 = vsel %vm1627_vm11, %v5572_v31, %v5576_v3  ;;  %v5646_v31 = vshll.u32 %v10495_v53, 16 }
 0x1ab   : > { %v5585_v43 = vsel %vm1627_vm11, %v5580_v61, %v5584_v39 }
 0x1ac   : > { %v5648_v28 = vrot.slane %v5646_v31, 1 }
 0x1ae   : > { %8126 = vmatmul.mubr.msk.bf16.gmra.mrb[12].mxu0 %vm1552_vm8, %v5561_v40  ;;  %v11178_v40 = vld [vmem:[#allocation16_spill] sm:$0xff] }
 0x1af   : > { %7820 = vmatmul.mubr.msk.bf16.gmra.mrb[36].mxu1 %vm1552_vm8, %v10013_v18  ;;  %8129 = vmatprep.mubr.msk.bf16.mxu0 %vm1552_vm8, %v5569_v0  ;;  %v5598_v18 = vshll.u32 %v10273_v8, 16  ;;  %v5638_v42 = vshll.u32 %v11178_v40, 16  ;;  %v5642_v3 = vshrl.u32 %v11178_v40, 16 }
 0x1b0   : > { %7823 = vmatprep.mubr.msk.bf16.mxu1 %vm1552_vm8, %v10024_v50  ;;  %v5588_v50 = vor.u32 %v5586_v45, %v5584_v39  ;;  %v11179_v39 = vld [vmem:[#allocation9_spill] sm:$0xff]  ;;  %v11180_v45 = vld [vmem:[#allocation10_spill] sm:$0xff] }
 0x1b1   : > { %v5600_v11 = vrot.slane %v5598_v18, 1  ;;  %v5640_v61 = vrot.slane %v5638_v42, 1  ;;  %v10511_v18 = vld [vmem:[#allocation2 + $0xc8] sm:$0xff] }
 0x1b2   : > { %v5593_v47 = vsel %vm1627_vm11, %v5588_v50, %v5592_v20  ;;  %v5666_v44 = vshrl.u32 %v10511_v18, 16 }
 0x1b3   : > { %v5601_v4 = vsel %vm1627_vm11, %v5596_v7, %v5600_v11  ;;  %v5650_v7 = vshrl.u32 %v10495_v53, 16 }
 0x1b5   : > { %v5652_v34 = vor.u32 %v5650_v7, %v5648_v28  ;;  %v10555_v7 = vld [vmem:[#allocation2 + $0xf0] sm:$0xff] }
 0x1b6   : > { %8130 = vmatmul.mubr.msk.bf16.gmra.mrb[16].mxu0 %vm1552_vm8, %v5577_v52  ;;  %v10507_v52 = vld [vmem:[#allocation2 + $0xc0] sm:$0xff] }
 0x1b7   : > { %7824 = vmatmul.mubr.msk.bf16.gmra.mrb[40].mxu1 %vm1552_vm8, %v10034_v13  ;;  %8133 = vmatprep.mubr.msk.bf16.mxu0 %vm1552_vm8, %v5585_v43  ;;  %v5614_v13 = vshll.u32 %v10285_v59, 16  ;;  %v5644_v43 = vor.u32 %v5642_v3, %v5640_v61  ;;  %v5654_v20 = vshll.u32 %v10507_v52, 16  ;;  %v5658_v19 = vshrl.u32 %v10507_v52, 16  ;;  %v10544_v3 = vld [vmem:[#allocation2 + $0xe8] sm:$0xff] }
 0x1b8   : > { %7827 = vmatprep.mubr.msk.bf16.mxu1 %vm1552_vm8, %v10039_v32  ;;  %v5604_v32 = vor.u32 %v5602_v48, %v5600_v11 }
 0x1b9   : > { %v5616_v17 = vrot.slane %v5614_v13, 1  ;;  %v5649_v11 = vsel %vm1627_vm11, %v5644_v43, %v5648_v28  ;;  %v5656_v48 = vrot.slane %v5654_v20, 1  ;;  %v10523_v13 = vld [vmem:[#allocation2 + $0xd0] sm:$0xff]  ;;  %v5694_v28 = vshll.u32 %v10544_v3, 16 }
 0x1ba   : > { %v5609_v6 = vsel %vm1627_vm11, %v5604_v32, %v5608_v23  ;;  %v11182_v23 = vld [vmem:[#allocation13_spill] sm:$0xff]  ;;  %v11183_v32 = vld [vmem:[#allocation6_spill] sm:$0xff] }
 0x1bb   : > { %v5617_v51 = vsel %vm1627_vm11, %v5612_v30, %v5616_v17  ;;  %v2733_v30 = vrot.slane %v11183_v32, 1 }
 0x1be   : > { %8134 = vmatmul.mubr.msk.bf16.gmra.mrb[20].mxu0 %vm1552_vm8, %v5593_v47  ;;  %v5662_v47 = vshll.u32 %v10511_v18, 16 }
 0x1bf   : > { %7828 = vmatmul.mubr.msk.bf16.gmra.mrb[44].mxu1 %vm1552_vm8, %v10074_v38  ;;  %8137 = vmatprep.mubr.msk.bf16.mxu0 %vm1552_vm8, %v5601_v4  ;;  %v5630_v38 = vshll.u32 %v10297_v63, 16  ;;  %v11181_v4 = vld [vmem:[#allocation12_spill] sm:$0xff] }
 0x1c0   : > { %7831 = vmatprep.mubr.msk.bf16.mxu1 %vm1552_vm8, %v10077_v35  ;;  %v5620_v35 = vor.u32 %v5618_v46, %v5616_v17  ;;  %v5660_v17 = vor.u32 %v5658_v19, %v5656_v48  ;;  %v5664_v1 = vrot.slane %v5662_v47, 1  ;;  %v5670_v46 = vshll.u32 %v10523_v13, 16 }
 0x1c1   : > { %v5632_v27 = vrot.slane %v5630_v38, 1  ;;  %v11184_v38 = vld [vmem:[#allocation11_spill] sm:$0xff]  ;;  %v5696_v47 = vrot.slane %v5694_v28, 1 }
 0x1c2   : > { %v5625_v0 = vsel %vm1627_vm11, %v5620_v35, %v5624_v5  ;;  %v2734_v5 = vsel %vm2669_vm9, %v11184_v38, %v2733_v30  ;;  %v5674_v35 = vshrl.u32 %v10523_v13, 16  ;;  %v5668_v42 = vor.u32 %v5666_v44, %v5664_v1 }
 0x1c3   : > { %v5633_v22 = vsel %vm1627_vm11, %v5628_v62, %v5632_v27  ;;  %v5636_v25 = vor.u32 %v5634_v9, %v5632_v27  ;;  %v3187_v62 = vld [vmem:[#allocation2 + $0x10] sm:$0xff]  ;;  %v5672_v27 = vrot.slane %v5670_v46, 1  ;;  %v5706_v30 = vshrl.u32 %v10555_v7, 16 }
 0x1c4   : > { %v5718_v44 = vshll.u32 %v10150_v57, 16 }
 0x1c5   : > { %v5641_v50 = vsel %vm1627_vm11, %v5636_v25, %v5640_v61  ;;  %v5676_v9 = vor.u32 %v5674_v35, %v5672_v27  ;;  %v5673_v61 = vsel %vm1627_vm11, %v5668_v42, %v5672_v27  ;;  %v3188_v25 = vld [vmem:[#allocation2 + $0x18] sm:$0xff]  ;;  %v5722_v35 = vshrl.u32 %v10150_v57, 16 }
 0x1c6   : > { %8138 = vmatmul.mubr.msk.bf16.gmra.mrb[24].mxu0 %vm1552_vm8, %v5609_v6  ;;  %v10528_v6 = vld [vmem:[#allocation2 + $0xd8] sm:$0xff]  ;;  %v5734_v57 = vshll.u32 %v10363_v41, 16 }
 0x1c7   : > { %7832 = vmatmul.mubr.msk.bf16.gmra.mrb[48].mxu1 %vm1552_vm8, %v11176_v49  ;;  %8141 = vmatprep.mubr.msk.bf16.mxu0 %vm1552_vm8, %v5617_v51  ;;  %v5657_v51 = vsel %vm1627_vm11, %v5652_v34, %v5656_v48  ;;  %v5665_v49 = vsel %vm1627_vm11, %v5660_v17, %v5664_v1  ;;  %v10560_v48 = vld [vmem:[#allocation2 + $0xf8] sm:$0xff] }
 0x1c8   : > { %7835 = vmatprep.mubr.msk.bf16.mxu1 %vm1552_vm8, %v11177_v33  ;;  %v5678_v33 = vshll.u32 %v10528_v6, 16  ;;  %v5710_v17 = vshll.u32 %v10560_v48, 16 }
 0x1ce   : > { %8142 = vmatmul.mubr.msk.bf16.gmra.mrb[28].mxu0 %vm1552_vm8, %v5625_v0  ;;  %v10541_v0 = vld [vmem:[#allocation2 + $0xe0] sm:$0xff] }
 0x1cf   : > { %7836 = vmatmul.mubr.msk.bf16.gmra.mrb[52].mxu1 %vm1552_vm8, %v11179_v39  ;;  %8145 = vmatprep.mubr.msk.bf16.mxu0 %vm1552_vm8, %v5633_v22  ;;  %v5680_v22 = vrot.slane %v5678_v33, 1  ;;  %v5686_v31 = vshll.u32 %v10541_v0, 16  ;;  %v5682_v39 = vshrl.u32 %v10528_v6, 16  ;;  %v5690_v43 = vshrl.u32 %v10541_v0, 16 }
 0x1d0   : > { %7839 = vmatprep.mubr.msk.bf16.mxu1 %vm1552_vm8, %v11180_v45  ;;  %v5726_v33 = vshll.u32 %v10152_v36, 16 }
 0x1d1   : > { %v5681_v45 = vsel %vm1627_vm11, %v5676_v9, %v5680_v22  ;;  %v5688_v20 = vrot.slane %v5686_v31, 1  ;;  %v5730_v31 = vshrl.u32 %v10152_v36, 16 }
 0x1d2   : > { %v5728_v9 = vrot.slane %v5726_v33, 1 }
 0x1d3   : > { %v5692_v19 = vor.u32 %v5690_v43, %v5688_v20 }
 0x1d4   : > { %v10603_v43 = vor.u32 %v5730_v31, %v5728_v9 }
 0x1d5   : > { %v5697_v32 = vsel %vm1627_vm11, %v5692_v19, %v5696_v47 }
 0x1d6   : > { %8146 = vmatmul.mubr.msk.bf16.gmra.mrb[32].mxu0 %vm1552_vm8, %v5641_v50  ;;  %v5684_v50 = vor.u32 %v5682_v39, %v5680_v22  ;;  %v5738_v39 = vshrl.u32 %v10363_v41, 16 }
 0x1d7   : > { %7840 = vmatmul.mubr.msk.bf16.gmra.mrb[56].mxu1 %vm1552_vm8, %v11181_v4  ;;  %8149 = vmatprep.mubr.msk.bf16.mxu0 %vm1552_vm8, %v5649_v11  ;;  %v11185_v11 = vld [vmem:[#allocation3_spill] sm:$0xff]  ;;  %v5702_v4 = vshll.u32 %v10555_v7, 16 }
 0x1d8   : > { %7843 = vmatprep.mubr.msk.bf16.mxu1 %vm1552_vm8, %v11182_v23  ;;  %v5689_v34 = vsel %vm1627_vm11, %v5684_v50, %v5688_v20  ;;  %v5698_v23 = vshrl.u32 %v10544_v3, 16  ;;  %v10607_v20 = vld [vmem:[#allocation2 + $0x120] sm:$0x1] }
 0x1d9   : > { %v5704_v1 = vrot.slane %v5702_v4, 1  ;;  %v5750_v19 = vshll.u32 %v10607_v20, 16  ;;  %v6206_v4 = vld [vmem:[#allocation2 + $0x20] sm:$0xfe] }
 0x1db   : > { %v5708_v46 = vor.u32 %v5706_v30, %v5704_v1  ;;  %v6243_v30 = vrot.slane %v10193_v37, 1 }
 0x1de   : > { %8150 = vmatmul.mubr.msk.bf16.gmra.mrb[36].mxu0 %vm1552_vm8, %v5657_v51  ;;  %v5712_v51 = vrot.slane %v5710_v17, 1 }
 0x1df   : > { %7844 = vmatmul.mubr.msk.bf16.gmra.mrb[60].mxu1 %vm1552_vm8, %v2734_v5  ;;  %8153 = vmatprep.mubr.msk.bf16.mxu0 %vm1552_vm8, %v5665_v49  ;;  %v5714_v5 = vshrl.u32 %v10560_v48, 16 }
 0x1e0   : > { %7849 = vmatprep.mubr.msk.bf16.mxu1 %vm1552_vm8, %v3187_v62  ;;  %v5713_v49 = vsel %vm1627_vm11, %v5708_v46, %v5712_v51  ;;  %v10581_v62 = vrot.slane %v5718_v44, 1  ;;  %v6247_v46 = vrot.slane %v10207_v12, 1  ;;  %v6249_v44 = vrot.slane %v10209_v2, 1 }
 0x1e1   : > { %v5716_v27 = vor.u32 %v5714_v5, %v5712_v51  ;;  %v6253_v5 = vrot.slane %v10224_v54, 1 }
 0x1e2   : > { %v5724_v42 = vor.u32 %v5722_v35, %v10581_v62  ;;  %v6257_v35 = vrot.slane %v10237_v29, 1 }
 0x1e3   : > { %v5721_v22 = vsel %vm1627_vm11, %v5716_v27, %v10581_v62  ;;  %v6261_v27 = vrot.slane %v10251_v24, 1 }
 0x1e6   : > { %8154 = vmatmul.mubr.msk.bf16.gmra.mrb[40].mxu0 %vm1552_vm8, %v5673_v61  ;;  %v10594_v61 = vsel %vm1627_vm11, %v5724_v42, %v5728_v9  ;;  %v6265_v9 = vrot.slane %v10263_v14, 1 }
 0x1e7   : > { %7850 = vmatmul.mubr.msk.bf16.vlgmr.msra.gmra.mrb[0].mxu1 %vm1552_vm8, %v3188_v25  ;;  %8157 = vmatprep.mubr.msk.bf16.mxu0 %vm1552_vm8, %v5681_v45  ;;  %v5742_v25 = vshll.u32 %v10382_v26, 16  ;;  %v5736_v45 = vrot.slane %v5734_v57, 1 }
 0x1e8   : > { %8244 = vmatpush3.bf16.msra.mxu1 %v11185_v11  ;;  %7853 = vmatprep.mubr.msk.bf16.mxu1 %vm1552_vm8, %v10176_v60  ;;  %v5700_v60 = vor.u32 %v5698_v23, %v5696_v47  ;;  %v5746_v11 = vshrl.u32 %v10382_v26, 16  ;;  %v5752_v23 = vrot.slane %v5750_v19, 1  ;;  %v11187_v19 = vld [vmem:[#allocation15_spill] sm:$0xff] }
 0x1e9   : > { %v5740_v36 = vor.u32 %v5738_v39, %v5736_v45  ;;  %v5744_v28 = vrot.slane %v5742_v25, 1  ;;  %v5737_v50 = vsel %vm1627_vm11, %v10603_v43, %v5736_v45  ;;  %v6273_v39 = vrot.slane %v10287_v16, 1 }
 0x1ea   : > { %v5705_v38 = vsel %vm1627_vm11, %v5700_v60, %v5704_v1  ;;  %v6245_v60 = vrot.slane %v10197_v21, 1  ;;  %v6277_v45 = vrot.slane %v11178_v40, 1 }
 0x1eb   : > { %v5745_v47 = vsel %vm1627_vm11, %v5740_v36, %v5744_v28 }
 0x1ec   : > { %v6248_v51 = vsel %vm2669_vm9, %v6245_v60, %v6247_v46 }
 0x1ee   : > { %8158 = vmatmul.mubr.msk.bf16.gmra.mrb[44].mxu0 %vm1552_vm8, %v5689_v34  ;;  %v5748_v34 = vor.u32 %v5746_v11, %v5744_v28  ;;  %v3217_v28 = vld [vmem:[#allocation2 + $0x100] sm:$0xff] }
 0x1ef   : > { %7854 = vmatmul.mubr.msk.bf16.gmra.mrb[4].mxu1 %vm1552_vm8, %v10193_v37  ;;  %8161 = vmatprep.mubr.msk.bf16.mxu0 %vm1552_vm8, %v5697_v32  ;;  %v6242_v32 = vrot.slane %v6206_v4, 1  ;;  %v6246_v37 = vsel %vm2669_vm9, %v6243_v30, %v6245_v60  ;;  %v11188_v4 = vld [vmem:[#allocation4_spill] sm:$0xff] }
 0x1f0   : > { %7857 = vmatprep.mubr.msk.bf16.mxu1 %vm1552_vm8, %v10197_v21  ;;  %v5753_v17 = vsel %vm1627_vm11, %v5748_v34, %v5752_v23  ;;  %v6251_v21 = vrot.slane %v10222_v55, 1 }
 0x1f1   : > { %v6244_v1 = vsel %vm2669_vm9, %v6242_v32, %v6243_v30  ;;  %v3218_v30 = vld [vmem:[#allocation2 + $0x108] sm:$0xff] }
 0x1f6   : > { %8162 = vmatmul.mubr.msk.bf16.gmra.mrb[48].mxu0 %vm1552_vm8, %v5705_v38  ;;  %v6252_v38 = vsel %vm2669_vm9, %v6249_v44, %v6251_v21 }
 0x1f7   : > { %7858 = vmatmul.mubr.msk.bf16.gmra.mrb[8].mxu1 %vm1552_vm8, %v10207_v12  ;;  %8165 = vmatprep.mubr.msk.bf16.mxu0 %vm1552_vm8, %v5713_v49  ;;  %v6250_v12 = vsel %vm2669_vm9, %v6247_v46, %v6249_v44  ;;  %v8837_v46 = vld [vmem:[#allocation2 + $0xa0] sm:$0xff] }
 0x1f8   : > { %7861 = vmatprep.mubr.msk.bf16.mxu1 %vm1552_vm8, %v10209_v2  ;;  %v6255_v2 = vrot.slane %v10235_v10, 1 }
 0x1fa   : > { %v6256_v49 = vsel %vm2669_vm9, %v6253_v5, %v6255_v2 }
 0x1fe   : > { %8166 = vmatmul.mubr.msk.bf16.gmra.mrb[52].mxu0 %vm1552_vm8, %v5721_v22  ;;  %v6269_v22 = vrot.slane %v10275_v15, 1 }
 0x1ff   : > { %7862 = vmatmul.mubr.msk.bf16.gmra.mrb[12].mxu1 %vm1552_vm8, %v10222_v55  ;;  %8169 = vmatprep.mubr.msk.bf16.mxu0 %vm1552_vm8, %v10594_v61  ;;  %v6254_v55 = vsel %vm2669_vm9, %v6251_v21, %v6253_v5  ;;  %v6287_v21 = vrot.slane %v10528_v6, 1 }
 0x200   : > { %7865 = vmatprep.mubr.msk.bf16.mxu1 %vm1552_vm8, %v10224_v54  ;;  %v6259_v54 = vrot.slane %v10249_v56, 1 }
 0x202   : > { %v6260_v33 = vsel %vm2669_vm9, %v6257_v35, %v6259_v54 }
 0x206   : > { %8170 = vmatmul.mubr.msk.bf16.gmra.mrb[56].mxu0 %vm1552_vm8, %v5737_v50  ;;  %v11186_v50 = vld [vmem:[#allocation14_spill] sm:$0xff] }
 0x207   : > { %7866 = vmatmul.mubr.msk.bf16.gmra.mrb[16].mxu1 %vm1552_vm8, %v10235_v10  ;;  %8173 = vmatprep.mubr.msk.bf16.mxu0 %vm1552_vm8, %v5745_v47  ;;  %v6258_v10 = vsel %vm2669_vm9, %v6255_v2, %v6257_v35  ;;  %v3840_v11 = vshrl.u32 %v11186_v50, 16  ;;  %v3844_v47 = vshll.u32 %v11187_v19, 16  ;;  %v8839_v2 = vld [vmem:[#allocation2 + $0xb0] sm:$0xff] }
 0x208   : > { %7869 = vmatprep.mubr.msk.bf16.mxu1 %vm1552_vm8, %v10237_v29  ;;  %v6263_v29 = vrot.slane %v10261_v58, 1  ;;  %v8843_v50 = vld [vmem:[#allocation2 + $0xd0] sm:$0xff] }
 0x209   : > { %v3842_v34 = vor.u32 %v3840_v11, %v11188_v4  ;;  %v3846_v23 = vrot.slane %v3844_v47, 1  ;;  %v3900_v11 = vshll.u32 %v8843_v50, 16 }
 0x20a   : > { %v6264_v42 = vsel %vm2669_vm9, %v6261_v27, %v6263_v29 }
 0x20b   : > { %v3847_v60 = vsel %vm1627_vm11, %v3842_v34, %v3846_v23  ;;  %v3904_v34 = vshrl.u32 %v8843_v50, 16 }
 0x20e   : > { %8174 = vmatmul.mubr.msk.bf16.gmra.mrb[60].mxu0 %vm1552_vm8, %v5753_v17  ;;  %v3848_v17 = vshrl.u32 %v11187_v19, 16 }
 0x20f   : > { %7870 = vmatmul.mubr.msk.bf16.gmra.mrb[20].mxu1 %vm1552_vm8, %v10249_v56  ;;  %8179 = vmatprep.mubr.msk.bf16.mxu0 %vm1552_vm8, %v6244_v1  ;;  %v6262_v56 = vsel %vm2669_vm9, %v6259_v54, %v6261_v27  ;;  %v8840_v27 = vld [vmem:[#allocation2 + $0xb8] sm:$0xff] }
 0x210   : > { %7873 = vmatprep.mubr.msk.bf16.mxu1 %vm1552_vm8, %v10251_v24  ;;  %v6267_v24 = vrot.slane %v10273_v8, 1  ;;  %v3850_v44 = vor.u32 %v3848_v17, %v3846_v23 }
 0x212   : > { %v6268_v57 = vsel %vm2669_vm9, %v6265_v9, %v6267_v24 }
 0x216   : > { %8180 = vmatmul.mubr.msk.bf16.vlgmr.msra.gmra.mrb[0].mxu0 %vm1552_vm8, %v6246_v37  ;;  %v3856_v37 = vshrl.u32 %v8837_v46, 16 }
 0x217   : > { %7874 = vmatmul.mubr.msk.bf16.gmra.mrb[24].mxu1 %vm1552_vm8, %v10261_v58  ;;  %8183 = vmatprep.mubr.msk.bf16.mxu0 %vm1552_vm8, %v6248_v51  ;;  %v6266_v58 = vsel %vm2669_vm9, %v6263_v29, %v6265_v9  ;;  %v8838_v51 = vld [vmem:[#allocation2 + $0xa8] sm:$0xff]  ;;  %v3876_v29 = vshll.u32 %v8840_v27, 16  ;;  %v6291_v9 = vrot.slane %v10544_v3, 1 }
 0x218   : > { %7877 = vmatprep.mubr.msk.bf16.mxu1 %vm1552_vm8, %v10263_v14  ;;  %v6271_v14 = vrot.slane %v10285_v59, 1  ;;  %v3864_v54 = vshrl.u32 %v8838_v51, 16 }
 0x21a   : > { %v6272_v31 = vsel %vm2669_vm9, %v6269_v22, %v6271_v14 }
 0x21e   : > { %8184 = vmatmul.mubr.msk.bf16.gmra.mrb[4].mxu0 %vm1552_vm8, %v6250_v12  ;;  %v11189_v12 = vld [vmem:[#allocation5_spill] sm:$0xff] }
 0x21f   : > { %7878 = vmatmul.mubr.msk.bf16.gmra.mrb[28].mxu1 %vm1552_vm8, %v10273_v8  ;;  %8187 = vmatprep.mubr.msk.bf16.mxu0 %vm1552_vm8, %v6252_v38  ;;  %v6270_v8 = vsel %vm2669_vm9, %v6267_v24, %v6269_v22  ;;  %v3858_v38 = vor.u32 %v3856_v37, %v11189_v12  ;;  %v3855_v35 = vsel %vm1627_vm11, %v3850_v44, %v11189_v12 }
 0x220   : > { %7881 = vmatprep.mubr.msk.bf16.mxu1 %vm1552_vm8, %v10275_v15  ;;  %v6275_v15 = vrot.slane %v10297_v63, 1 }
 0x222   : > { %v6276_v25 = vsel %vm2669_vm9, %v6273_v39, %v6275_v15 }
 0x226   : > { %8188 = vmatmul.mubr.msk.bf16.gmra.mrb[8].mxu0 %vm1552_vm8, %v6254_v55  ;;  %v3868_v55 = vshll.u32 %v8839_v2, 16 }
 0x227   : > { %7882 = vmatmul.mubr.msk.bf16.gmra.mrb[32].mxu1 %vm1552_vm8, %v10285_v59  ;;  %8191 = vmatprep.mubr.msk.bf16.mxu0 %vm1552_vm8, %v6256_v49  ;;  %v6274_v59 = vsel %vm2669_vm9, %v6271_v14, %v6273_v39 }
 0x228   : > { %7885 = vmatprep.mubr.msk.bf16.mxu1 %vm1552_vm8, %v10287_v16  ;;  %v6279_v16 = vrot.slane %v10495_v53, 1 }
 0x22a   : > { %v6280_v36 = vsel %vm2669_vm9, %v6277_v45, %v6279_v16 }
 0x22e   : > { %8192 = vmatmul.mubr.msk.bf16.gmra.mrb[12].mxu0 %vm1552_vm8, %v6258_v10 }
 0x22f   : > { %7886 = vmatmul.mubr.msk.bf16.gmra.mrb[36].mxu1 %vm1552_vm8, %v10297_v63  ;;  %8195 = vmatprep.mubr.msk.bf16.mxu0 %vm1552_vm8, %v6260_v33  ;;  %v6278_v63 = vsel %vm2669_vm9, %v6275_v15, %v6277_v45  ;;  %v3872_v33 = vshrl.u32 %v8839_v2, 16  ;;  %v6293_v45 = vrot.slane %v10555_v7, 1  ;;  %v8848_v2 = vld [vmem:[#allocation2 + $0xe8] sm:$0xff] }
 0x230   : > { %7889 = vmatprep.mubr.msk.bf16.mxu1 %vm1552_vm8, %v11178_v40  ;;  %v6281_v40 = vrot.slane %v10507_v52, 1 }
 0x231   : > { %v6294_v19 = vsel %vm2669_vm9, %v6291_v9, %v6293_v45 }
 0x232   : > { %v6282_v32 = vsel %vm2669_vm9, %v6279_v16, %v6281_v40 }
 0x236   : > { %8196 = vmatmul.mubr.msk.bf16.gmra.mrb[16].mxu0 %vm1552_vm8, %v6262_v56  ;;  %v6289_v56 = vrot.slane %v10541_v0, 1 }
 0x237   : > { %7890 = vmatmul.mubr.msk.bf16.gmra.mrb[40].mxu1 %vm1552_vm8, %v10495_v53  ;;  %8199 = vmatprep.mubr.msk.bf16.mxu0 %vm1552_vm8, %v6264_v42  ;;  %v6283_v53 = vrot.slane %v10511_v18, 1 }
 0x238   : > { %7893 = vmatprep.mubr.msk.bf16.mxu1 %vm1552_vm8, %v10507_v52  ;;  %v3860_v52 = vshll.u32 %v8838_v51, 16  ;;  %v6290_v14 = vsel %vm2669_vm9, %v6287_v21, %v6289_v56  ;;  %v6292_v39 = vsel %vm2669_vm9, %v6289_v56, %v6291_v9  ;;  %v8847_v51 = vld [vmem:[#allocation2 + $0xe0] sm:$0xff] }
 0x239   : > { %v6284_v1 = vsel %vm2669_vm9, %v6281_v40, %v6283_v53 }
 0x23a   : > { %v3862_v5 = vrot.slane %v3860_v52, 1  ;;  %v3916_v52 = vshll.u32 %v8847_v51, 16 }
 0x23c   : > { %v3866_v42 = vor.u32 %v3864_v54, %v3862_v5 }
 0x23e   : > { %8200 = vmatmul.mubr.msk.bf16.gmra.mrb[20].mxu0 %vm1552_vm8, %v6266_v58  ;;  %v3878_v58 = vrot.slane %v3876_v29, 1 }
 0x23f   : > { %7894 = vmatmul.mubr.msk.bf16.gmra.mrb[44].mxu1 %vm1552_vm8, %v10511_v18  ;;  %8203 = vmatprep.mubr.msk.bf16.mxu0 %vm1552_vm8, %v6268_v57  ;;  %v6285_v18 = vrot.slane %v10523_v13, 1  ;;  %v8841_v57 = vld [vmem:[#allocation2 + $0xc0] sm:$0xff] }
 0x240   : > { %7897 = vmatprep.mubr.msk.bf16.mxu1 %vm1552_vm8, %v10523_v13  ;;  %v3863_v13 = vsel %vm1627_vm11, %v3858_v38, %v3862_v5  ;;  %v3884_v22 = vshll.u32 %v8841_v57, 16  ;;  %v3920_v5 = vshrl.u32 %v8847_v51, 16 }
 0x241   : > { %v6286_v49 = vsel %vm2669_vm9, %v6283_v53, %v6285_v18  ;;  %v6288_v10 = vsel %vm2669_vm9, %v6285_v18, %v6287_v21 }
 0x246   : > { %8204 = vmatmul.mubr.msk.bf16.gmra.mrb[24].mxu0 %vm1552_vm8, %v6270_v8 }
 0x247   : > { %7898 = vmatmul.mubr.msk.bf16.gmra.mrb[48].mxu1 %vm1552_vm8, %v10528_v6  ;;  %8207 = vmatprep.mubr.msk.bf16.mxu0 %vm1552_vm8, %v6272_v31  ;;  %v3870_v6 = vrot.slane %v3868_v55, 1  ;;  %v3880_v31 = vshrl.u32 %v8840_v27, 16  ;;  %v3924_v55 = vshll.u32 %v8848_v2, 16  ;;  %v8849_v27 = vld [vmem:[#allocation2 + $0xf0] sm:$0xff] }
 0x248   : > { %7901 = vmatprep.mubr.msk.bf16.mxu1 %vm1552_vm8, %v10541_v0  ;;  %v8842_v0 = vld [vmem:[#allocation2 + $0xc8] sm:$0xff]  ;;  %v3932_v29 = vshll.u32 %v8849_v27, 16 }
 0x249   : > { %v3874_v24 = vor.u32 %v3872_v33, %v3870_v6  ;;  %v3871_v8 = vsel %vm1627_vm11, %v3866_v42, %v3870_v6  ;;  %v3882_v16 = vor.u32 %v3880_v31, %v3878_v58  ;;  %v3896_v40 = vshrl.u32 %v8842_v0, 16 }
 0x24a   : > { %v3926_v33 = vrot.slane %v3924_v55, 1  ;;  %v3928_v42 = vshrl.u32 %v8848_v2, 16 }
 0x24b   : > { %v3879_v15 = vsel %vm1627_vm11, %v3874_v24, %v3878_v58  ;;  %v3936_v58 = vshrl.u32 %v8849_v27, 16 }
 0x24e   : > { %8208 = vmatmul.mubr.msk.bf16.gmra.mrb[28].mxu0 %vm1552_vm8, %v6274_v59  ;;  %v3888_v59 = vshrl.u32 %v8841_v57, 16 }
 0x24f   : > { %7902 = vmatmul.mubr.msk.bf16.gmra.mrb[52].mxu1 %vm1552_vm8, %v10544_v3  ;;  %8211 = vmatprep.mubr.msk.bf16.mxu0 %vm1552_vm8, %v6276_v25  ;;  %v3892_v25 = vshll.u32 %v8842_v0, 16  ;;  %v3886_v3 = vrot.slane %v3884_v22, 1  ;;  %v6305_v22 = vrot.slane %v10607_v20, 1 }
 0x250   : > { %7905 = vmatprep.mubr.msk.bf16.mxu1 %vm1552_vm8, %v10555_v7  ;;  %v8844_v7 = vld [vmem:[#allocation2 + $0xd8] sm:$0xff] }
 0x251   : > { %v3887_v47 = vsel %vm1627_vm11, %v3882_v16, %v3886_v3  ;;  %v3908_v23 = vshll.u32 %v8844_v7, 16  ;;  %v3912_v21 = vshrl.u32 %v8844_v7, 16 }
 0x253   : > { %v3910_v37 = vrot.slane %v3908_v23, 1 }
 0x255   : > { %v3914_v54 = vor.u32 %v3912_v21, %v3910_v37 }
 0x256   : > { %8212 = vmatmul.mubr.msk.bf16.gmra.mrb[32].mxu0 %vm1552_vm8, %v6278_v63  ;;  %v6295_v63 = vrot.slane %v10560_v48, 1 }
 0x257   : > { %7906 = vmatmul.mubr.msk.bf16.gmra.mrb[56].mxu1 %vm1552_vm8, %v10560_v48  ;;  %8215 = vmatprep.mubr.msk.bf16.mxu0 %vm1552_vm8, %v6280_v36  ;;  %v3890_v36 = vor.u32 %v3888_v59, %v3886_v3  ;;  %v3902_v48 = vrot.slane %v3900_v11, 1  ;;  %v8851_v3 = vld [vmem:[#allocation2 + $0x110] sm:$0x1] }
 0x258   : > { %7909 = vmatprep.mubr.msk.bf16.mxu1 %vm1552_vm8, %v3217_v28  ;;  %v3894_v28 = vrot.slane %v3892_v25, 1  ;;  %v6296_v53 = vsel %vm2669_vm9, %v6293_v45, %v6295_v63  ;;  %v3964_v45 = vshll.u32 %v8851_v3, 16 }
 0x259   : > { %v3906_v46 = vor.u32 %v3904_v34, %v3902_v48 }
 0x25a   : > { %v3895_v4 = vsel %vm1627_vm11, %v3890_v36, %v3894_v28  ;;  %v3898_v17 = vor.u32 %v3896_v40, %v3894_v28  ;;  %v3966_v16 = vrot.slane %v3964_v45, 1 }
 0x25b   : > { %v3911_v38 = vsel %vm1627_vm11, %v3906_v46, %v3910_v37 }
 0x25c   : > { %v3903_v44 = vsel %vm1627_vm11, %v3898_v17, %v3902_v48 }
 0x25e   : > { %8216 = vmatmul.mubr.msk.bf16.gmra.mrb[36].mxu0 %vm1552_vm8, %v6282_v32  ;;  %v8845_v32 = vld [vmem:[#allocation2 + $0x100] sm:$0xff] }
 0x25f   : > { %7910 = vmatmul.mubr.msk.bf16.gmra.mrb[60].mxu1 %vm1552_vm8, %v3218_v30  ;;  %8219 = vmatprep.mubr.msk.bf16.mxu0 %vm1552_vm8, %v6284_v1  ;;  %v6297_v30 = vrot.slane %v8845_v32, 1  ;;  %v8846_v1 = vld [vmem:[#allocation2 + $0x108] sm:$0xff] }
 0x260   : > { %7947 = vmatprep.mubr.msk.bf16.mxu1 %vm1552_vm8, %v3847_v60  ;;  %v6299_v60 = vrot.slane %v8846_v1, 1 }
 0x261   : > { %v6298_v18 = vsel %vm2669_vm9, %v6295_v63, %v6297_v30  ;;  %v3967_v63 = vsel %vm1627_vm11, %v10603_v43, %v3966_v16 }
 0x262   : > { %v6300_v12 = vsel %vm2669_vm9, %v6297_v30, %v6299_v60 }
 0x266   : > { %8220 = vmatmul.mubr.msk.bf16.gmra.mrb[40].mxu0 %vm1552_vm8, %v6286_v49  ;;  %v3918_v49 = vrot.slane %v3916_v52, 1 }
 0x267   : > { %7948 = vmatmul.mubr.msk.bf16.vlgmr.msra.gmra.mrb[32].mxu1 %vm1552_vm8, %v3855_v35  ;;  %8223 = vmatprep.mubr.msk.bf16.mxu0 %vm1552_vm8, %v6288_v10  ;;  %v6301_v35 = vrot.slane %v10363_v41, 1  ;;  %v6303_v10 = vrot.slane %v10382_v26, 1  ;;  %v8850_v41 = vld [vmem:[#allocation2 + $0xf8] sm:$0xff]  ;;  %v3934_v26 = vrot.slane %v3932_v29, 1 }
 0x268   : > { %7951 = vmatprep.mubr.msk.bf16.mxu1 %vm1552_vm8, %v3863_v13  ;;  %v3922_v13 = vor.u32 %v3920_v5, %v3918_v49  ;;  %v3919_v56 = vsel %vm1627_vm11, %v3914_v54, %v3918_v49  ;;  %v3940_v57 = vshll.u32 %v8850_v41, 16  ;;  %v3944_v59 = vshrl.u32 %v8850_v41, 16 }
 0x269   : > { %v6302_v6 = vsel %vm2669_vm9, %v6299_v60, %v6301_v35  ;;  %v6304_v9 = vsel %vm2669_vm9, %v6301_v35, %v6303_v10 }
 0x26a   : > { %v3927_v24 = vsel %vm1627_vm11, %v3922_v13, %v3926_v33  ;;  %v3942_v31 = vrot.slane %v3940_v57, 1 }
 0x26c   : > { %v3946_v25 = vor.u32 %v3944_v59, %v3942_v31 }
 0x26e   : > { %8224 = vmatmul.mubr.msk.bf16.gmra.mrb[44].mxu0 %vm1552_vm8, %v6290_v14  ;;  %v3930_v14 = vor.u32 %v3928_v42, %v3926_v33  ;;  %v3951_v20 = vsel %vm1627_vm11, %v3946_v25, %v10581_v62 }
 0x26f   : > { %7952 = vmatmul.mubr.msk.bf16.gmra.mrb[36].mxu1 %vm1552_vm8, %v3871_v8  ;;  %8227 = vmatprep.mubr.msk.bf16.mxu0 %vm1552_vm8, %v6292_v39  ;;  %v3938_v8 = vor.u32 %v3936_v58, %v3934_v26  ;;  %v6306_v39 = vsel %vm2669_vm9, %v6303_v10, %v6305_v22 }
 0x270   : > { %7955 = vmatprep.mubr.msk.bf16.mxu1 %vm1552_vm8, %v3879_v15  ;;  %v3935_v15 = vsel %vm1627_vm11, %v3930_v14, %v3934_v26 }
 0x271   : > { %v3943_v0 = vsel %vm1627_vm11, %v3938_v8, %v3942_v31 }
 0x276   : > { %8228 = vmatmul.mubr.msk.bf16.gmra.mrb[48].mxu0 %vm1552_vm8, %v6294_v19 }
 0x277   : > { %7956 = vmatmul.mubr.msk.bf16.gmra.mrb[40].mxu1 %vm1552_vm8, %v3887_v47  ;;  %8231 = vmatprep.mubr.msk.bf16.mxu0 %vm1552_vm8, %v6296_v53 }
 0x278   : > { %7959 = vmatprep.mubr.msk.bf16.mxu1 %vm1552_vm8, %v3895_v4 }
 0x27e   : > { %8232 = vmatmul.mubr.msk.bf16.gmra.mrb[52].mxu0 %vm1552_vm8, %v6298_v18 }
 0x27f   : > { %7960 = vmatmul.mubr.msk.bf16.gmra.mrb[44].mxu1 %vm1552_vm8, %v3903_v44  ;;  %8235 = vmatprep.mubr.msk.bf16.mxu0 %vm1552_vm8, %v6300_v12 }
 0x280   : > { %7963 = vmatprep.mubr.msk.bf16.mxu1 %vm1552_vm8, %v3911_v38 }
 0x286   : > { %8236 = vmatmul.mubr.msk.bf16.gmra.mrb[56].mxu0 %vm1552_vm8, %v6302_v6 }
 0x287   : > { %7964 = vmatmul.mubr.msk.bf16.gmra.mrb[48].mxu1 %vm1552_vm8, %v3919_v56  ;;  %8239 = vmatprep.mubr.msk.bf16.mxu0 %vm1552_vm8, %v6304_v9 }
 0x288   : > { %7967 = vmatprep.mubr.msk.bf16.mxu1 %vm1552_vm8, %v3927_v24 }
 0x28e   : > { %8240 = vmatmul.mubr.msk.bf16.gmra.mrb[60].mxu0 %vm1552_vm8, %v6306_v39 }
 0x28f   : > { %7968 = vmatmul.mubr.msk.bf16.gmra.mrb[52].mxu1 %vm1552_vm8, %v3935_v15 }
 0x290   : > { %7971 = vmatprep.mubr.msk.bf16.mxu1 %vm1552_vm8, %v3943_v0 }
 0x297   : > { %7972 = vmatmul.mubr.msk.bf16.gmra.mrb[56].mxu1 %vm1552_vm8, %v3951_v20 }
 0x298   : > { %7975 = vmatprep.mubr.msk.bf16.mxu1 %vm1552_vm8, %v10594_v61 }
 0x29f   : > { %7976 = vmatmul.mubr.msk.bf16.gmra.mrb[60].mxu1 %vm1552_vm8, %v3967_v63 }
 0x2ba   : > { %v7851_v36 = vpop.f32.mrb[0].mxu1 }
 0x2bb   : > { %v3354_v28 = vpop.f32.mrb[1].mxu1 }
 0x2bc   : > { %v7852_v50 = vpop.f32.mrb[2].mxu1 }
 0x2bd   : > { %v3357_v11 = vpop.f32.mrb[3].mxu1 }
 0x2c2   : > { %v7855_v19 = vpop.f32.mrb[4].mxu1 }
 0x2c3   : > { %v3370_v47 = vpop.f32.mrb[5].mxu1 }
 0x2c4   : > { %v7856_v62 = vpop.f32.mrb[6].mxu1 }
 0x2c5   : > { %v3373_v40 = vpop.f32.mrb[7].mxu1 }
 0x2ca   : > { %v7859_v53 = vpop.f32.mrb[8].mxu1 }
 0x2cb   : > { %v3386_v4 = vpop.f32.mrb[9].mxu1 }
 0x2cc   : > { %v7860_v34 = vpop.f32.mrb[10].mxu1 }
 0x2cd   : > { %v3389_v7 = vpop.f32.mrb[11].mxu1 }
 0x2d2   : > { %v7863_v61 = vpop.f32.mrb[12].mxu1 }
 0x2d3   : > { %v3402_v23 = vpop.f32.mrb[13].mxu1 }
 0x2d4   : > { %v7864_v48 = vpop.f32.mrb[14].mxu1 }
 0x2d5   : > { %v10796_v32 = vpop.f32.mrb[15].mxu1 }
 0x2da   : > { %v10798_v43 = vpop.f32.mrb[16].mxu1 }
 0x2db   : > { %v10800_v30 = vpop.f32.mrb[17].mxu1 }
 0x2dc   : > { %v10802_v17 = vpop.f32.mrb[18].mxu1 }
 0x2dd   : > { %v10804_v1 = vpop.f32.mrb[19].mxu1 }
 0x2e2   : > { %v10806_v60 = vpop.f32.mrb[20].mxu1 }
 0x2e3   : > { %v10808_v46 = vpop.f32.mrb[21].mxu1 }
 0x2e4   : > { %v10810_v37 = vpop.f32.mrb[22].mxu1 }
 0x2e5   : > { %v10812_v51 = vpop.f32.mrb[23].mxu1 }
 0x2e9   : > { %v8181_v52 = vpop.f32.mrb[0].mxu0 }
 0x2ea   : > { %v10820_v18 = vpop.f32.mrb[24].mxu1  ;;  %v8245_v44 = vadd.f32 %v8181_v52, %v7851_v36  ;;  %v6440_v21 = vpop.f32.mrb[1].mxu0 }
 0x2eb   : > { %v10822_v12 = vpop.f32.mrb[25].mxu1  ;;  %v8246_v38 = vadd.f32 %v6440_v21, %v3354_v28  ;;  %v8182_v5 = vpop.f32.mrb[2].mxu0 }
 0x2ec   : > { %v10824_v2 = vpop.f32.mrb[26].mxu1  ;;  %6761 = vst.msk [vmem:[%s10818_s24 + $0x10] sm:$0xff] %vm1552_vm8, %v8245_v44  ;;  %v8247_v55 = vadd.f32 %v8182_v5, %v7852_v50  ;;  %v6443_v49 = vpop.f32.mrb[3].mxu0 }
 0x2ed   : > { %v10828_v35 = vpop.f32.mrb[27].mxu1  ;;  %6759 = vst.msk [vmem:[%s10818_s24] sm:$0xff] %vm1552_vm8, %v8246_v38  ;;  %v8248_v54 = vadd.f32 %v6443_v49, %v3357_v11 }
 0x2ee   : > { %6762 = vst.msk [vmem:[%s10818_s24 + $0x18] sm:$0xff] %vm1552_vm8, %v8247_v55 }
 0x2ef   : > { %6760 = vst.msk [vmem:[%s10818_s24 + $0x8] sm:$0xff] %vm1552_vm8, %v8248_v54 }
 0x2f1   : > { %v8185_v10 = vpop.f32.mrb[4].mxu0 }
 0x2f2   : > { %v10836_v13 = vpop.f32.mrb[28].mxu1  ;;  %v8249_v33 = vadd.f32 %v8185_v10, %v7855_v19  ;;  %v6456_v27 = vpop.f32.mrb[5].mxu0 }
 0x2f3   : > { %v10838_v29 = vpop.f32.mrb[29].mxu1  ;;  %v8250_v6 = vadd.f32 %v6456_v27, %v3370_v47  ;;  %v8186_v56 = vpop.f32.mrb[6].mxu0 }
 0x2f4   : > { %v10840_v42 = vpop.f32.mrb[30].mxu1  ;;  %6765 = vst.msk [vmem:[%s10818_s24 + $0x30] sm:$0xff] %vm1552_vm8, %v8249_v33  ;;  %v8251_v9 = vadd.f32 %v8186_v56, %v7856_v62  ;;  %v6459_v24 = vpop.f32.mrb[7].mxu0 }
 0x2f5   : > { %v10844_v58 = vpop.f32.mrb[31].mxu1  ;;  %6763 = vst.msk [vmem:[%s10818_s24 + $0x20] sm:$0xff] %vm1552_vm8, %v8250_v6  ;;  %v8252_v41 = vadd.f32 %v6459_v24, %v3373_v40 }
 0x2f6   : > { %6766 = vst.msk [vmem:[%s10818_s24 + $0x38] sm:$0xff] %vm1552_vm8, %v8251_v9 }
 0x2f7   : > { %6764 = vst.msk [vmem:[%s10818_s24 + $0x28] sm:$0xff] %vm1552_vm8, %v8252_v41 }
 0x2f9   : > { %v8189_v57 = vpop.f32.mrb[8].mxu0 }
 0x2fa   : > { %v8253_v26 = vadd.f32 %v8189_v57, %v7859_v53  ;;  %v6472_v22 = vpop.f32.mrb[9].mxu0 }
 0x2fb   : > { %v8254_v14 = vadd.f32 %v6472_v22, %v3386_v4  ;;  %v8190_v8 = vpop.f32.mrb[10].mxu0 }
 0x2fc   : > { %6769 = vst.msk [vmem:[%s10818_s24 + $0x50] sm:$0xff] %vm1552_vm8, %v8253_v26  ;;  %v8255_v31 = vadd.f32 %v8190_v8, %v7860_v34  ;;  %v6475_v39 = vpop.f32.mrb[11].mxu0 }
 0x2fd   : > { %6767 = vst.msk [vmem:[%s10818_s24 + $0x40] sm:$0xff] %vm1552_vm8, %v8254_v14  ;;  %v8256_v15 = vadd.f32 %v6475_v39, %v3389_v7 }
 0x2fe   : > { %6770 = vst.msk [vmem:[%s10818_s24 + $0x58] sm:$0xff] %vm1552_vm8, %v8255_v31 }
 0x2ff   : > { %6768 = vst.msk [vmem:[%s10818_s24 + $0x48] sm:$0xff] %vm1552_vm8, %v8256_v15 }
 0x301   : > { %v8193_v59 = vpop.f32.mrb[12].mxu0 }
 0x302   : > { %v8257_v0 = vadd.f32 %v8193_v59, %v7863_v61  ;;  %v6488_v25 = vpop.f32.mrb[13].mxu0 }
 0x303   : > { %v8258_v20 = vadd.f32 %v6488_v25, %v3402_v23  ;;  %v8194_v3 = vpop.f32.mrb[14].mxu0 }
 0x304   : > { %6773 = vst.msk [vmem:[%s10818_s24 + $0x70] sm:$0xff] %vm1552_vm8, %v8257_v0  ;;  %v8259_v45 = vadd.f32 %v8194_v3, %v7864_v48  ;;  %v6491_v16 = vpop.f32.mrb[15].mxu0 }
 0x305   : > { %6771 = vst.msk [vmem:[%s10818_s24 + $0x60] sm:$0xff] %vm1552_vm8, %v8258_v20  ;;  %v8260_v63 = vadd.f32 %v6491_v16, %v10796_v32 }
 0x306   : > { %6774 = vst.msk [vmem:[%s10818_s24 + $0x78] sm:$0xff] %vm1552_vm8, %v8259_v45 }
 0x307   : > { %6772 = vst.msk [vmem:[%s10818_s24 + $0x68] sm:$0xff] %vm1552_vm8, %v8260_v63 }
 0x309   : > { %v8197_v36 = vpop.f32.mrb[16].mxu0 }
 0x30a   : > { %v8261_v28 = vadd.f32 %v8197_v36, %v10798_v43  ;;  %v6504_v50 = vpop.f32.mrb[17].mxu0 }
 0x30b   : > { %v8262_v11 = vadd.f32 %v6504_v50, %v10800_v30  ;;  %v8198_v19 = vpop.f32.mrb[18].mxu0 }
 0x30c   : > { %6777 = vst.msk [vmem:[%s10818_s24 + $0x90] sm:$0xff] %vm1552_vm8, %v8261_v28  ;;  %v8263_v47 = vadd.f32 %v8198_v19, %v10802_v17  ;;  %v6507_v62 = vpop.f32.mrb[19].mxu0 }
 0x30d   : > { %6775 = vst.msk [vmem:[%s10818_s24 + $0x80] sm:$0xff] %vm1552_vm8, %v8262_v11  ;;  %v8264_v40 = vadd.f32 %v6507_v62, %v10804_v1 }
 0x30e   : > { %6778 = vst.msk [vmem:[%s10818_s24 + $0x98] sm:$0xff] %vm1552_vm8, %v8263_v47 }
 0x30f   : > { %6776 = vst.msk [vmem:[%s10818_s24 + $0x88] sm:$0xff] %vm1552_vm8, %v8264_v40 }
 0x311   : > { %v8201_v53 = vpop.f32.mrb[20].mxu0 }
 0x312   : > { %v8265_v4 = vadd.f32 %v8201_v53, %v10806_v60  ;;  %v6520_v34 = vpop.f32.mrb[21].mxu0 }
 0x313   : > { %v8266_v7 = vadd.f32 %v6520_v34, %v10808_v46  ;;  %v8202_v61 = vpop.f32.mrb[22].mxu0 }
 0x314   : > { %6781 = vst.msk [vmem:[%s10818_s24 + $0xb0] sm:$0xff] %vm1552_vm8, %v8265_v4  ;;  %v8267_v23 = vadd.f32 %v8202_v61, %v10810_v37  ;;  %v6523_v48 = vpop.f32.mrb[23].mxu0 }
 0x315   : > { %6779 = vst.msk [vmem:[%s10818_s24 + $0xa0] sm:$0xff] %vm1552_vm8, %v8266_v7  ;;  %v8268_v32 = vadd.f32 %v6523_v48, %v10812_v51 }
 0x316   : > { %6782 = vst.msk [vmem:[%s10818_s24 + $0xb8] sm:$0xff] %vm1552_vm8, %v8267_v23 }
 0x317   : > { %6780 = vst.msk [vmem:[%s10818_s24 + $0xa8] sm:$0xff] %vm1552_vm8, %v8268_v32 }
 0x319   : > { %v8205_v43 = vpop.f32.mrb[24].mxu0 }
 0x31a   : > { %v8269_v30 = vadd.f32 %v8205_v43, %v10820_v18  ;;  %v6536_v17 = vpop.f32.mrb[25].mxu0 }
 0x31b   : > { %v8270_v1 = vadd.f32 %v6536_v17, %v10822_v12  ;;  %v8206_v60 = vpop.f32.mrb[26].mxu0 }
 0x31c   : > { %6785 = vst.msk [vmem:[%s10818_s24 + $0xd0] sm:$0xff] %vm1552_vm8, %v8269_v30  ;;  %v8271_v46 = vadd.f32 %v8206_v60, %v10824_v2  ;;  %v6539_v37 = vpop.f32.mrb[27].mxu0 }
 0x31d   : > { %6783 = vst.msk [vmem:[%s10818_s24 + $0xc0] sm:$0xff] %vm1552_vm8, %v8270_v1  ;;  %v8272_v51 = vadd.f32 %v6539_v37, %v10828_v35 }
 0x31e   : > { %6786 = vst.msk [vmem:[%s10818_s24 + $0xd8] sm:$0xff] %vm1552_vm8, %v8271_v46 }
 0x31f   : > { %6784 = vst.msk [vmem:[%s10818_s24 + $0xc8] sm:$0xff] %vm1552_vm8, %v8272_v51 }
 0x321   : > { %v8209_v52 = vpop.f32.mrb[28].mxu0 }
 0x322   : > { %v8273_v18 = vadd.f32 %v8209_v52, %v10836_v13  ;;  %v6552_v44 = vpop.f32.mrb[29].mxu0 }
 0x323   : > { %v8274_v21 = vadd.f32 %v6552_v44, %v10838_v29  ;;  %v8210_v12 = vpop.f32.mrb[30].mxu0 }
 0x324   : > { %6789 = vst.msk [vmem:[%s10818_s24 + $0xf0] sm:$0xff] %vm1552_vm8, %v8273_v18  ;;  %v8275_v38 = vadd.f32 %v8210_v12, %v10840_v42  ;;  %v6555_v5 = vpop.f32.mrb[31].mxu0 }
 0x325   : > { %6787 = vst.msk [vmem:[%s10818_s24 + $0xe0] sm:$0xff] %vm1552_vm8, %v8274_v21  ;;  %v8276_v2 = vadd.f32 %v6555_v5, %v10844_v58 }
 0x326   : > { %6790 = vst.msk [vmem:[%s10818_s24 + $0xf8] sm:$0xff] %vm1552_vm8, %v8275_v38 }
 0x327   : > { %6788 = vst.msk [vmem:[%s10818_s24 + $0xe8] sm:$0xff] %vm1552_vm8, %v8276_v2 }
 0x329   : > { %v8213_v55 = vpop.f32.mrb[32].mxu0 }
 0x32a   : > { %v6568_v49 = vpop.f32.mrb[33].mxu0 }
 0x32b   : > { %v8214_v35 = vpop.f32.mrb[34].mxu0 }
 0x32c   : > { %v6571_v54 = vpop.f32.mrb[35].mxu0 }
 0x331   : > { %v8217_v10 = vpop.f32.mrb[36].mxu0 }
 0x332   : > { %v6584_v13 = vpop.f32.mrb[37].mxu0 }
 0x333   : > { %v8218_v33 = vpop.f32.mrb[38].mxu0 }
 0x334   : > { %v6587_v27 = vpop.f32.mrb[39].mxu0 }
 0x339   : > { %v8221_v29 = vpop.f32.mrb[40].mxu0 }
 0x33a   : > { %v7949_v6 = vpop.f32.mrb[32].mxu1  ;;  %v6600_v56 = vpop.f32.mrb[41].mxu0 }
 0x33b   : > { %v8277_v42 = vadd.f32 %v8213_v55, %v7949_v6  ;;  %v4229_v9 = vpop.f32.mrb[33].mxu1  ;;  %v8222_v24 = vpop.f32.mrb[42].mxu0 }
 0x33c   : > { %v8278_v58 = vadd.f32 %v6568_v49, %v4229_v9  ;;  %v7950_v41 = vpop.f32.mrb[34].mxu1  ;;  %v6603_v57 = vpop.f32.mrb[43].mxu0 }
 0x33d   : > { %6793 = vst.msk [vmem:[%s10818_s24 + $0x110] sm:$0xff] %vm1552_vm8, %v8277_v42  ;;  %v8279_v26 = vadd.f32 %v8214_v35, %v7950_v41  ;;  %v4232_v22 = vpop.f32.mrb[35].mxu1 }
 0x33e   : > { %6791 = vst.msk [vmem:[%s10818_s24 + $0x100] sm:$0xff] %vm1552_vm8, %v8278_v58  ;;  %v8280_v14 = vadd.f32 %v6571_v54, %v4232_v22 }
 0x33f   : > { %6794 = vst.msk [vmem:[%s10818_s24 + $0x118] sm:$0xff] %vm1552_vm8, %v8279_v26 }
 0x340   : > { %6792 = vst.msk [vmem:[%s10818_s24 + $0x108] sm:$0xff] %vm1552_vm8, %v8280_v14 }
 0x341   : > { %v8225_v8 = vpop.f32.mrb[44].mxu0 }
 0x342   : > { %v7953_v31 = vpop.f32.mrb[36].mxu1  ;;  %v6616_v39 = vpop.f32.mrb[45].mxu0 }
 0x343   : > { %v8281_v15 = vadd.f32 %v8217_v10, %v7953_v31  ;;  %v4245_v59 = vpop.f32.mrb[37].mxu1  ;;  %v8226_v0 = vpop.f32.mrb[46].mxu0 }
 0x344   : > { %v8282_v25 = vadd.f32 %v6584_v13, %v4245_v59  ;;  %v7954_v20 = vpop.f32.mrb[38].mxu1  ;;  %v6619_v3 = vpop.f32.mrb[47].mxu0 }
 0x345   : > { %6797 = vst.msk [vmem:[%s10818_s24 + $0x130] sm:$0xff] %vm1552_vm8, %v8281_v15  ;;  %v8283_v45 = vadd.f32 %v8218_v33, %v7954_v20  ;;  %v4248_v16 = vpop.f32.mrb[39].mxu1 }
 0x346   : > { %6795 = vst.msk [vmem:[%s10818_s24 + $0x120] sm:$0xff] %vm1552_vm8, %v8282_v25  ;;  %v8284_v63 = vadd.f32 %v6587_v27, %v4248_v16 }
 0x347   : > { %6798 = vst.msk [vmem:[%s10818_s24 + $0x138] sm:$0xff] %vm1552_vm8, %v8283_v45 }
 0x348   : > { %6796 = vst.msk [vmem:[%s10818_s24 + $0x128] sm:$0xff] %vm1552_vm8, %v8284_v63 }
 0x349   : > { %v8229_v36 = vpop.f32.mrb[48].mxu0 }
 0x34a   : > { %v7957_v28 = vpop.f32.mrb[40].mxu1  ;;  %v6632_v50 = vpop.f32.mrb[49].mxu0 }
 0x34b   : > { %v8285_v11 = vadd.f32 %v8221_v29, %v7957_v28  ;;  %v4261_v19 = vpop.f32.mrb[41].mxu1  ;;  %v8230_v47 = vpop.f32.mrb[50].mxu0 }
 0x34c   : > { %v8286_v62 = vadd.f32 %v6600_v56, %v4261_v19  ;;  %v7958_v40 = vpop.f32.mrb[42].mxu1  ;;  %v6635_v53 = vpop.f32.mrb[51].mxu0 }
 0x34d   : > { %6801 = vst.msk [vmem:[%s10818_s24 + $0x150] sm:$0xff] %vm1552_vm8, %v8285_v11  ;;  %v8287_v4 = vadd.f32 %v8222_v24, %v7958_v40  ;;  %v4264_v34 = vpop.f32.mrb[43].mxu1 }
 0x34e   : > { %6799 = vst.msk [vmem:[%s10818_s24 + $0x140] sm:$0xff] %vm1552_vm8, %v8286_v62  ;;  %v8288_v7 = vadd.f32 %v6603_v57, %v4264_v34 }
 0x34f   : > { %6802 = vst.msk [vmem:[%s10818_s24 + $0x158] sm:$0xff] %vm1552_vm8, %v8287_v4 }
 0x350   : > { %6800 = vst.msk [vmem:[%s10818_s24 + $0x148] sm:$0xff] %vm1552_vm8, %v8288_v7 }
 0x351   : > { %v8233_v61 = vpop.f32.mrb[52].mxu0 }
 0x352   : > { %v7961_v23 = vpop.f32.mrb[44].mxu1  ;;  %v6648_v48 = vpop.f32.mrb[53].mxu0 }
 0x353   : > { %v8289_v32 = vadd.f32 %v8225_v8, %v7961_v23  ;;  %v4277_v43 = vpop.f32.mrb[45].mxu1  ;;  %v8234_v30 = vpop.f32.mrb[54].mxu0 }
 0x354   : > { %v8290_v17 = vadd.f32 %v6616_v39, %v4277_v43  ;;  %v7962_v1 = vpop.f32.mrb[46].mxu1  ;;  %v6651_v60 = vpop.f32.mrb[55].mxu0 }
 0x355   : > { %6805 = vst.msk [vmem:[%s10818_s24 + $0x170] sm:$0xff] %vm1552_vm8, %v8289_v32  ;;  %v8291_v46 = vadd.f32 %v8226_v0, %v7962_v1  ;;  %v4280_v37 = vpop.f32.mrb[47].mxu1 }
 0x356   : > { %6803 = vst.msk [vmem:[%s10818_s24 + $0x160] sm:$0xff] %vm1552_vm8, %v8290_v17  ;;  %v8292_v51 = vadd.f32 %v6619_v3, %v4280_v37 }
 0x357   : > { %6806 = vst.msk [vmem:[%s10818_s24 + $0x178] sm:$0xff] %vm1552_vm8, %v8291_v46 }
 0x358   : > { %6804 = vst.msk [vmem:[%s10818_s24 + $0x168] sm:$0xff] %vm1552_vm8, %v8292_v51 }
 0x359   : > { %v8237_v52 = vpop.f32.mrb[56].mxu0 }
 0x35a   : > { %v7965_v18 = vpop.f32.mrb[48].mxu1  ;;  %v6664_v44 = vpop.f32.mrb[57].mxu0 }
 0x35b   : > { %v8293_v21 = vadd.f32 %v8229_v36, %v7965_v18  ;;  %v4293_v12 = vpop.f32.mrb[49].mxu1  ;;  %v8238_v38 = vpop.f32.mrb[58].mxu0 }
 0x35c   : > { %v8294_v5 = vadd.f32 %v6632_v50, %v4293_v12  ;;  %v7966_v2 = vpop.f32.mrb[50].mxu1  ;;  %v6667_v55 = vpop.f32.mrb[59].mxu0 }
 0x35d   : > { %6809 = vst.msk [vmem:[%s10818_s24 + $0x190] sm:$0xff] %vm1552_vm8, %v8293_v21  ;;  %v8295_v49 = vadd.f32 %v8230_v47, %v7966_v2  ;;  %v4296_v35 = vpop.f32.mrb[51].mxu1 }
 0x35e   : > { %6807 = vst.msk [vmem:[%s10818_s24 + $0x180] sm:$0xff] %vm1552_vm8, %v8294_v5  ;;  %v8296_v54 = vadd.f32 %v6635_v53, %v4296_v35 }
 0x35f   : > { %6810 = vst.msk [vmem:[%s10818_s24 + $0x198] sm:$0xff] %vm1552_vm8, %v8295_v49 }
 0x360   : > { %6808 = vst.msk [vmem:[%s10818_s24 + $0x188] sm:$0xff] %vm1552_vm8, %v8296_v54 }
 0x361   : > { %v8241_v10 = vpop.f32.mrb[60].mxu0 }
 0x362   : > { %v7969_v13 = vpop.f32.mrb[52].mxu1  ;;  %v6680_v33 = vpop.f32.mrb[61].mxu0 }
 0x363   : > { %v8297_v27 = vadd.f32 %v8233_v61, %v7969_v13  ;;  %v4309_v29 = vpop.f32.mrb[53].mxu1  ;;  %v8242_v6 = vpop.f32.mrb[62].mxu0 }
 0x364   : > { %v8298_v56 = vadd.f32 %v6648_v48, %v4309_v29  ;;  %v7970_v42 = vpop.f32.mrb[54].mxu1  ;;  %v6683_v9 = vpop.f32.mrb[63].mxu0 }
 0x365   : > { %6813 = vst.msk [vmem:[%s10818_s24 + $0x1b0] sm:$0xff] %vm1552_vm8, %v8297_v27  ;;  %v8299_v24 = vadd.f32 %v8234_v30, %v7970_v42  ;;  %v4312_v58 = vpop.f32.mrb[55].mxu1 }
 0x366   : > { %6811 = vst.msk [vmem:[%s10818_s24 + $0x1a0] sm:$0xff] %vm1552_vm8, %v8298_v56  ;;  %v8300_v41 = vadd.f32 %v6651_v60, %v4312_v58 }
 0x367   : > { %6814 = vst.msk [vmem:[%s10818_s24 + $0x1b8] sm:$0xff] %vm1552_vm8, %v8299_v24 }
 0x368   : > { %6812 = vst.msk [vmem:[%s10818_s24 + $0x1a8] sm:$0xff] %vm1552_vm8, %v8300_v41 }
 0x36a   : > { %v7973_v57 = vpop.f32.mrb[56].mxu1 }
 0x36b   : > { %v8301_v26 = vadd.f32 %v8237_v52, %v7973_v57  ;;  %v4325_v22 = vpop.f32.mrb[57].mxu1 }
 0x36c   : > { %v8302_v14 = vadd.f32 %v6664_v44, %v4325_v22  ;;  %v7974_v8 = vpop.f32.mrb[58].mxu1 }
 0x36d   : > { %6817 = vst.msk [vmem:[%s10818_s24 + $0x1d0] sm:$0xff] %vm1552_vm8, %v8301_v26  ;;  %v8303_v31 = vadd.f32 %v8238_v38, %v7974_v8  ;;  %v4328_v39 = vpop.f32.mrb[59].mxu1 }
 0x36e   : > { %6815 = vst.msk [vmem:[%s10818_s24 + $0x1c0] sm:$0xff] %vm1552_vm8, %v8302_v14  ;;  %v8304_v15 = vadd.f32 %v6667_v55, %v4328_v39 }
 0x36f   : > { %6818 = vst.msk [vmem:[%s10818_s24 + $0x1d8] sm:$0xff] %vm1552_vm8, %v8303_v31 }
 0x370   : > { %6816 = vst.msk [vmem:[%s10818_s24 + $0x1c8] sm:$0xff] %vm1552_vm8, %v8304_v15 }
 0x372   : > { %v7977_v59 = vpop.f32.mrb[60].mxu1 }
 0x373   : > { %v8305_v0 = vadd.f32 %v8241_v10, %v7977_v59  ;;  %v4341_v25 = vpop.f32.mrb[61].mxu1 }
 0x374   : > { %v8306_v20 = vadd.f32 %v6680_v33, %v4341_v25  ;;  %v7978_v3 = vpop.f32.mrb[62].mxu1 }
 0x375   : > { %6821 = vst.msk [vmem:[%s10818_s24 + $0x1f0] sm:$0xff] %vm1552_vm8, %v8305_v0  ;;  %v8307_v45 = vadd.f32 %v8242_v6, %v7978_v3  ;;  %v4344_v16 = vpop.f32.mrb[63].mxu1 }
 0x376   : > { %6819 = vst.msk [vmem:[%s10818_s24 + $0x1e0] sm:$0xff] %vm1552_vm8, %v8306_v20  ;;  %v8308_v63 = vadd.f32 %v6683_v9, %v4344_v16 }
 0x377   : > { %6822 = vst.msk [vmem:[%s10818_s24 + $0x1f8] sm:$0xff] %vm1552_vm8, %v8307_v45 }
 0x378   : > { %6820 = vst.msk [vmem:[%s10818_s24 + $0x1e8] sm:$0xff] %vm1552_vm8, %v8308_v63 }
 0x379 PF: > { %s14_s19 = sadd.s32 1, %s8890_s19   ;;  %s11190_s15 = smov %s8882_s17 }
 0x37a   : > { %p11_p7 = scmp.ge.s32.totalorder %s14_s19, 10   ;;  %s11191_s16 = smov %s8886_s18 }
 0x37b   : > { %s11192_s17 = smov %s11195_s20  ;;  %s11193_s18 = smov %s11199_s21 }
 0x37c   :  { %13 = sbr.rel (!%p11_p7) target bundleno = 3 (0x3), region = 83 }

</bundles_post_ra>
